<compile_context>
chip_gen: v6e
topology: v6e:2x2x1
jax: 0.10.0
libtpu: 0.0.40
codegen_flags: <defaults>
</compile_context>

<pallas_src>
import functools

import jax
import jax.numpy as jnp
from jax import lax
from jax.experimental import pallas as pl
from jax.experimental.pallas import tpu as pltpu


def _pick_tile(total, candidates):
    for c in candidates:
        if total % c == 0:
            return c
    return total


def _spatial_transformer_kernel(flow_ref, src_ref, out_ref, u_acc,
                                *, D, H, W, C, TQ, DH_CHUNK):
    """One (batch, query-tile, dh-chunk) grid step.

    flow_ref : (1, 3, TQ)          displacement (d, h, w) for TQ query voxels
    src_ref  : (1, W*C, DH_CHUNK)  moving image, rows = w*C + c, cols = d*H + h
    out_ref  : (1, C, TQ)          warped image for the query tile
    u_acc    : (W*C, TQ) f32       (d,h)-interpolated values, accumulated over chunks
    """
    qt = pl.program_id(1)
    st = pl.program_id(2)
    n_st = pl.num_programs(2)

    HW = H * W
    f32 = jnp.float32

    # ---- per-query coordinates, all lane-dense (1, TQ) ----------------------
    q = (lax.broadcasted_iota(jnp.int32, (1, TQ), 1).astype(f32)
         + (qt * TQ).astype(f32))
    d_idx = jnp.floor(q / float(HW))
    rem = q - d_idx * float(HW)
    h_idx = jnp.floor(rem / float(W))
    w_idx = rem - h_idx * float(W)

    fl = flow_ref[0]                                   # (3, TQ)
    # align_corners=False un-normalization: pix = coord * size / (size - 1) - 0.5
    pd = (d_idx + fl[0:1, :]) * (float(D) / float(D - 1)) - 0.5
    ph = (h_idx + fl[1:2, :]) * (float(H) / float(H - 1)) - 0.5
    pw = (w_idx + fl[2:3, :]) * (float(W) / float(W - 1)) - 0.5

    d0 = jnp.floor(pd)
    h0 = jnp.floor(ph)
    w0 = jnp.floor(pw)
    wd1 = pd - d0; wd0 = 1.0 - wd1
    wh1 = ph - h0; wh0 = 1.0 - wh1
    ww1 = pw - w0; ww0 = 1.0 - ww1

    # padding_mode='zeros': out-of-range corners get weight 0; no index clamping
    # needed -- a wrapped one-hot match just multiplies by a zero weight.
    vd0 = (d0 >= 0.0) & (d0 <= float(D - 1))
    vd1 = (d0 >= -1.0) & (d0 <= float(D - 2))
    vh0 = (h0 >= 0.0) & (h0 <= float(H - 1))
    vh1 = (h0 >= -1.0) & (h0 <= float(H - 2))
    vw0 = (w0 >= 0.0) & (w0 <= float(W - 1))
    vw1 = (w0 >= -1.0) & (w0 <= float(W - 2))

    wt00 = jnp.where(vd0 & vh0, wd0 * wh0, 0.0)        # corner (d0, h0)
    wt01 = jnp.where(vd0 & vh1, wd0 * wh1, 0.0)        # corner (d0, h1)
    wt10 = jnp.where(vd1 & vh0, wd1 * wh0, 0.0)        # corner (d1, h0)
    wt11 = jnp.where(vd1 & vh1, wd1 * wh1, 0.0)        # corner (d1, h1)

    # ---- stage 1: one-hot (d,h) corner matrix for this dh chunk -------------
    dh_base = (d0 * float(H) + h0).astype(jnp.int32)                     # (1, TQ)
    diff = (lax.broadcasted_iota(jnp.int32, (DH_CHUNK, TQ), 0)
            + st * DH_CHUNK - dh_base)                                   # (DH_CHUNK, TQ)
    mdh = jnp.where(diff == 0, wt00, 0.0)
    mdh = mdh + jnp.where(diff == 1, wt01, 0.0)
    mdh = mdh + jnp.where(diff == H, wt10, 0.0)
    mdh = mdh + jnp.where(diff == H + 1, wt11, 0.0)

    @pl.when(st == 0)
    def _():
        u_acc[...] = jnp.zeros_like(u_acc)

    u_acc[...] += jnp.dot(src_ref[0], mdh, preferred_element_type=f32)

    # ---- stage 2: per-query 2-tap w interpolation (lane-dense FMAs) ---------
    @pl.when(st == n_st - 1)
    def _():
        w0i = w0.astype(jnp.int32)                                       # (1, TQ)
        ww0v = jnp.where(vw0, ww0, 0.0)
        ww1v = jnp.where(vw1, ww1, 0.0)
        acc = jnp.zeros((C, TQ), f32)
        for w in range(W):      # static unroll; each term is a (C, TQ) FMA
            wt = (jnp.where(w0i == w, ww0v, 0.0)
                  + jnp.where(w0i == w - 1, ww1v, 0.0))                  # (1, TQ)
            acc = acc + u_acc[w * C:(w + 1) * C, :] * wt
        out_ref[0] = acc.astype(out_ref.dtype)


def spatial_transformer(src, flow, *, tq=None, dh_chunk=None):
    """src: (N, C, D, H, W) float32; flow: (N, 3, D, H, W) float32."""
    N, C, D, H, W = src.shape
    assert flow.shape == (N, 3, D, H, W)
    DHW = D * H * W
    DH = D * H

    if tq is None:
        tq = _pick_tile(DHW, (1024, 512, 256, 128))
    if dh_chunk is None:
        dh_chunk = _pick_tile(DH, (2048, 1024, 512, 256, 128))
    assert DHW % tq == 0 and DH % dh_chunk == 0

    # Layout glue: only src needs a real transpose; flow/out reshapes are free.
    src_t = jnp.transpose(src, (0, 4, 1, 2, 3)).reshape(N, W * C, DH)
    flow_t = jnp.reshape(flow, (N, 3, DHW))

    kernel = functools.partial(_spatial_transformer_kernel,
                               D=D, H=H, W=W, C=C, TQ=tq, DH_CHUNK=dh_chunk)

    out_flat = pl.pallas_call(
        kernel,
        out_shape=jax.ShapeDtypeStruct((N, C, DHW), src.dtype),
        grid_spec=pltpu.PrefetchScalarGridSpec(
            num_scalar_prefetch=0,
            grid=(N, DHW // tq, DH // dh_chunk),
            in_specs=[
                pl.BlockSpec((1, 3, tq), lambda b, q, s: (b, 0, q)),
                pl.BlockSpec((1, W * C, dh_chunk), lambda b, q, s: (b, 0, s)),
            ],
            out_specs=pl.BlockSpec((1, C, tq), lambda b, q, s: (b, 0, q)),
            scratch_shapes=[pltpu.VMEM((W * C, tq), jnp.float32)],
        ),
        compiler_params=pltpu.CompilerParams(
            dimension_semantics=("parallel", "parallel", "arbitrary"),
            vmem_limit_bytes=32 * 1024 * 1024,
        ),
    )(flow_t, src_t)

    return out_flat.reshape(N, C, D, H, W)


def _reference(src, flow):
    """Pure-JAX reference: grid_sample(trilinear, zeros, align_corners=False)."""
    N, C, D, H, W = src.shape
    dd, hh, ww = jnp.meshgrid(jnp.arange(D), jnp.arange(H), jnp.arange(W),
                              indexing="ij")
    grid = jnp.stack([dd, hh, ww]).astype(jnp.float32)[None]            # (1,3,D,H,W)
    coord = grid + flow
    pix_d = coord[:, 0] * (D / (D - 1)) - 0.5
    pix_h = coord[:, 1] * (H / (H - 1)) - 0.5
    pix_w = coord[:, 2] * (W / (W - 1)) - 0.5
    outs = []
    for n in range(N):
        chans = []
        for c in range(C):
            chans.append(jax.scipy.ndimage.map_coordinates(
                src[n, c], [pix_d[n], pix_h[n], pix_w[n]],
                order=1, mode="constant", cval=0.0))
        outs.append(jnp.stack(chans))
    return jnp.stack(outs)


if __name__ == "__main__":
    # Small shapes consistent with the module's 5-D (volumetric) forward.
    N, C, D, H, W = 2, 4, 16, 16, 16
    key = jax.random.PRNGKey(0)
    k_src, k_flow = jax.random.split(key)
    src = jax.random.normal(k_src, (N, C, D, H, W), jnp.float32)
    flow = jax.random.normal(k_flow, (N, 3, D, H, W), jnp.float32) * 2.0

    # tq=512 -> 8 query tiles per batch; dh_chunk=128 -> 2 source chunks, so both
    # the parallel query tiling and the accumulator (arbitrary) axis are exercised.
    out = jax.block_until_ready(spatial_transformer(src, flow, tq=512, dh_chunk=128))
    assert out.shape == (N, C, D, H, W)

    ref = _reference(src, flow)
    if not jnp.allclose(out, ref, atol=1e-4, rtol=1e-4):
        err = float(jnp.max(jnp.abs(out - ref)))
        raise AssertionError(
            f"Pallas spatial transformer mismatches reference (max abs err {err})")
    print("KERNEL_OK")
</pallas_src>

<mosaic_0001>
module attributes {stable_mosaic.version = 11 : i64} {
  func.func @_spatial_transformer_kernel(%arg0: i32, %arg1: i32, %arg2: i32, %arg3: memref<1x3x512xf32, #tpu.memory_space<vmem>>, %arg4: memref<1x64x128xf32, #tpu.memory_space<vmem>>, %arg5: memref<1x4x512xf32, #tpu.memory_space<vmem>>, %arg6: memref<64x512xf32, #tpu.memory_space<vmem>>) attributes {dimension_semantics = [#tpu.dimension_semantics<parallel>, #tpu.dimension_semantics<parallel>, #tpu.dimension_semantics<arbitrary>], iteration_bounds = array<i64: 2, 8, 2>, scalar_prefetch = 0 : i64, scratch_operands = 1 : i64, tpu.core_type = #tpu.core_type<tc>, window_params = [{transform_indices = @transform_0, window_bounds = array<i64: 1, 3, 512>}, {transform_indices = @transform_1, window_bounds = array<i64: 1, 64, 128>}, {transform_indices = @transform_2, window_bounds = array<i64: 1, 4, 512>}]} {
    %0 = tpu.iota {dimensions = array<i32: 1>} : vector<1x512xi32>
    %1 = arith.sitofp %0 : vector<1x512xi32> to vector<1x512xf32>
    %c512_i32 = arith.constant 512 : i32
    %2 = arith.muli %arg1, %c512_i32 : i32
    %3 = arith.sitofp %2 : i32 to f32
    %4 = vector.broadcast %3 : f32 to vector<1x512xf32>
    %5 = arith.addf %1, %4 : vector<1x512xf32>
    %cst = arith.constant 2.560000e+02 : f32
    %6 = vector.broadcast %cst : f32 to vector<1x512xf32>
    %7 = arith.divf %5, %6 : vector<1x512xf32>
    %8 = math.floor %7 : vector<1x512xf32>
    %cst_0 = arith.constant 2.560000e+02 : f32
    %9 = vector.broadcast %cst_0 : f32 to vector<1x512xf32>
    %10 = arith.mulf %8, %9 : vector<1x512xf32>
    %11 = arith.subf %5, %10 : vector<1x512xf32>
    %cst_1 = arith.constant 1.600000e+01 : f32
    %12 = vector.broadcast %cst_1 : f32 to vector<1x512xf32>
    %13 = arith.divf %11, %12 : vector<1x512xf32>
    %14 = math.floor %13 : vector<1x512xf32>
    %cst_2 = arith.constant 1.600000e+01 : f32
    %15 = vector.broadcast %cst_2 : f32 to vector<1x512xf32>
    %16 = arith.mulf %14, %15 : vector<1x512xf32>
    %17 = arith.subf %11, %16 : vector<1x512xf32>
    %c0 = arith.constant 0 : index
    %c0_3 = arith.constant 0 : index
    %c0_4 = arith.constant 0 : index
    %18 = vector.load %arg3[%c0, %c0_3, %c0_4] : memref<1x3x512xf32, #tpu.memory_space<vmem>>, vector<1x3x512xf32>
    %19 = vector.shape_cast %18 : vector<1x3x512xf32> to vector<3x512xf32>
    %20 = vector.extract_strided_slice %19 {offsets = [0, 0], sizes = [1, 512], strides = [1, 1]} : vector<3x512xf32> to vector<1x512xf32>
    %21 = arith.addf %8, %20 : vector<1x512xf32>
    %cst_5 = arith.constant 1.06666672 : f32
    %22 = vector.broadcast %cst_5 : f32 to vector<1x512xf32>
    %23 = arith.mulf %21, %22 : vector<1x512xf32>
    %cst_6 = arith.constant 5.000000e-01 : f32
    %24 = vector.broadcast %cst_6 : f32 to vector<1x512xf32>
    %25 = arith.subf %23, %24 : vector<1x512xf32>
    %26 = vector.extract_strided_slice %19 {offsets = [1, 0], sizes = [1, 512], strides = [1, 1]} : vector<3x512xf32> to vector<1x512xf32>
    %27 = arith.addf %14, %26 : vector<1x512xf32>
    %cst_7 = arith.constant 1.06666672 : f32
    %28 = vector.broadcast %cst_7 : f32 to vector<1x512xf32>
    %29 = arith.mulf %27, %28 : vector<1x512xf32>
    %cst_8 = arith.constant 5.000000e-01 : f32
    %30 = vector.broadcast %cst_8 : f32 to vector<1x512xf32>
    %31 = arith.subf %29, %30 : vector<1x512xf32>
    %32 = vector.extract_strided_slice %19 {offsets = [2, 0], sizes = [1, 512], strides = [1, 1]} : vector<3x512xf32> to vector<1x512xf32>
    %33 = arith.addf %17, %32 : vector<1x512xf32>
    %cst_9 = arith.constant 1.06666672 : f32
    %34 = vector.broadcast %cst_9 : f32 to vector<1x512xf32>
    %35 = arith.mulf %33, %34 : vector<1x512xf32>
    %cst_10 = arith.constant 5.000000e-01 : f32
    %36 = vector.broadcast %cst_10 : f32 to vector<1x512xf32>
    %37 = arith.subf %35, %36 : vector<1x512xf32>
    %38 = math.floor %25 : vector<1x512xf32>
    %39 = math.floor %31 : vector<1x512xf32>
    %40 = math.floor %37 : vector<1x512xf32>
    %41 = arith.subf %25, %38 : vector<1x512xf32>
    %cst_11 = arith.constant 1.000000e+00 : f32
    %42 = vector.broadcast %cst_11 : f32 to vector<1x512xf32>
    %43 = arith.subf %42, %41 : vector<1x512xf32>
    %44 = arith.subf %31, %39 : vector<1x512xf32>
    %cst_12 = arith.constant 1.000000e+00 : f32
    %45 = vector.broadcast %cst_12 : f32 to vector<1x512xf32>
    %46 = arith.subf %45, %44 : vector<1x512xf32>
    %47 = arith.subf %37, %40 : vector<1x512xf32>
    %cst_13 = arith.constant 1.000000e+00 : f32
    %48 = vector.broadcast %cst_13 : f32 to vector<1x512xf32>
    %49 = arith.subf %48, %47 : vector<1x512xf32>
    %cst_14 = arith.constant 0.000000e+00 : f32
    %50 = vector.broadcast %cst_14 : f32 to vector<1x512xf32>
    %51 = arith.cmpf oge, %38, %50 : vector<1x512xf32>
    %cst_15 = arith.constant 1.500000e+01 : f32
    %52 = vector.broadcast %cst_15 : f32 to vector<1x512xf32>
    %53 = arith.cmpf ole, %38, %52 : vector<1x512xf32>
    %54 = arith.andi %51, %53 : vector<1x512xi1>
    %cst_16 = arith.constant -1.000000e+00 : f32
    %55 = vector.broadcast %cst_16 : f32 to vector<1x512xf32>
    %56 = arith.cmpf oge, %38, %55 : vector<1x512xf32>
    %cst_17 = arith.constant 1.400000e+01 : f32
    %57 = vector.broadcast %cst_17 : f32 to vector<1x512xf32>
    %58 = arith.cmpf ole, %38, %57 : vector<1x512xf32>
    %59 = arith.andi %56, %58 : vector<1x512xi1>
    %cst_18 = arith.constant 0.000000e+00 : f32
    %60 = vector.broadcast %cst_18 : f32 to vector<1x512xf32>
    %61 = arith.cmpf oge, %39, %60 : vector<1x512xf32>
    %cst_19 = arith.constant 1.500000e+01 : f32
    %62 = vector.broadcast %cst_19 : f32 to vector<1x512xf32>
    %63 = arith.cmpf ole, %39, %62 : vector<1x512xf32>
    %64 = arith.andi %61, %63 : vector<1x512xi1>
    %cst_20 = arith.constant -1.000000e+00 : f32
    %65 = vector.broadcast %cst_20 : f32 to vector<1x512xf32>
    %66 = arith.cmpf oge, %39, %65 : vector<1x512xf32>
    %cst_21 = arith.constant 1.400000e+01 : f32
    %67 = vector.broadcast %cst_21 : f32 to vector<1x512xf32>
    %68 = arith.cmpf ole, %39, %67 : vector<1x512xf32>
    %69 = arith.andi %66, %68 : vector<1x512xi1>
    %cst_22 = arith.constant 0.000000e+00 : f32
    %70 = vector.broadcast %cst_22 : f32 to vector<1x512xf32>
    %71 = arith.cmpf oge, %40, %70 : vector<1x512xf32>
    %cst_23 = arith.constant 1.500000e+01 : f32
    %72 = vector.broadcast %cst_23 : f32 to vector<1x512xf32>
    %73 = arith.cmpf ole, %40, %72 : vector<1x512xf32>
    %74 = arith.andi %71, %73 : vector<1x512xi1>
    %cst_24 = arith.constant -1.000000e+00 : f32
    %75 = vector.broadcast %cst_24 : f32 to vector<1x512xf32>
    %76 = arith.cmpf oge, %40, %75 : vector<1x512xf32>
    %cst_25 = arith.constant 1.400000e+01 : f32
    %77 = vector.broadcast %cst_25 : f32 to vector<1x512xf32>
    %78 = arith.cmpf ole, %40, %77 : vector<1x512xf32>
    %79 = arith.andi %76, %78 : vector<1x512xi1>
    %80 = arith.andi %54, %64 : vector<1x512xi1>
    %81 = arith.mulf %43, %46 : vector<1x512xf32>
    %cst_26 = arith.constant 0.000000e+00 : f32
    %82 = vector.broadcast %cst_26 : f32 to vector<1x512xf32>
    %83 = arith.select %80, %81, %82 : vector<1x512xi1>, vector<1x512xf32>
    %84 = arith.andi %54, %69 : vector<1x512xi1>
    %85 = arith.mulf %43, %44 : vector<1x512xf32>
    %cst_27 = arith.constant 0.000000e+00 : f32
    %86 = vector.broadcast %cst_27 : f32 to vector<1x512xf32>
    %87 = arith.select %84, %85, %86 : vector<1x512xi1>, vector<1x512xf32>
    %88 = arith.andi %59, %64 : vector<1x512xi1>
    %89 = arith.mulf %41, %46 : vector<1x512xf32>
    %cst_28 = arith.constant 0.000000e+00 : f32
    %90 = vector.broadcast %cst_28 : f32 to vector<1x512xf32>
    %91 = arith.select %88, %89, %90 : vector<1x512xi1>, vector<1x512xf32>
    %92 = arith.andi %59, %69 : vector<1x512xi1>
    %93 = arith.mulf %41, %44 : vector<1x512xf32>
    %cst_29 = arith.constant 0.000000e+00 : f32
    %94 = vector.broadcast %cst_29 : f32 to vector<1x512xf32>
    %95 = arith.select %92, %93, %94 : vector<1x512xi1>, vector<1x512xf32>
    %cst_30 = arith.constant 1.600000e+01 : f32
    %96 = vector.broadcast %cst_30 : f32 to vector<1x512xf32>
    %97 = arith.mulf %38, %96 : vector<1x512xf32>
    %98 = arith.addf %97, %39 : vector<1x512xf32>
    %99 = arith.fptosi %98 : vector<1x512xf32> to vector<1x512xi32>
    %100 = tpu.iota {dimensions = array<i32: 0>} : vector<128x512xi32>
    %c128_i32 = arith.constant 128 : i32
    %101 = arith.muli %arg2, %c128_i32 : i32
    %102 = vector.broadcast %101 : i32 to vector<128x512xi32>
    %103 = arith.addi %100, %102 : vector<128x512xi32>
    %104 = vector.broadcast %99 : vector<1x512xi32> to vector<128x512xi32>
    %105 = arith.subi %103, %104 : vector<128x512xi32>
    %c0_i32 = arith.constant 0 : i32
    %106 = vector.broadcast %c0_i32 : i32 to vector<128x512xi32>
    %107 = arith.cmpi eq, %105, %106 : vector<128x512xi32>
    %cst_31 = arith.constant 0.000000e+00 : f32
    %108 = vector.shape_cast %83 : vector<1x512xf32> to vector<1x512xf32>
    %109 = vector.broadcast %108 : vector<1x512xf32> to vector<128x512xf32>
    %110 = vector.broadcast %cst_31 : f32 to vector<128x512xf32>
    %111 = arith.select %107, %109, %110 : vector<128x512xi1>, vector<128x512xf32>
    %c1_i32 = arith.constant 1 : i32
    %112 = vector.broadcast %c1_i32 : i32 to vector<128x512xi32>
    %113 = arith.cmpi eq, %105, %112 : vector<128x512xi32>
    %cst_32 = arith.constant 0.000000e+00 : f32
    %114 = vector.shape_cast %87 : vector<1x512xf32> to vector<1x512xf32>
    %115 = vector.broadcast %114 : vector<1x512xf32> to vector<128x512xf32>
    %116 = vector.broadcast %cst_32 : f32 to vector<128x512xf32>
    %117 = arith.select %113, %115, %116 : vector<128x512xi1>, vector<128x512xf32>
    %118 = arith.addf %111, %117 : vector<128x512xf32>
    %c16_i32 = arith.constant 16 : i32
    %119 = vector.broadcast %c16_i32 : i32 to vector<128x512xi32>
    %120 = arith.cmpi eq, %105, %119 : vector<128x512xi32>
    %cst_33 = arith.constant 0.000000e+00 : f32
    %121 = vector.shape_cast %91 : vector<1x512xf32> to vector<1x512xf32>
    %122 = vector.broadcast %121 : vector<1x512xf32> to vector<128x512xf32>
    %123 = vector.broadcast %cst_33 : f32 to vector<128x512xf32>
    %124 = arith.select %120, %122, %123 : vector<128x512xi1>, vector<128x512xf32>
    %125 = arith.addf %118, %124 : vector<128x512xf32>
    %c17_i32 = arith.constant 17 : i32
    %126 = vector.broadcast %c17_i32 : i32 to vector<128x512xi32>
    %127 = arith.cmpi eq, %105, %126 : vector<128x512xi32>
    %cst_34 = arith.constant 0.000000e+00 : f32
    %128 = vector.shape_cast %95 : vector<1x512xf32> to vector<1x512xf32>
    %129 = vector.broadcast %128 : vector<1x512xf32> to vector<128x512xf32>
    %130 = vector.broadcast %cst_34 : f32 to vector<128x512xf32>
    %131 = arith.select %127, %129, %130 : vector<128x512xi1>, vector<128x512xf32>
    %132 = arith.addf %125, %131 : vector<128x512xf32>
    %c0_i32_35 = arith.constant 0 : i32
    %133 = arith.cmpi eq, %arg2, %c0_i32_35 : i32
    %134 = arith.extui %133 : i1 to i32
    %c0_i32_36 = arith.constant 0 : i32
    %135 = arith.cmpi ne, %134, %c0_i32_36 : i32
    scf.if %135 {
      %cst_47 = arith.constant 0.000000e+00 : f32
      %145 = vector.broadcast %cst_47 : f32 to vector<64x512xf32>
      %c0_48 = arith.constant 0 : index
      %c0_49 = arith.constant 0 : index
      %146 = vector.load %arg6[%c0_48, %c0_49] : memref<64x512xf32, #tpu.memory_space<vmem>>, vector<64x512xf32>
      tpu.vector_store %arg6[%c0_48, %c0_49], %145 {strides = array<i32>} : memref<64x512xf32, #tpu.memory_space<vmem>>, vector<64x512xf32>,
    } else {
    }
    %c0_37 = arith.constant 0 : index
    %c0_38 = arith.constant 0 : index
    %136 = vector.load %arg6[%c0_37, %c0_38] : memref<64x512xf32, #tpu.memory_space<vmem>>, vector<64x512xf32>
    %c0_39 = arith.constant 0 : index
    %c0_40 = arith.constant 0 : index
    %c0_41 = arith.constant 0 : index
    %137 = vector.load %arg4[%c0_39, %c0_40, %c0_41] : memref<1x64x128xf32, #tpu.memory_space<vmem>>, vector<1x64x128xf32>
    %138 = vector.shape_cast %137 : vector<1x64x128xf32> to vector<64x128xf32>
    %cst_42 = arith.constant dense<0.000000e+00> : vector<64x512xf32>
    %139 = tpu.matmul %138, %132, %cst_42 {dimension_numbers = #tpu.dot_dimension_numbers<[1], [0], [0], [1], [0, 0, 1, 1], [], []>} : vector<64x128xf32>, vector<128x512xf32>, vector<64x512xf32> -> vector<64x512xf32>
    %140 = arith.addf %136, %139 : vector<64x512xf32>
    %c0_43 = arith.constant 0 : index
    %c0_44 = arith.constant 0 : index
    %141 = vector.load %arg6[%c0_43, %c0_44] : memref<64x512xf32, #tpu.memory_space<vmem>>, vector<64x512xf32>
    tpu.vector_store %arg6[%c0_43, %c0_44], %140 {strides = array<i32>} : memref<64x512xf32, #tpu.memory_space<vmem>>, vector<64x512xf32>,
    %c1_i32_45 = arith.constant 1 : i32
    %142 = arith.cmpi eq, %arg2, %c1_i32_45 : i32
    %143 = arith.extui %142 : i1 to i32
    %c0_i32_46 = arith.constant 0 : i32
    %144 = arith.cmpi ne, %143, %c0_i32_46 : i32
    scf.if %144 {
      %145 = arith.fptosi %40 : vector<1x512xf32> to vector<1x512xi32>
      %cst_47 = arith.constant 0.000000e+00 : f32
      %146 = vector.broadcast %cst_47 : f32 to vector<1x512xf32>
      %147 = arith.select %74, %49, %146 : vector<1x512xi1>, vector<1x512xf32>
      %cst_48 = arith.constant 0.000000e+00 : f32
      %148 = vector.broadcast %cst_48 : f32 to vector<1x512xf32>
      %149 = arith.select %79, %47, %148 : vector<1x512xi1>, vector<1x512xf32>
      %cst_49 = arith.constant 0.000000e+00 : f32
      %150 = vector.broadcast %cst_49 : f32 to vector<4x512xf32>
      %c0_i32_50 = arith.constant 0 : i32
      %151 = vector.broadcast %c0_i32_50 : i32 to vector<1x512xi32>
      %152 = arith.cmpi eq, %145, %151 : vector<1x512xi32>
      %cst_51 = arith.constant 0.000000e+00 : f32
      %153 = vector.broadcast %cst_51 : f32 to vector<1x512xf32>
      %154 = arith.select %152, %147, %153 : vector<1x512xi1>, vector<1x512xf32>
      %c-1_i32 = arith.constant -1 : i32
      %155 = vector.broadcast %c-1_i32 : i32 to vector<1x512xi32>
      %156 = arith.cmpi eq, %145, %155 : vector<1x512xi32>
      %cst_52 = arith.constant 0.000000e+00 : f32
      %157 = vector.broadcast %cst_52 : f32 to vector<1x512xf32>
      %158 = arith.select %156, %149, %157 : vector<1x512xi1>, vector<1x512xf32>
      %159 = arith.addf %154, %158 : vector<1x512xf32>
      %c0_53 = arith.constant 0 : index
      %c0_54 = arith.constant 0 : index
      %160 = vector.load %arg6[%c0_53, %c0_54] : memref<64x512xf32, #tpu.memory_space<vmem>>, vector<4x512xf32>
      %161 = vector.broadcast %159 : vector<1x512xf32> to vector<4x512xf32>
      %162 = arith.mulf %160, %161 : vector<4x512xf32>
      %163 = arith.addf %150, %162 : vector<4x512xf32>
      %c1_i32_55 = arith.constant 1 : i32
      %164 = vector.broadcast %c1_i32_55 : i32 to vector<1x512xi32>
      %165 = arith.cmpi eq, %145, %164 : vector<1x512xi32>
      %cst_56 = arith.constant 0.000000e+00 : f32
      %166 = vector.broadcast %cst_56 : f32 to vector<1x512xf32>
      %167 = arith.select %165, %147, %166 : vector<1x512xi1>, vector<1x512xf32>
      %c0_i32_57 = arith.constant 0 : i32
      %168 = vector.broadcast %c0_i32_57 : i32 to vector<1x512xi32>
      %169 = arith.cmpi eq, %145, %168 : vector<1x512xi32>
      %cst_58 = arith.constant 0.000000e+00 : f32
      %170 = vector.broadcast %cst_58 : f32 to vector<1x512xf32>
      %171 = arith.select %169, %149, %170 : vector<1x512xi1>, vector<1x512xf32>
      %172 = arith.addf %167, %171 : vector<1x512xf32>
      %c4 = arith.constant 4 : index
      %c0_59 = arith.constant 0 : index
      %173 = vector.load %arg6[%c4, %c0_59] : memref<64x512xf32, #tpu.memory_space<vmem>>, vector<4x512xf32>
      %174 = vector.broadcast %172 : vector<1x512xf32> to vector<4x512xf32>
      %175 = arith.mulf %173, %174 : vector<4x512xf32>
      %176 = arith.addf %163, %175 : vector<4x512xf32>
      %c2_i32 = arith.constant 2 : i32
      %177 = vector.broadcast %c2_i32 : i32 to vector<1x512xi32>
      %178 = arith.cmpi eq, %145, %177 : vector<1x512xi32>
      %cst_60 = arith.constant 0.000000e+00 : f32
      %179 = vector.broadcast %cst_60 : f32 to vector<1x512xf32>
      %180 = arith.select %178, %147, %179 : vector<1x512xi1>, vector<1x512xf32>
      %c1_i32_61 = arith.constant 1 : i32
      %181 = vector.broadcast %c1_i32_61 : i32 to vector<1x512xi32>
      %182 = arith.cmpi eq, %145, %181 : vector<1x512xi32>
      %cst_62 = arith.constant 0.000000e+00 : f32
      %183 = vector.broadcast %cst_62 : f32 to vector<1x512xf32>
      %184 = arith.select %182, %149, %183 : vector<1x512xi1>, vector<1x512xf32>
      %185 = arith.addf %180, %184 : vector<1x512xf32>
      %c8 = arith.constant 8 : index
      %c0_63 = arith.constant 0 : index
      %186 = vector.load %arg6[%c8, %c0_63] : memref<64x512xf32, #tpu.memory_space<vmem>>, vector<4x512xf32>
      %187 = vector.broadcast %185 : vector<1x512xf32> to vector<4x512xf32>
      %188 = arith.mulf %186, %187 : vector<4x512xf32>
      %189 = arith.addf %176, %188 : vector<4x512xf32>
      %c3_i32 = arith.constant 3 : i32
      %190 = vector.broadcast %c3_i32 : i32 to vector<1x512xi32>
      %191 = arith.cmpi eq, %145, %190 : vector<1x512xi32>
      %cst_64 = arith.constant 0.000000e+00 : f32
      %192 = vector.broadcast %cst_64 : f32 to vector<1x512xf32>
      %193 = arith.select %191, %147, %192 : vector<1x512xi1>, vector<1x512xf32>
      %c2_i32_65 = arith.constant 2 : i32
      %194 = vector.broadcast %c2_i32_65 : i32 to vector<1x512xi32>
      %195 = arith.cmpi eq, %145, %194 : vector<1x512xi32>
      %cst_66 = arith.constant 0.000000e+00 : f32
      %196 = vector.broadcast %cst_66 : f32 to vector<1x512xf32>
      %197 = arith.select %195, %149, %196 : vector<1x512xi1>, vector<1x512xf32>
      %198 = arith.addf %193, %197 : vector<1x512xf32>
      %c12 = arith.constant 12 : index
      %c0_67 = arith.constant 0 : index
      %199 = vector.load %arg6[%c12, %c0_67] : memref<64x512xf32, #tpu.memory_space<vmem>>, vector<4x512xf32>
      %200 = vector.broadcast %198 : vector<1x512xf32> to vector<4x512xf32>
      %201 = arith.mulf %199, %200 : vector<4x512xf32>
      %202 = arith.addf %189, %201 : vector<4x512xf32>
      %c4_i32 = arith.constant 4 : i32
      %203 = vector.broadcast %c4_i32 : i32 to vector<1x512xi32>
      %204 = arith.cmpi eq, %145, %203 : vector<1x512xi32>
      %cst_68 = arith.constant 0.000000e+00 : f32
      %205 = vector.broadcast %cst_68 : f32 to vector<1x512xf32>
      %206 = arith.select %204, %147, %205 : vector<1x512xi1>, vector<1x512xf32>
      %c3_i32_69 = arith.constant 3 : i32
      %207 = vector.broadcast %c3_i32_69 : i32 to vector<1x512xi32>
      %208 = arith.cmpi eq, %145, %207 : vector<1x512xi32>
      %cst_70 = arith.constant 0.000000e+00 : f32
      %209 = vector.broadcast %cst_70 : f32 to vector<1x512xf32>
      %210 = arith.select %208, %149, %209 : vector<1x512xi1>, vector<1x512xf32>
      %211 = arith.addf %206, %210 : vector<1x512xf32>
      %c16 = arith.constant 16 : index
      %c0_71 = arith.constant 0 : index
      %212 = vector.load %arg6[%c16, %c0_71] : memref<64x512xf32, #tpu.memory_space<vmem>>, vector<4x512xf32>
      %213 = vector.broadcast %211 : vector<1x512xf32> to vector<4x512xf32>
      %214 = arith.mulf %212, %213 : vector<4x512xf32>
      %215 = arith.addf %202, %214 : vector<4x512xf32>
      %c5_i32 = arith.constant 5 : i32
      %216 = vector.broadcast %c5_i32 : i32 to vector<1x512xi32>
      %217 = arith.cmpi eq, %145, %216 : vector<1x512xi32>
      %cst_72 = arith.constant 0.000000e+00 : f32
      %218 = vector.broadcast %cst_72 : f32 to vector<1x512xf32>
      %219 = arith.select %217, %147, %218 : vector<1x512xi1>, vector<1x512xf32>
      %c4_i32_73 = arith.constant 4 : i32
      %220 = vector.broadcast %c4_i32_73 : i32 to vector<1x512xi32>
      %221 = arith.cmpi eq, %145, %220 : vector<1x512xi32>
      %cst_74 = arith.constant 0.000000e+00 : f32
      %222 = vector.broadcast %cst_74 : f32 to vector<1x512xf32>
      %223 = arith.select %221, %149, %222 : vector<1x512xi1>, vector<1x512xf32>
      %224 = arith.addf %219, %223 : vector<1x512xf32>
      %c20 = arith.constant 20 : index
      %c0_75 = arith.constant 0 : index
      %225 = vector.load %arg6[%c20, %c0_75] : memref<64x512xf32, #tpu.memory_space<vmem>>, vector<4x512xf32>
      %226 = vector.broadcast %224 : vector<1x512xf32> to vector<4x512xf32>
      %227 = arith.mulf %225, %226 : vector<4x512xf32>
      %228 = arith.addf %215, %227 : vector<4x512xf32>
      %c6_i32 = arith.constant 6 : i32
      %229 = vector.broadcast %c6_i32 : i32 to vector<1x512xi32>
      %230 = arith.cmpi eq, %145, %229 : vector<1x512xi32>
      %cst_76 = arith.constant 0.000000e+00 : f32
      %231 = vector.broadcast %cst_76 : f32 to vector<1x512xf32>
      %232 = arith.select %230, %147, %231 : vector<1x512xi1>, vector<1x512xf32>
      %c5_i32_77 = arith.constant 5 : i32
      %233 = vector.broadcast %c5_i32_77 : i32 to vector<1x512xi32>
      %234 = arith.cmpi eq, %145, %233 : vector<1x512xi32>
      %cst_78 = arith.constant 0.000000e+00 : f32
      %235 = vector.broadcast %cst_78 : f32 to vector<1x512xf32>
      %236 = arith.select %234, %149, %235 : vector<1x512xi1>, vector<1x512xf32>
      %237 = arith.addf %232, %236 : vector<1x512xf32>
      %c24 = arith.constant 24 : index
      %c0_79 = arith.constant 0 : index
      %238 = vector.load %arg6[%c24, %c0_79] : memref<64x512xf32, #tpu.memory_space<vmem>>, vector<4x512xf32>
      %239 = vector.broadcast %237 : vector<1x512xf32> to vector<4x512xf32>
      %240 = arith.mulf %238, %239 : vector<4x512xf32>
      %241 = arith.addf %228, %240 : vector<4x512xf32>
      %c7_i32 = arith.constant 7 : i32
      %242 = vector.broadcast %c7_i32 : i32 to vector<1x512xi32>
      %243 = arith.cmpi eq, %145, %242 : vector<1x512xi32>
      %cst_80 = arith.constant 0.000000e+00 : f32
      %244 = vector.broadcast %cst_80 : f32 to vector<1x512xf32>
      %245 = arith.select %243, %147, %244 : vector<1x512xi1>, vector<1x512xf32>
      %c6_i32_81 = arith.constant 6 : i32
      %246 = vector.broadcast %c6_i32_81 : i32 to vector<1x512xi32>
      %247 = arith.cmpi eq, %145, %246 : vector<1x512xi32>
      %cst_82 = arith.constant 0.000000e+00 : f32
      %248 = vector.broadcast %cst_82 : f32 to vector<1x512xf32>
      %249 = arith.select %247, %149, %248 : vector<1x512xi1>, vector<1x512xf32>
      %250 = arith.addf %245, %249 : vector<1x512xf32>
      %c28 = arith.constant 28 : index
      %c0_83 = arith.constant 0 : index
      %251 = vector.load %arg6[%c28, %c0_83] : memref<64x512xf32, #tpu.memory_space<vmem>>, vector<4x512xf32>
      %252 = vector.broadcast %250 : vector<1x512xf32> to vector<4x512xf32>
      %253 = arith.mulf %251, %252 : vector<4x512xf32>
      %254 = arith.addf %241, %253 : vector<4x512xf32>
      %c8_i32 = arith.constant 8 : i32
      %255 = vector.broadcast %c8_i32 : i32 to vector<1x512xi32>
      %256 = arith.cmpi eq, %145, %255 : vector<1x512xi32>
      %cst_84 = arith.constant 0.000000e+00 : f32
      %257 = vector.broadcast %cst_84 : f32 to vector<1x512xf32>
      %258 = arith.select %256, %147, %257 : vector<1x512xi1>, vector<1x512xf32>
      %c7_i32_85 = arith.constant 7 : i32
      %259 = vector.broadcast %c7_i32_85 : i32 to vector<1x512xi32>
      %260 = arith.cmpi eq, %145, %259 : vector<1x512xi32>
      %cst_86 = arith.constant 0.000000e+00 : f32
      %261 = vector.broadcast %cst_86 : f32 to vector<1x512xf32>
      %262 = arith.select %260, %149, %261 : vector<1x512xi1>, vector<1x512xf32>
      %263 = arith.addf %258, %262 : vector<1x512xf32>
      %c32 = arith.constant 32 : index
      %c0_87 = arith.constant 0 : index
      %264 = vector.load %arg6[%c32, %c0_87] : memref<64x512xf32, #tpu.memory_space<vmem>>, vector<4x512xf32>
      %265 = vector.broadcast %263 : vector<1x512xf32> to vector<4x512xf32>
      %266 = arith.mulf %264, %265 : vector<4x512xf32>
      %267 = arith.addf %254, %266 : vector<4x512xf32>
      %c9_i32 = arith.constant 9 : i32
      %268 = vector.broadcast %c9_i32 : i32 to vector<1x512xi32>
      %269 = arith.cmpi eq, %145, %268 : vector<1x512xi32>
      %cst_88 = arith.constant 0.000000e+00 : f32
      %270 = vector.broadcast %cst_88 : f32 to vector<1x512xf32>
      %271 = arith.select %269, %147, %270 : vector<1x512xi1>, vector<1x512xf32>
      %c8_i32_89 = arith.constant 8 : i32
      %272 = vector.broadcast %c8_i32_89 : i32 to vector<1x512xi32>
      %273 = arith.cmpi eq, %145, %272 : vector<1x512xi32>
      %cst_90 = arith.constant 0.000000e+00 : f32
      %274 = vector.broadcast %cst_90 : f32 to vector<1x512xf32>
      %275 = arith.select %273, %149, %274 : vector<1x512xi1>, vector<1x512xf32>
      %276 = arith.addf %271, %275 : vector<1x512xf32>
      %c36 = arith.constant 36 : index
      %c0_91 = arith.constant 0 : index
      %277 = vector.load %arg6[%c36, %c0_91] : memref<64x512xf32, #tpu.memory_space<vmem>>, vector<4x512xf32>
      %278 = vector.broadcast %276 : vector<1x512xf32> to vector<4x512xf32>
      %279 = arith.mulf %277, %278 : vector<4x512xf32>
      %280 = arith.addf %267, %279 : vector<4x512xf32>
      %c10_i32 = arith.constant 10 : i32
      %281 = vector.broadcast %c10_i32 : i32 to vector<1x512xi32>
      %282 = arith.cmpi eq, %145, %281 : vector<1x512xi32>
      %cst_92 = arith.constant 0.000000e+00 : f32
      %283 = vector.broadcast %cst_92 : f32 to vector<1x512xf32>
      %284 = arith.select %282, %147, %283 : vector<1x512xi1>, vector<1x512xf32>
      %c9_i32_93 = arith.constant 9 : i32
      %285 = vector.broadcast %c9_i32_93 : i32 to vector<1x512xi32>
      %286 = arith.cmpi eq, %145, %285 : vector<1x512xi32>
      %cst_94 = arith.constant 0.000000e+00 : f32
      %287 = vector.broadcast %cst_94 : f32 to vector<1x512xf32>
      %288 = arith.select %286, %149, %287 : vector<1x512xi1>, vector<1x512xf32>
      %289 = arith.addf %284, %288 : vector<1x512xf32>
      %c40 = arith.constant 40 : index
      %c0_95 = arith.constant 0 : index
      %290 = vector.load %arg6[%c40, %c0_95] : memref<64x512xf32, #tpu.memory_space<vmem>>, vector<4x512xf32>
      %291 = vector.broadcast %289 : vector<1x512xf32> to vector<4x512xf32>
      %292 = arith.mulf %290, %291 : vector<4x512xf32>
      %293 = arith.addf %280, %292 : vector<4x512xf32>
      %c11_i32 = arith.constant 11 : i32
      %294 = vector.broadcast %c11_i32 : i32 to vector<1x512xi32>
      %295 = arith.cmpi eq, %145, %294 : vector<1x512xi32>
      %cst_96 = arith.constant 0.000000e+00 : f32
      %296 = vector.broadcast %cst_96 : f32 to vector<1x512xf32>
      %297 = arith.select %295, %147, %296 : vector<1x512xi1>, vector<1x512xf32>
      %c10_i32_97 = arith.constant 10 : i32
      %298 = vector.broadcast %c10_i32_97 : i32 to vector<1x512xi32>
      %299 = arith.cmpi eq, %145, %298 : vector<1x512xi32>
      %cst_98 = arith.constant 0.000000e+00 : f32
      %300 = vector.broadcast %cst_98 : f32 to vector<1x512xf32>
      %301 = arith.select %299, %149, %300 : vector<1x512xi1>, vector<1x512xf32>
      %302 = arith.addf %297, %301 : vector<1x512xf32>
      %c44 = arith.constant 44 : index
      %c0_99 = arith.constant 0 : index
      %303 = vector.load %arg6[%c44, %c0_99] : memref<64x512xf32, #tpu.memory_space<vmem>>, vector<4x512xf32>
      %304 = vector.broadcast %302 : vector<1x512xf32> to vector<4x512xf32>
      %305 = arith.mulf %303, %304 : vector<4x512xf32>
      %306 = arith.addf %293, %305 : vector<4x512xf32>
      %c12_i32 = arith.constant 12 : i32
      %307 = vector.broadcast %c12_i32 : i32 to vector<1x512xi32>
      %308 = arith.cmpi eq, %145, %307 : vector<1x512xi32>
      %cst_100 = arith.constant 0.000000e+00 : f32
      %309 = vector.broadcast %cst_100 : f32 to vector<1x512xf32>
      %310 = arith.select %308, %147, %309 : vector<1x512xi1>, vector<1x512xf32>
      %c11_i32_101 = arith.constant 11 : i32
      %311 = vector.broadcast %c11_i32_101 : i32 to vector<1x512xi32>
      %312 = arith.cmpi eq, %145, %311 : vector<1x512xi32>
      %cst_102 = arith.constant 0.000000e+00 : f32
      %313 = vector.broadcast %cst_102 : f32 to vector<1x512xf32>
      %314 = arith.select %312, %149, %313 : vector<1x512xi1>, vector<1x512xf32>
      %315 = arith.addf %310, %314 : vector<1x512xf32>
      %c48 = arith.constant 48 : index
      %c0_103 = arith.constant 0 : index
      %316 = vector.load %arg6[%c48, %c0_103] : memref<64x512xf32, #tpu.memory_space<vmem>>, vector<4x512xf32>
      %317 = vector.broadcast %315 : vector<1x512xf32> to vector<4x512xf32>
      %318 = arith.mulf %316, %317 : vector<4x512xf32>
      %319 = arith.addf %306, %318 : vector<4x512xf32>
      %c13_i32 = arith.constant 13 : i32
      %320 = vector.broadcast %c13_i32 : i32 to vector<1x512xi32>
      %321 = arith.cmpi eq, %145, %320 : vector<1x512xi32>
      %cst_104 = arith.constant 0.000000e+00 : f32
      %322 = vector.broadcast %cst_104 : f32 to vector<1x512xf32>
      %323 = arith.select %321, %147, %322 : vector<1x512xi1>, vector<1x512xf32>
      %c12_i32_105 = arith.constant 12 : i32
      %324 = vector.broadcast %c12_i32_105 : i32 to vector<1x512xi32>
      %325 = arith.cmpi eq, %145, %324 : vector<1x512xi32>
      %cst_106 = arith.constant 0.000000e+00 : f32
      %326 = vector.broadcast %cst_106 : f32 to vector<1x512xf32>
      %327 = arith.select %325, %149, %326 : vector<1x512xi1>, vector<1x512xf32>
      %328 = arith.addf %323, %327 : vector<1x512xf32>
      %c52 = arith.constant 52 : index
      %c0_107 = arith.constant 0 : index
      %329 = vector.load %arg6[%c52, %c0_107] : memref<64x512xf32, #tpu.memory_space<vmem>>, vector<4x512xf32>
      %330 = vector.broadcast %328 : vector<1x512xf32> to vector<4x512xf32>
      %331 = arith.mulf %329, %330 : vector<4x512xf32>
      %332 = arith.addf %319, %331 : vector<4x512xf32>
      %c14_i32 = arith.constant 14 : i32
      %333 = vector.broadcast %c14_i32 : i32 to vector<1x512xi32>
      %334 = arith.cmpi eq, %145, %333 : vector<1x512xi32>
      %cst_108 = arith.constant 0.000000e+00 : f32
      %335 = vector.broadcast %cst_108 : f32 to vector<1x512xf32>
      %336 = arith.select %334, %147, %335 : vector<1x512xi1>, vector<1x512xf32>
      %c13_i32_109 = arith.constant 13 : i32
      %337 = vector.broadcast %c13_i32_109 : i32 to vector<1x512xi32>
      %338 = arith.cmpi eq, %145, %337 : vector<1x512xi32>
      %cst_110 = arith.constant 0.000000e+00 : f32
      %339 = vector.broadcast %cst_110 : f32 to vector<1x512xf32>
      %340 = arith.select %338, %149, %339 : vector<1x512xi1>, vector<1x512xf32>
      %341 = arith.addf %336, %340 : vector<1x512xf32>
      %c56 = arith.constant 56 : index
      %c0_111 = arith.constant 0 : index
      %342 = vector.load %arg6[%c56, %c0_111] : memref<64x512xf32, #tpu.memory_space<vmem>>, vector<4x512xf32>
      %343 = vector.broadcast %341 : vector<1x512xf32> to vector<4x512xf32>
      %344 = arith.mulf %342, %343 : vector<4x512xf32>
      %345 = arith.addf %332, %344 : vector<4x512xf32>
      %c15_i32 = arith.constant 15 : i32
      %346 = vector.broadcast %c15_i32 : i32 to vector<1x512xi32>
      %347 = arith.cmpi eq, %145, %346 : vector<1x512xi32>
      %cst_112 = arith.constant 0.000000e+00 : f32
      %348 = vector.broadcast %cst_112 : f32 to vector<1x512xf32>
      %349 = arith.select %347, %147, %348 : vector<1x512xi1>, vector<1x512xf32>
      %c14_i32_113 = arith.constant 14 : i32
      %350 = vector.broadcast %c14_i32_113 : i32 to vector<1x512xi32>
      %351 = arith.cmpi eq, %145, %350 : vector<1x512xi32>
      %cst_114 = arith.constant 0.000000e+00 : f32
      %352 = vector.broadcast %cst_114 : f32 to vector<1x512xf32>
      %353 = arith.select %351, %149, %352 : vector<1x512xi1>, vector<1x512xf32>
      %354 = arith.addf %349, %353 : vector<1x512xf32>
      %c60 = arith.constant 60 : index
      %c0_115 = arith.constant 0 : index
      %355 = vector.load %arg6[%c60, %c0_115] : memref<64x512xf32, #tpu.memory_space<vmem>>, vector<4x512xf32>
      %356 = vector.broadcast %354 : vector<1x512xf32> to vector<4x512xf32>
      %357 = arith.mulf %355, %356 : vector<4x512xf32>
      %358 = arith.addf %345, %357 : vector<4x512xf32>
      %c0_116 = arith.constant 0 : index
      %c0_117 = arith.constant 0 : index
      %c0_118 = arith.constant 0 : index
      %359 = vector.load %arg5[%c0_116, %c0_117, %c0_118] : memref<1x4x512xf32, #tpu.memory_space<vmem>>, vector<1x4x512xf32>
      %360 = vector.shape_cast %359 : vector<1x4x512xf32> to vector<4x512xf32>
      %361 = vector.shape_cast %358 : vector<4x512xf32> to vector<1x4x512xf32>
      tpu.vector_store %arg5[%c0_116, %c0_117, %c0_118], %361 {strides = array<i32>} : memref<1x4x512xf32, #tpu.memory_space<vmem>>, vector<1x4x512xf32>,
    } else {
    }
    return
  }
  func.func @transform_0(%arg0: i32, %arg1: i32, %arg2: i32) -> (i32, i32, i32) {
    %c0_i32 = arith.constant 0 : i32
    %c0_i32_0 = arith.constant 0 : i32
    return %arg0, %c0_i32, %arg1 : i32, i32, i32
  }
  func.func @transform_1(%arg0: i32, %arg1: i32, %arg2: i32) -> (i32, i32, i32) {
    %c0_i32 = arith.constant 0 : i32
    %c0_i32_0 = arith.constant 0 : i32
    return %arg0, %c0_i32, %arg2 : i32, i32, i32
  }
  func.func @transform_2(%arg0: i32, %arg1: i32, %arg2: i32) -> (i32, i32, i32) {
    %c0_i32 = arith.constant 0 : i32
    %c0_i32_0 = arith.constant 0 : i32
    return %arg0, %c0_i32, %arg1 : i32, i32, i32
  }
}

</mosaic_0001>

<bundles_post_ra>
// kernel: tpu_custom_call.1
= control target key start
LH: loop header
LB: loop body
LE: loop exit
PB: predicated region body
PF: predicated region fallthrough
CT: control target
= control target key end

     0   :  { %s7113_s0 = inlined_call_operand.vmem [shape: f32[2,3,4096], index: 0, kind: input, shape index: {}]   ;;  %s7114_s1 = inlined_call_operand.vmem [shape: f32[2,64,256], index: 1, kind: input, shape index: {}]   ;;  %s7115_s2 = inlined_call_operand.hbm [shape: f32[2,4,4096], index: 2, kind: output, shape index: {}]  }
   0x1   :  { %7350 = sst [smem:[#allocation173_spill]] %s7113_s0 }
   0x2   :  { %7 = vsyncpa [#allocation5], 0 }
   0x3   :  { %9 = vsyncpa [#allocation5 + $0x1], 0  ;;  %s3086_s9 = smov 0   ;;  %s3088_s10 = smov 0  }
   0x4   :  { %s3090_s11 = smov 0   ;;  %s3092_s12 = smov 0  }
   0x5   :  { %s3094_s13 = smov 0   ;;  %s3096_s14 = smov 0  }
   0x6   :  { %s3098_s15 = smov 0   ;;  %s3100_s16 = smov 0  }
   0x7   :  { %s3102_s17 = smov 0   ;;  %s3104_s18 = smov 0  }
   0x8   :  { %s3106_s19 = smov 0   ;;  %s3108_s20 = smov 0  }
   0x9 LB: > { %s2786_s21 = sadd.s32 4294967295, %s3066_s20   ;;  %s27_s22 = sadd.s32 1, %s3054_s17  ;;  %s3066_s20 = sphi %s3108_s20, %s15_s20   ;;  %s3062_s19 = sphi %s3106_s19, %s8425_s19   ;;  %s3058_s18 = sphi %s3104_s18, %s8424_s18   ;;  %s3054_s17 = sphi %s3102_s17, %s8423_s17   ;;  %s3050_s16 = sphi %s3100_s16, %s8422_s16   ;;  %s3046_s15 = sphi %s3098_s15, %s8421_s15   ;;  %s3042_s14 = sphi %s3096_s14, %s8420_s14   ;;  %s3038_s13 = sphi %s3094_s13, %s8419_s13   ;;  %s3034_s12 = sphi %s3092_s12, %s8418_s12   ;;  %s3030_s11 = sphi %s3090_s11, %s8417_s11   ;;  %s3026_s10 = sphi %s3088_s10, %s8416_s10   ;;  %s3022_s9 = sphi %s3086_s9, %s8415_s9  }
   0xa   : > { %p28_p0 = scmp.ge.s32.totalorder %s27_s22, 2  ;;  %s30_s23 = sadd.s32 1, %s3058_s18 }
   0xb   : > { %s2787_s24 = sadd.s32 4294967294, %s3066_s20   ;;  %p78_p1 = scmp.ne.s32.totalorder %s3038_s13, %s3034_s12 }
   0xc   : > { %s8427_s22 = smov (%p28_p0, %s27_s22), 0  ;;  %s8429_s23 = smov (!%p28_p0, %s30_s23), %s3058_s18 }
   0xd   : > { %s34_s25 = sadd.s32 1, %s3062_s19  ;;  %p79_p2 = scmp.eq.s32.totalorder %s3066_s20, 0 }
   0xe   : > { %p32_p3 = scmp.ge.s32.totalorder %s8429_s23, 8  ;;  %s67_s26 = ssub.s32 %s3054_s17, %s8427_s22 }
   0xf   : > { %p3159_p4 = por %p79_p2, %p78_p1  ;;  %p109_p5 = scmp.ne.s32.totalorder %s3030_s11, %s3026_s10 }
  0x10   : > { %s8431_s23 = smov (%p32_p3, %s8429_s23), 0  ;;  %s8433_s25 = smov (!%p32_p3, %s34_s25), %s3062_s19 }
  0x11   : > { %7352 = sst [smem:[#allocation7_spill]] %s8431_s23  ;;  %s95_s28 = ssub.s32 %s3058_s18, %s8431_s23 }
  0x12   : > { %p110_p6 = scmp.eq.s32.totalorder %s2786_s21, 31  ;;  %p36_p7 = scmp.ge.s32.totalorder %s8433_s25, 2 }
  0x13   : > { %p115_p8 = scmp.ne.s32.totalorder %s3026_s10, %s3022_s9  ;;  %p116_p10 = scmp.eq.s32.totalorder %s2787_s24, 31 }
  0x14   : > { %p3172_p9 = por %p110_p6, %p109_p5  ;;  %s8435_s25 = smov (%p36_p7, %s8433_s25), 0 }
  0x15   : > { %7354 = sst [smem:[#allocation8_spill]] %s8435_s25  ;;  %s71_s30 = sadd.s32 1, %s3038_s13 }
  0x16   : > { %p3179_p11 = por %p116_p10, %p115_p8  ;;  %s66_s4 = ssub.s32 %s3062_s19, %s8435_s25 }
  0x17   : > { %s99_s5 = sadd.s32 1, %s3030_s11  ;;  %s68_s6 = sor.u32 %s67_s26, %s66_s4 }
  0x18   : > { %s96_s7 = sor.u32 %s95_s28, %s66_s4  ;;  %p69_p12 = scmp.eq.s32.totalorder %s68_s6, 0 }
  0x19   : > { %p97_p13 = scmp.eq.s32.totalorder %s96_s7, 0  ;;  %p2789_p0 = scmp.ge.s32.totalorder %s3066_s20, 32 }
  0x1a   : > { %s3187_s8 = scalar_select %p69_p12, %s3038_s13, %s71_s30  }
  0x1b   : > { %s3190_s21 = scalar_select %p97_p13, %s3030_s11, %s99_s5  }
  0x1c   : > { %132 = sbr.rel (%p2789_p0) target bundleno = 43 (0x2b), region = 16 }
  0x21   : > { %148 = sbr.rel (!%p3159_p4) target bundleno = 43 (0x2b), region = 24  ;;  %s150_s24 = sand.u32 (%p3159_p4), 1, %s3038_s13  }
  0x22   : > { %s2791_s25 = sshll.u32 (%p3159_p4), %s3062_s19, 4  ;;  %s2790_s23 = sshll.u32 (%p3159_p4), %s150_s24, 6 }
  0x23   : > { %s154_s26 = sadd.s32 (%p3159_p4), %s3054_s17, %s2791_s25  ;;  %s152_s5 = scalar_lea.vmem (%p3159_p4), [#allocation3], %s2790_s23 }
  0x24   : > { %s2792_s28 = sshll.u32 (%p3159_p4), %s154_s26, 3 }
  0x25   : > { %s156_s30 = scalar_lea.vmem (%p3159_p4), %s7114_s1, %s2792_s28 }
  0x26   : > { %v199_v0 = vld [vmem:[%s156_s30] sm:$0xff]  ;;  %v201_v1 = vld [vmem:[%s156_s30 + $0x10] sm:$0xff] }
  0x27   : > { %v203_v2 = vld [vmem:[%s156_s30 + $0x20] sm:$0xff]  ;;  %200 = vst [vmem:[%s152_s5] sm:$0xff] %v199_v0  ;;  %202 = vst [vmem:[%s152_s5 + $0x8] sm:$0xff] %v201_v1  ;;  %v205_v3 = vld [vmem:[%s156_s30 + $0x30] sm:$0xff] }
  0x28   : > { %204 = vst [vmem:[%s152_s5 + $0x10] sm:$0xff] %v203_v2  ;;  %v207_v4 = vld [vmem:[%s156_s30 + $0x40] sm:$0xff]  ;;  %v209_v5 = vld [vmem:[%s156_s30 + $0x50] sm:$0xff]  ;;  %206 = vst [vmem:[%s152_s5 + $0x18] sm:$0xff] %v205_v3 }
  0x29   : > { %208 = vst [vmem:[%s152_s5 + $0x20] sm:$0xff] %v207_v4  ;;  %210 = vst [vmem:[%s152_s5 + $0x28] sm:$0xff] %v209_v5  ;;  %v211_v6 = vld [vmem:[%s156_s30 + $0x60] sm:$0xff]  ;;  %v213_v7 = vld [vmem:[%s156_s30 + $0x70] sm:$0xff] }
  0x2a   : > { %212 = vst [vmem:[%s152_s5 + $0x30] sm:$0xff] %v211_v6  ;;  %214 = vst [vmem:[%s152_s5 + $0x38] sm:$0xff] %v213_v7 }
  0x2b PF: > { %p2793_p1 = scmp.ge.s32.totalorder %s3066_s20, 1  ;;  %p219_p2 = scmp.lt.s32.totalorder %s3066_s20, 33 }
  0x2d   : > { %p220_p3 = pnand %p2793_p1, %p219_p2 }
  0x2f   : > { %223 = sbr.rel (%p220_p3) target bundleno = 872 (0x368), region = 62 }
  0x34   : > { %s226_s23 = sand.u32 1, %s3034_s12   ;;  %s253_s25 = sand.u32 1, %s3026_s10   ;;  %v267_v8 = vlaneseq }
  0x35   : > { %s3205_s27 = sshll.u32 %s226_s23, 6  ;;  %s3209_s7 = sshll.u32 %s253_s25, 4 }
  0x36   : > { %v268_v9 = vand.u32 127, %v267_v8  ;;  %s3212_s24 = sshll.u32 %s3046_s15, 2  ;;  %p257_p4 = scmp.lt.s32.totalorder %s3050_s16, 1  ;;  %v3239_v34 = vshrl.u32 %v267_v8, 7 }
  0x37   : > { %s2799_s26 = sshll.u32 %s3046_s15, 9  ;;  %p259_p5 = scmp.lt.s32.totalorder %s3212_s24, 31 }
  0x38   : > { %v269_v10 = vadd.s32 128, %v268_v9  ;;  %v270_v11 = vadd.s32 256, %v268_v9  ;;  %v271_v12 = vadd.s32 384, %v268_v9  ;;  %s258_s28 = scalar_select %p257_p4, %s3050_s16, 1  ;;  %v272_v13 = vcvt.s32.f32 %v268_v9 }
  0x39   : > { %s277_s12 = scvt.s32.f32 %s2799_s26  ;;  %s7356_s0 = sld [smem:[#allocation173_spill]]  ;;  %v387_v39 = vsub.s32 2, %v3239_v34  ;;  %v391_v40 = vsub.s32 6, %v3239_v34 }
  0x3a   : > { %v273_v14 = vcvt.s32.f32 %v269_v10  ;;  %v274_v15 = vcvt.s32.f32 %v270_v11  ;;  %v275_v16 = vcvt.s32.f32 %v271_v12  ;;  %s260_s4 = scalar_select %p259_p5, %s3212_s24, 31 }
  0x3b   : > { %v278_v17 = vstv %s277_s12  ;;  %s2797_s6 = sshll.u32 %s258_s28, 5  ;;  %s2812_s28 = sshll.u32 %s3042_s14, 7 }
  0x3c   : > { %v279_v18 = vadd.f32 %v278_v17, %v272_v13  ;;  %v280_v19 = vadd.f32 %v278_v17, %v273_v14  ;;  %v281_v20 = vadd.f32 %v278_v17, %v274_v15  ;;  %v282_v21 = vadd.f32 %v278_v17, %v275_v16  ;;  %s262_s15 = sadd.s32 %s2797_s6, %s260_s4  ;;  %s6428_s12 = scalar_lea.vmem [#allocation3], %s3205_s27 }
  0x3d   : > { %s2798_s30 = sshll.u32 %s262_s15, 2  ;;  %s6431_s4 = scalar_lea.vmem [#allocation4], %s3209_s7 }
  0x3e   : > { %v3219_v22 = vmul.f32 0.00390625, %v279_v18  ;;  %v3221_v23 = vmul.f32 0.00390625, %v280_v19  ;;  %v3223_v24 = vmul.f32 0.00390625, %v281_v20  ;;  %v3225_v25 = vmul.f32 0.00390625, %v282_v21  ;;  %p2813_p6 = scmp.ne.s32.totalorder %s3042_s14, 0 }
  0x3f   : > { %s264_s26 = scalar_lea.vmem %s7356_s0, %s2798_s30 }
  0x40   : > { %v288_v26 = vfloor.f32 %v3219_v22  ;;  %v289_v27 = vfloor.f32 %v3221_v23  ;;  %v290_v28 = vfloor.f32 %v3223_v24  ;;  %v291_v29 = vfloor.f32 %v3225_v25  ;;  %v317_v49 = vld [vmem:[%s264_s26] sm:$0x77]  ;;  %v318_v50 = vld [vmem:[%s264_s26 + $0x8] sm:$0x77] }
  0x41   : > { %v388_v51 = vrot.slane %v317_v49, %v387_v39  ;;  %v392_v52 = vrot.slane %v317_v49, %v391_v40  ;;  %v396_v53 = vrot.slane %v318_v50, %v387_v39  ;;  %v400_v58 = vrot.slane %v318_v50, %v391_v40 }
  0x42   : > { %v292_v30 = vmul.f32 256.0, %v288_v26  ;;  %v293_v31 = vmul.f32 256.0, %v289_v27  ;;  %v294_v32 = vmul.f32 256.0, %v290_v28  ;;  %v295_v33 = vmul.f32 256.0, %v291_v29 }
  0x44   : > { %v296_v35 = vsub.f32 %v279_v18, %v292_v30  ;;  %v297_v36 = vsub.f32 %v280_v19, %v293_v31  ;;  %v298_v37 = vsub.f32 %v281_v20, %v294_v32  ;;  %v299_v38 = vsub.f32 %v282_v21, %v295_v33 }
  0x45   : > { %v3283_v31 = vsub.s32 0, %v3239_v34  ;;  %v327_v32 = vsub.s32 4, %v3239_v34  ;;  %v355_v33 = vsub.s32 1, %v3239_v34 }
  0x46   : > { %v3246_v41 = vmul.f32 0.0625, %v296_v35  ;;  %v3248_v42 = vmul.f32 0.0625, %v297_v36  ;;  %v3250_v43 = vmul.f32 0.0625, %v298_v37  ;;  %v3252_v44 = vmul.f32 0.0625, %v299_v38 }
  0x47   : > { %7365 = vst [vmem:[#allocation17_spill] sm:$0xff] %v3283_v31  ;;  %v336_v39 = vrot.slane %v318_v50, %v327_v32  ;;  %v356_v40 = vrot.slane %v317_v49, %v355_v33 }
  0x48   : > { %v305_v45 = vfloor.f32 %v3246_v41  ;;  %v306_v46 = vfloor.f32 %v3248_v42  ;;  %v307_v47 = vfloor.f32 %v3250_v43  ;;  %v308_v48 = vfloor.f32 %v3252_v44 }
  0x49   : > { %v364_v42 = vrot.slane %v318_v50, %v355_v33 }
  0x4a   : > { %v309_v54 = vmul.f32 16.0, %v305_v45  ;;  %v310_v55 = vmul.f32 16.0, %v306_v46  ;;  %v311_v56 = vmul.f32 16.0, %v307_v47  ;;  %v312_v57 = vmul.f32 16.0, %v308_v48 }
  0x4c   : > { %v313_v59 = vsub.f32 %v296_v35, %v309_v54  ;;  %v314_v60 = vsub.f32 %v297_v36, %v310_v55  ;;  %v315_v61 = vsub.f32 %v298_v37, %v311_v56  ;;  %v316_v62 = vsub.f32 %v299_v38, %v312_v57 }
  0x4d   : > { %v359_v35 = vsub.s32 5, %v3239_v34  ;;  %v324_v36 = vrot.slane %v317_v49, %v3283_v31  ;;  %v328_v37 = vrot.slane %v317_v49, %v327_v32  ;;  %v332_v38 = vrot.slane %v318_v50, %v3283_v31 }
  0x4e   : > { %v405_v63 = vadd.f32 %v388_v51, %v313_v59  ;;  %v406_v0 = vadd.f32 %v392_v52, %v314_v60  ;;  %v407_v1 = vadd.f32 %v396_v53, %v315_v61  ;;  %v408_v2 = vadd.f32 %v400_v58, %v316_v62 }
  0x4f   : > { %v360_v41 = vrot.slane %v317_v49, %v359_v35  ;;  %v341_v43 = vadd.f32 %v324_v36, %v288_v26  ;;  %v368_v44 = vrot.slane %v318_v50, %v359_v35  ;;  %v342_v51 = vadd.f32 %v328_v37, %v289_v27 }
  0x50   : > { %v409_v3 = vmul.f32 1.0666667, %v405_v63  ;;  %v410_v4 = vmul.f32 1.0666667, %v406_v0  ;;  %v411_v5 = vmul.f32 1.0666667, %v407_v1  ;;  %v343_v52 = vadd.f32 %v332_v38, %v290_v28 }
  0x51   : > { %v412_v6 = vmul.f32 1.0666667, %v408_v2  ;;  %v344_v53 = vadd.f32 %v336_v39, %v291_v29  ;;  %v373_v54 = vadd.f32 %v356_v40, %v305_v45  ;;  %v374_v55 = vadd.f32 %v360_v41, %v306_v46 }
  0x52   : > { %v2808_v7 = vadd.f32 -0.5, %v409_v3  ;;  %v2809_v8 = vadd.f32 -0.5, %v410_v4  ;;  %v2810_v9 = vadd.f32 -0.5, %v411_v5  ;;  %v375_v56 = vadd.f32 %v364_v42, %v307_v47 }
  0x53   : > { %v2811_v10 = vadd.f32 -0.5, %v412_v6  ;;  %v345_v49 = vmul.f32 1.0666667, %v341_v43  ;;  %v376_v22 = vadd.f32 %v368_v44, %v308_v48  ;;  %v346_v23 = vmul.f32 1.0666667, %v342_v51 }
  0x54   : > { %v3258_v11 = vfloor.f32 %v2808_v7  ;;  %v3260_v12 = vfloor.f32 %v2809_v8  ;;  %v3262_v13 = vfloor.f32 %v2810_v9  ;;  %v347_v26 = vmul.f32 1.0666667, %v343_v52 }
  0x55   : > { %v3264_v14 = vfloor.f32 %v2811_v10  ;;  %v348_v24 = vmul.f32 1.0666667, %v344_v53  ;;  %v377_v25 = vmul.f32 1.0666667, %v373_v54  ;;  %v7366_v27 = vmov 0 }
  0x56   : > { %7357 = vst [vmem:[#allocation9_spill] sm:$0xff] %v3258_v11  ;;  %7358 = vst [vmem:[#allocation10_spill] sm:$0xff] %v3260_v12  ;;  %v3267_v15 = vsub.f32 %v2808_v7, %v3258_v11  ;;  %v3270_v16 = vsub.f32 %v2809_v8, %v3260_v12  ;;  %v3273_v17 = vsub.f32 %v2810_v9, %v3262_v13  ;;  %vm501_vm0 = vcmp.ge.f32.partialorder %v3258_v11, 0.0 }
  0x57   : > { %7359 = vst [vmem:[#allocation11_spill] sm:$0xff] %v3262_v13  ;;  %7360 = vst [vmem:[#allocation12_spill] sm:$0xff] %v3264_v14  ;;  %v3276_v18 = vsub.f32 %v2811_v10, %v3264_v14  ;;  %vm505_vm1 = vcmp.le.f32.partialorder %v3258_v11, 15.0  ;;  %vm502_vm2 = vcmp.ge.f32.partialorder %v3260_v12, 0.0  ;;  %vm506_vm3 = vcmp.le.f32.partialorder %v3260_v12, 15.0 }
  0x58   : > { %7361 = vst [vmem:[#allocation13_spill] sm:$0xff] %v3267_v15  ;;  %7362 = vst [vmem:[#allocation14_spill] sm:$0xff] %v3270_v16  ;;  %vm503_vm4 = vcmp.ge.f32.partialorder %v3262_v13, 0.0  ;;  %vm507_vm5 = vcmp.le.f32.partialorder %v3262_v13, 15.0  ;;  %vm504_vm6 = vcmp.ge.f32.partialorder %v3264_v14, 0.0  ;;  %vm508_vm7 = vcmp.le.f32.partialorder %v3264_v14, 15.0 }
  0x59   : > { %7363 = vst [vmem:[#allocation15_spill] sm:$0xff] %v3273_v17  ;;  %7364 = vst [vmem:[#allocation16_spill] sm:$0xff] %v3276_v18  ;;  %v378_v28 = vmul.f32 1.0666667, %v374_v55  ;;  %v379_v29 = vmul.f32 1.0666667, %v375_v56 }
  0x5a   : > { %vm3306_vm8 = vmand %vm501_vm0, %vm505_vm1  ;;  %v7369_v45 = vmov 0  ;;  %vm513_vm10 = vcmp.ge.f32.partialorder %v3258_v11, -1.0  ;;  %vm517_vm11 = vcmp.le.f32.partialorder %v3258_v11, 14.0  ;;  %v380_v46 = vmul.f32 1.0666667, %v376_v22 }
  0x5b   : > { %v7367_v27 = vsel %vm3306_vm8, 4294967295, %v7366_v27  ;;  %vm3310_vm9 = vmand %vm502_vm2, %vm506_vm3  ;;  %v7372_v47 = vmov 0  ;;  %vm514_vm13 = vcmp.ge.f32.partialorder %v3260_v12, -1.0  ;;  %vm518_vm14 = vcmp.le.f32.partialorder %v3260_v12, 14.0 }
  0x5c   : > { %7368 = vst [vmem:[#allocation18_spill] sm:$0xff] %v7367_v27  ;;  %v7370_v45 = vsel %vm3310_vm9, 4294967295, %v7369_v45  ;;  %vm3316_vm12 = vmand %vm503_vm4, %vm507_vm5  ;;  %v2800_v48 = vadd.f32 -0.5, %v345_v49  ;;  %v7375_v50 = vmov 0  ;;  %vm515_vm0 = vcmp.ge.f32.partialorder %v3262_v13, -1.0 }
  0x5d   : > { %7371 = vst [vmem:[#allocation19_spill] sm:$0xff] %v7370_v45  ;;  %v7373_v47 = vsel %vm3316_vm12, 4294967295, %v7372_v47  ;;  %vm3322_vm15 = vmand %vm504_vm6, %vm508_vm7  ;;  %vm519_vm1 = vcmp.le.f32.partialorder %v3262_v13, 14.0  ;;  %v2801_v57 = vadd.f32 -0.5, %v346_v23  ;;  %v2802_v58 = vadd.f32 -0.5, %v347_v26 }
  0x5e   : > { %7374 = vst [vmem:[#allocation20_spill] sm:$0xff] %v7373_v47  ;;  %v7376_v50 = vsel %vm3322_vm15, 4294967295, %v7375_v50  ;;  %vm516_vm2 = vcmp.ge.f32.partialorder %v3264_v14, -1.0  ;;  %vm520_vm3 = vcmp.le.f32.partialorder %v3264_v14, 14.0  ;;  %vm3330_vm4 = vmand %vm513_vm10, %vm517_vm11  ;;  %v7378_v59 = vmov 0 }
  0x5f   : > { %7377 = vst [vmem:[#allocation21_spill] sm:$0xff] %v7376_v50  ;;  %v7379_v59 = vsel %vm3330_vm4, 4294967295, %v7378_v59  ;;  %v2803_v60 = vadd.f32 -0.5, %v348_v24  ;;  %v2804_v61 = vadd.f32 -0.5, %v377_v25  ;;  %v2805_v62 = vadd.f32 -0.5, %v378_v28  ;;  %vm3336_vm5 = vmand %vm514_vm13, %vm518_vm14 }
  0x60   : > { %7380 = vst [vmem:[#allocation22_spill] sm:$0xff] %v7379_v59  ;;  %v2806_v63 = vadd.f32 -0.5, %v379_v29  ;;  %v7381_v0 = vmov 0  ;;  %v2807_v1 = vadd.f32 -0.5, %v380_v46  ;;  %vm3340_vm6 = vmand %vm515_vm0, %vm519_vm1  ;;  %v7384_v2 = vmov 0 }
  0x61   : > { %v7382_v0 = vsel %vm3336_vm5, 4294967295, %v7381_v0  ;;  %v7385_v2 = vsel %vm3340_vm6, 4294967295, %v7384_v2  ;;  %vm3344_vm7 = vmand %vm516_vm2, %vm520_vm3  ;;  %v7387_v3 = vmov 0  ;;  %v3349_v4 = vadd.s32 8, %v3239_v34 }
  0x62   : > { %7383 = vst [vmem:[#allocation23_spill] sm:$0xff] %v7382_v0  ;;  %7386 = vst [vmem:[#allocation24_spill] sm:$0xff] %v7385_v2  ;;  %v7388_v3 = vsel %vm3344_vm7, 4294967295, %v7387_v3  ;;  %v3352_v5 = vadd.s32 16, %v3239_v34  ;;  %v3355_v6 = vadd.s32 24, %v3239_v34  ;;  %v3358_v7 = vadd.s32 32, %v3239_v34 }
  0x63   : > { %7389 = vst [vmem:[#allocation25_spill] sm:$0xff] %v7388_v3  ;;  %v3360_v8 = vfloor.f32 %v2800_v48  ;;  %v3362_v9 = vfloor.f32 %v2801_v57  ;;  %v3364_v10 = vfloor.f32 %v2802_v58  ;;  %v3367_v32 = vadd.s32 40, %v3239_v34 }
  0x64   : > { %v3369_v33 = vfloor.f32 %v2803_v60  ;;  %v3371_v35 = vfloor.f32 %v2804_v61  ;;  %v3373_v36 = vfloor.f32 %v2805_v62  ;;  %v3375_v37 = vfloor.f32 %v2806_v63 }
  0x65   : > { %v3377_v38 = vfloor.f32 %v2807_v1  ;;  %v3380_v39 = vsub.f32 %v2800_v48, %v3360_v8  ;;  %v3383_v40 = vsub.f32 %v2801_v57, %v3362_v9  ;;  %v3386_v41 = vsub.f32 %v2802_v58, %v3364_v10 }
  0x66   : > { %v3389_v42 = vsub.f32 %v2803_v60, %v3369_v33  ;;  %v3392_v43 = vsub.f32 %v2804_v61, %v3371_v35  ;;  %v3395_v44 = vsub.f32 %v2805_v62, %v3373_v36  ;;  %v3398_v51 = vsub.f32 %v2806_v63, %v3375_v37 }
  0x67   : > { %v3402_v52 = vsub.f32 %v2807_v1, %v3377_v38  ;;  %v3405_v53 = vadd.s32 48, %v3239_v34  ;;  %v3408_v54 = vadd.s32 56, %v3239_v34  ;;  %v3411_v55 = vadd.s32 64, %v3239_v34 }
  0x68   : > { %v3414_v56 = vadd.s32 72, %v3239_v34  ;;  %v3417_v49 = vadd.s32 80, %v3239_v34  ;;  %v3420_v22 = vadd.s32 88, %v3239_v34  ;;  %v3423_v23 = vadd.s32 96, %v3239_v34 }
  0x69   : > { %v433_v26 = vsub.f32 1.0, %v3380_v39  ;;  %v434_v24 = vsub.f32 1.0, %v3383_v40  ;;  %v435_v25 = vsub.f32 1.0, %v3386_v41  ;;  %v3428_v28 = vstv %s2812_s28 }
  0x6a   : > { %v436_v29 = vsub.f32 1.0, %v3389_v42  ;;  %v441_v46 = vsub.f32 1.0, %v3392_v43  ;;  %v442_v48 = vsub.f32 1.0, %v3395_v44  ;;  %v443_v57 = vsub.f32 1.0, %v3398_v51 }
  0x6b   : > { %v573_v60 = vmul.f32 16.0, %v3360_v8  ;;  %v574_v61 = vmul.f32 16.0, %v3362_v9  ;;  %v575_v62 = vmul.f32 16.0, %v3364_v10  ;;  %v576_v63 = vmul.f32 16.0, %v3369_v33 }
  0x6c   : > { %vm7390_vm13 = vcmp.le.f32.partialorder %v3360_v8, 15.0  ;;  %vm7391_vm1 = vcmp.ge.f32.partialorder %v3360_v8, 0.0  ;;  %vm493_vm10 = vcmp.le.f32.partialorder %v3371_v35, 14.0  ;;  %vm7394_vm2 = vcmp.le.f32.partialorder %v3362_v9, 15.0 }
  0x6d   : > { %v577_v1 = vadd.f32 %v573_v60, %v3371_v35  ;;  %v578_v30 = vadd.f32 %v574_v61, %v3373_v36  ;;  %v579_v21 = vadd.f32 %v575_v62, %v3375_v37  ;;  %v580_v20 = vadd.f32 %v576_v63, %v3377_v38  ;;  %vm3472_vm0 = vmand %vm7391_vm1, %vm7390_vm13 }
  0x6e   : > { %vm7395_vm5 = vcmp.ge.f32.partialorder %v3362_v9, 0.0  ;;  %v3491_v62 = vmul.f32 %v441_v46, %v433_v26  ;;  %v3493_v63 = vmul.f32 %v442_v48, %v434_v24  ;;  %vm7398_vm7 = vcmp.le.f32.partialorder %v3364_v10, 15.0 }
  0x6f   : > { %vm3486_vm13 = vmand %vm7395_vm5, %vm7394_vm2  ;;  %v2821_v19 = vtrunc.f32 %v577_v1  ;;  %vm7399_vm6 = vcmp.ge.f32.partialorder %v3364_v10, 0.0  ;;  %v3503_v3 = vmul.f32 %v443_v57, %v435_v25  ;;  %v2823_v2 = vtrunc.f32 %v578_v30 }
  0x70   : > { %vm3499_vm14 = vmand %vm7399_vm6, %vm7398_vm7  ;;  %v2825_v0 = vtrunc.f32 %v579_v21  ;;  %v2827_v59 = vtrunc.f32 %v580_v20  ;;  %vm7402_vm5 = vcmp.le.f32.partialorder %v3369_v33, 15.0  ;;  %vm7403_vm2 = vcmp.ge.f32.partialorder %v3369_v33, 0.0 }
  0x71   : > { %vm3509_vm1 = vmand %vm7403_vm2, %vm7402_vm5  ;;  %vm7406_vm11 = vcmp.le.f32.partialorder %v3371_v35, 15.0  ;;  %vm7407_vm6 = vcmp.ge.f32.partialorder %v3371_v35, 0.0  ;;  %v7410_v30 = vsub.f32 1.0, %v3402_v52  ;;  %v3526_v20 = vmul.f32 %v3392_v43, %v433_v26 }
  0x72   : > { %vm3517_vm7 = vmand %vm7407_vm6, %vm7406_vm11  ;;  %v3529_v18 = vmul.f32 %v3395_v44, %v434_v24  ;;  %v3532_v47 = vmul.f32 %v3398_v51, %v435_v25  ;;  %vm7411_vm5 = vcmp.le.f32.partialorder %v3373_v36, 15.0  ;;  %vm7412_vm11 = vcmp.ge.f32.partialorder %v3373_v36, 0.0 }
  0x73   : > { %v3523_v21 = vmul.f32 %v7410_v30, %v436_v29  ;;  %vm3538_vm2 = vmand %vm7412_vm11, %vm7411_vm5  ;;  %v3543_v30 = vmul.f32 %v3402_v52, %v436_v29  ;;  %v3546_v26 = vmul.f32 %v441_v46, %v3380_v39  ;;  %v3549_v24 = vmul.f32 %v442_v48, %v3383_v40 }
  0x74   : > { %v3552_v25 = vmul.f32 %v443_v57, %v3386_v41  ;;  %vm7415_vm6 = vcmp.le.f32.partialorder %v3375_v37, 15.0  ;;  %vm7416_vm3 = vcmp.ge.f32.partialorder %v3375_v37, 0.0  ;;  %v7419_v29 = vsub.f32 1.0, %v3402_v52 }
  0x75   : > { %vm3558_vm5 = vmand %vm7416_vm3, %vm7415_vm6  ;;  %v3569_v46 = vmul.f32 %v3392_v43, %v3380_v39  ;;  %v3573_v48 = vmul.f32 %v3395_v44, %v3383_v40  ;;  %v2822_v57 = vcvt.f32.s32 %v2821_v19  ;;  %vm7420_vm11 = vcmp.le.f32.partialorder %v3377_v38, 15.0 }
  0x76   : > { %v3565_v16 = vmul.f32 %v7419_v29, %v3389_v42  ;;  %vm7421_vm3 = vcmp.ge.f32.partialorder %v3377_v38, 0.0  ;;  %v7422_v27 = vmov 0  ;;  %v3585_v29 = vmul.f32 %v3398_v51, %v3386_v41 }
  0x77   : > { %vm3579_vm6 = vmand %vm7421_vm3, %vm7420_vm11  ;;  %v2824_v15 = vcvt.f32.s32 %v2823_v2  ;;  %v2826_v39 = vcvt.f32.s32 %v2825_v0  ;;  %v2828_v43 = vcvt.f32.s32 %v2827_v59  ;;  %vm7424_vm4 = vcmp.ge.f32.partialorder %v3371_v35, -1.0 }
  0x78   : > { %v7423_v27 = vsel %vm3579_vm6, 4294967295, %v7422_v27  ;;  %vm3591_vm15 = vmand %vm7424_vm4, %vm493_vm10  ;;  %v3597_v40 = vmul.f32 %v3402_v52, %v3389_v42  ;;  %v599_v44 = vadd.s32 104, %v3239_v34  ;;  %v600_v41 = vadd.s32 112, %v3239_v34 }
  0x79   : > { %v601_v2 = vadd.s32 120, %v3239_v34  ;;  %vm7427_vm11 = vcmp.le.f32.partialorder %v3360_v8, 14.0  ;;  %vm7428_vm3 = vcmp.ge.f32.partialorder %v3360_v8, -1.0  ;;  %v7429_v59 = vmov 0 }
  0x7a   : > { %vm3606_vm12 = vmand %vm7428_vm3, %vm7427_vm11  ;;  %vm7431_vm4 = vcmp.le.f32.partialorder %v3373_v36, 14.0  ;;  %vm7432_vm10 = vcmp.ge.f32.partialorder %v3373_v36, -1.0  ;;  %v604_v35 = vadd.s32 %v3428_v28, %v3239_v34  ;;  %v605_v42 = vadd.s32 %v3428_v28, %v3349_v4 }
  0x7b   : > { %v7430_v59 = vsel %vm3606_vm12, 4294967295, %v7429_v59  ;;  %vm3614_vm9 = vmand %vm7432_vm10, %vm7431_vm4  ;;  %v606_v8 = vadd.s32 %v3428_v28, %v3352_v5  ;;  %v607_v51 = vadd.s32 %v3428_v28, %v3355_v6  ;;  %vm7435_vm11 = vcmp.le.f32.partialorder %v3362_v9, 14.0 }
  0x7c   : > { %vm7436_vm3 = vcmp.ge.f32.partialorder %v3362_v9, -1.0  ;;  %v7437_v36 = vmov 0  ;;  %vm7439_vm10 = vcmp.le.f32.partialorder %v3375_v37, 14.0  ;;  %vm7440_vm8 = vcmp.ge.f32.partialorder %v3375_v37, -1.0 }
  0x7d   : > { %vm3630_vm4 = vmand %vm7436_vm3, %vm7435_vm11  ;;  %v7441_v34 = vmov 0  ;;  %v608_v4 = vadd.s32 %v3428_v28, %v3358_v7  ;;  %v609_v5 = vadd.s32 %v3428_v28, %v3367_v32  ;;  %v3648_v6 = vadd.s32 %v3428_v28, %v3405_v53 }
  0x7e   : > { %v7438_v36 = vsel %vm3630_vm4, 4294967295, %v7437_v36  ;;  %vm3638_vm12 = vmand %vm7440_vm8, %vm7439_vm10  ;;  %v3651_v9 = vrot.slane %v2822_v57, %v3283_v31  ;;  %vm7443_vm11 = vcmp.le.f32.partialorder %v3364_v10, 14.0  ;;  %vm7444_vm8 = vcmp.ge.f32.partialorder %v3364_v10, -1.0 }
  0x7f   : > { %v7442_v34 = vsel %vm3638_vm12, 4294967295, %v7441_v34  ;;  %vm3657_vm3 = vmand %vm7444_vm8, %vm7443_vm11  ;;  %vm7447_vm10 = vcmp.le.f32.partialorder %v3377_v38, 14.0  ;;  %vm7448_vm4 = vcmp.ge.f32.partialorder %v3377_v38, -1.0  ;;  %v3671_v32 = vadd.s32 %v3428_v28, %v3408_v54 }
  0x80   : > { %vm3665_vm12 = vmand %vm7448_vm4, %vm7447_vm10  ;;  %v3674_v52 = vrot.slane %v2824_v15, %v3283_v31  ;;  %v3677_v10 = vrot.slane %v2826_v39, %v3283_v31  ;;  %v3680_v53 = vrot.slane %v2828_v43, %v3283_v31  ;;  %vm7451_vm11 = vcmp.le.f32.partialorder %v3369_v33, 14.0 }
  0x81   : > { %vm7452_vm4 = vcmp.ge.f32.partialorder %v3369_v33, -1.0  ;;  %v7453_v38 = vmov 0  ;;  %v3696_v15 = vadd.s32 %v3428_v28, %v3411_v55  ;;  %v3700_v54 = vadd.s32 %v3428_v28, %v3414_v56  ;;  %vm528_vm10 = vmand %vm3509_vm1, %vm3579_vm6 }
  0x82   : > { %vm3686_vm8 = vmand %vm7452_vm4, %vm7451_vm11  ;;  %v3704_v33 = vadd.s32 %v3428_v28, %v3417_v49  ;;  %v3708_v57 = vadd.s32 %v3428_v28, %v3420_v22  ;;  %v3716_v55 = vadd.s32 %v3428_v28, %v3423_v23  ;;  %v3719_v56 = vadd.s32 %v3428_v28, %v599_v44 }
  0x83   : > { %v7454_v38 = vsel %vm3686_vm8, 4294967295, %v7453_v38  ;;  %vm526_vm11 = vmand %vm3486_vm13, %vm3538_vm2  ;;  %v3722_v39 = vadd.s32 %v3428_v28, %v600_v41  ;;  %v3725_v49 = vadd.s32 %v3428_v28, %v601_v2  ;;  %v3732_v22 = vsub.s32 %v604_v35, %v3651_v9 }
  0x84   : > { %vm527_vm4 = vmand %vm3499_vm14, %vm3558_vm5  ;;  %v3735_v23 = vsub.s32 %v605_v42, %v3651_v9  ;;  %v3738_v43 = vsub.s32 %v606_v8, %v3651_v9  ;;  %v3741_v44 = vsub.s32 %v607_v51, %v3651_v9  ;;  %v3756_v41 = vsub.s32 %v604_v35, %v3674_v52 }
  0x85   : > { %7455 = vst [vmem:[#allocation26_spill] sm:$0xff] %v3732_v22  ;;  %vm7459_vm8 = vmand %vm3472_vm0, %vm3517_vm7  ;;  %v3759_v2 = vsub.s32 %v604_v35, %v3677_v10  ;;  %v3762_v14 = vsub.s32 %v604_v35, %v3680_v53  ;;  %v3765_v13 = vsel %vm526_vm11, %v3493_v63, 0.0  ;;  %v3775_v12 = vsub.s32 %v605_v42, %v3677_v10 }
  0x86   : > { %7456 = vst [vmem:[#allocation27_spill] sm:$0xff] %v3735_v23  ;;  %7457 = vst [vmem:[#allocation28_spill] sm:$0xff] %v3738_v43  ;;  %v3753_v28 = vsel %vm7459_vm8, %v3491_v62, 0.0  ;;  %v3772_v62 = vsub.s32 %v605_v42, %v3674_v52  ;;  %v3778_v11 = vsub.s32 %v605_v42, %v3680_v53  ;;  %v3781_v35 = vsel %vm527_vm4, %v3503_v3, 0.0 }
  0x87   : > { %7458 = vst [vmem:[#allocation29_spill] sm:$0xff] %v3741_v44  ;;  %7460 = vst [vmem:[#allocation30_spill] sm:$0xff] %v3753_v28  ;;  %v3788_v63 = vsub.s32 %v606_v8, %v3674_v52  ;;  %v3794_v28 = vsub.s32 %v606_v8, %v3680_v53  ;;  %v3797_v42 = vsel %vm528_vm10, %v3523_v21, 0.0  ;;  %vm7473_vm11 = vnez %v7442_v34 }
  0x88   : > { %7461 = vst [vmem:[#allocation31_spill] sm:$0xff] %v3756_v41  ;;  %7462 = vst [vmem:[#allocation32_spill] sm:$0xff] %v3759_v2  ;;  %v3804_v3 = vsub.s32 %v607_v51, %v3674_v52  ;;  %v3807_v61 = vsub.s32 %v607_v51, %v3677_v10  ;;  %v3825_v21 = vsub.s32 %v608_v4, %v3651_v9 }
  0x89   : > { %7463 = vst [vmem:[#allocation33_spill] sm:$0xff] %v3762_v14  ;;  %7464 = vst [vmem:[#allocation34_spill] sm:$0xff] %v3765_v13  ;;  %v3791_v13 = vsub.s32 %v606_v8, %v3677_v10  ;;  %v3828_v8 = vsub.s32 %v608_v4, %v3674_v52  ;;  %v3841_v60 = vsub.s32 %v608_v4, %v3680_v53 }
  0x8a   : > { %vm537_vm6 = vmand %vm3472_vm0, %vm3591_vm15  ;;  %7465 = vst [vmem:[#allocation35_spill] sm:$0xff] %v3772_v62  ;;  %vm7487_vm0 = vnez %v7438_v36  ;;  %v3875_v17 = vsub.s32 %v3648_v6, %v3674_v52  ;;  %v3918_v1 = vsub.s32 %v3671_v32, %v3680_v53  ;;  %v3956_v0 = vsub.s32 %v3700_v54, %v3674_v52 }
  0x8b   : > { %7466 = vst [vmem:[#allocation36_spill] sm:$0xff] %v3775_v12  ;;  %7467 = vst [vmem:[#allocation37_spill] sm:$0xff] %v3778_v11  ;;  %v3822_v58 = vsel %vm537_vm6, %v3526_v20, 0.0  ;;  %v3844_v20 = vsub.s32 %v609_v5, %v3651_v9  ;;  %v3960_v36 = vsub.s32 %v3700_v54, %v3677_v10  ;;  %v3980_v34 = vsub.s32 %v3704_v33, %v3651_v9 }
  0x8c   : > { %7468 = vst [vmem:[#allocation38_spill] sm:$0xff] %v3781_v35  ;;  %vm538_vm8 = vmand %vm3486_vm13, %vm3614_vm9  ;;  %v3810_v35 = vsub.s32 %v607_v51, %v3680_v53  ;;  %v3831_v51 = vsub.s32 %v608_v4, %v3677_v10  ;;  %v3860_v4 = vsub.s32 %v609_v5, %v3680_v53  ;;  %v3984_v37 = vsub.s32 %v3704_v33, %v3674_v52 }
  0x8d   : > { %7469 = vst [vmem:[#allocation39_spill] sm:$0xff] %v3788_v63  ;;  %7470 = vst [vmem:[#allocation40_spill] sm:$0xff] %v3791_v13  ;;  %v3834_v50 = vsel %vm538_vm8, %v3529_v18, 0.0  ;;  %v3857_v18 = vsub.s32 %v609_v5, %v3677_v10  ;;  %vm7496_vm8 = vnez %v7454_v38  ;;  %v3988_v7 = vsub.s32 %v3704_v33, %v3677_v10 }
  0x8e   : > { %7471 = vst [vmem:[#allocation41_spill] sm:$0xff] %v3794_v28  ;;  %7472 = vst [vmem:[#allocation42_spill] sm:$0xff] %v3797_v42  ;;  %v3995_v19 = vsub.s32 %v3704_v33, %v3680_v53  ;;  %v4018_v33 = vsub.s32 %v3716_v55, %v3651_v9 }
  0x8f   : > { %vm539_vm4 = vmand %vm3499_vm14, %vm7473_vm11  ;;  %7474 = vst [vmem:[#allocation43_spill] sm:$0xff] %v3804_v3  ;;  %vm7482_vm14 = vnez %v7430_v59  ;;  %v4003_v59 = vsub.s32 %v3708_v57, %v3674_v52 }
  0x90   : > { %7475 = vst [vmem:[#allocation44_spill] sm:$0xff] %v3807_v61  ;;  %7476 = vst [vmem:[#allocation45_spill] sm:$0xff] %v3810_v35  ;;  %v3850_v42 = vsel %vm539_vm4, %v3532_v47, 0.0  ;;  %v3879_v47 = vsub.s32 %v3648_v6, %v3677_v10 }
  0x91   : > { %vm540_vm13 = vmand %vm3509_vm1, %vm3665_vm12  ;;  %7477 = vst [vmem:[#allocation46_spill] sm:$0xff] %v3822_v58  ;;  %v3847_v58 = vsub.s32 %v609_v5, %v3674_v52  ;;  %v3883_v5 = vsub.s32 %v3648_v6, %v3680_v53 }
  0x92   : > { %7478 = vst [vmem:[#allocation47_spill] sm:$0xff] %v3825_v21  ;;  %7479 = vst [vmem:[#allocation48_spill] sm:$0xff] %v3828_v8  ;;  %v3867_v31 = vsel %vm540_vm13, %v3543_v30, 0.0  ;;  %v3899_v30 = vsub.s32 %v3671_v32, %v3651_v9 }
  0x93   : > { %7480 = vst [vmem:[#allocation49_spill] sm:$0xff] %v3831_v51  ;;  %7481 = vst [vmem:[#allocation50_spill] sm:$0xff] %v3834_v50  ;;  %v3864_v50 = vsub.s32 %v3648_v6, %v3651_v9  ;;  %v3903_v6 = vsub.s32 %v3671_v32, %v3674_v52 }
  0x94   : > { %vm549_vm1 = vmand %vm7482_vm14, %vm3517_vm7  ;;  %7483 = vst [vmem:[#allocation51_spill] sm:$0xff] %v3841_v60 }
  0x95   : > { %7484 = vst [vmem:[#allocation52_spill] sm:$0xff] %v3844_v20  ;;  %7485 = vst [vmem:[#allocation53_spill] sm:$0xff] %v3847_v58  ;;  %v3895_v45 = vsel %vm549_vm1, %v3546_v26, 0.0  ;;  %v3922_v26 = vsub.s32 %v3696_v15, %v3651_v9  ;;  %vm705_vm1 = vcmp.eq.s32.totalorder %v3772_v62, 0 }
  0x96   : > { %7486 = vst [vmem:[#allocation54_spill] sm:$0xff] %v3850_v42  ;;  %vm550_vm6 = vmand %vm7487_vm0, %vm3538_vm2  ;;  %vm7495_vm2 = vnez %v7423_v27  ;;  %v3907_v27 = vsub.s32 %v3671_v32, %v3677_v10  ;;  %v3937_v32 = vsub.s32 %v3696_v15, %v3677_v10  ;;  %v3945_v42 = vsub.s32 %v3700_v54, %v3651_v9 }
  0x97   : > { %7488 = vst [vmem:[#allocation55_spill] sm:$0xff] %v3857_v18  ;;  %7489 = vst [vmem:[#allocation56_spill] sm:$0xff] %v3860_v4 }
  0x98   : > { %7490 = vst [vmem:[#allocation57_spill] sm:$0xff] %v3864_v50  ;;  %7491 = vst [vmem:[#allocation58_spill] sm:$0xff] %v3867_v31  ;;  %v3910_v31 = vsel %vm550_vm6, %v3549_v24, 0.0  ;;  %vm7586_vm6 = vcmp.eq.s32.totalorder %v3844_v20, 0 }
  0x99   : > { %vm551_vm10 = vmand %vm3657_vm3, %vm3558_vm5  ;;  %7492 = vst [vmem:[#allocation59_spill] sm:$0xff] %v3875_v17 }
  0x9a   : > { %7493 = vst [vmem:[#allocation60_spill] sm:$0xff] %v3879_v47  ;;  %7494 = vst [vmem:[#allocation61_spill] sm:$0xff] %v3883_v5  ;;  %v3929_v24 = vsel %vm551_vm10, %v3552_v25, 0.0  ;;  %vm7566_vm10 = vcmp.eq.s32.totalorder %v3794_v28, 0 }
  0x9b   : > { %vm552_vm4 = vmand %vm7496_vm8, %vm7495_vm2  ;;  %7497 = vst [vmem:[#allocation62_spill] sm:$0xff] %v3895_v45  ;;  %v3926_v45 = vsub.s32 %v3696_v15, %v3674_v52 }
  0x9c   : > { %7498 = vst [vmem:[#allocation63_spill] sm:$0xff] %v3899_v30  ;;  %7499 = vst [vmem:[#allocation64_spill] sm:$0xff] %v3903_v6  ;;  %v3948_v25 = vsel %vm552_vm4, %v3565_v16, 0.0  ;;  %v7545_v30 = vld [vmem:[#allocation42_spill] sm:$0xff]  ;;  %vm743_vm4 = vcmp.eq.s32.totalorder %v3995_v19, 0 }
  0x9d   : > { %7500 = vst [vmem:[#allocation65_spill] sm:$0xff] %v3907_v27  ;;  %7501 = vst [vmem:[#allocation66_spill] sm:$0xff] %v3910_v31  ;;  %v3941_v31 = vsub.s32 %v3696_v15, %v3680_v53  ;;  %v3964_v15 = vsub.s32 %v3700_v54, %v3680_v53 }
  0x9e   : > { %vm561_vm7 = vmand %vm7482_vm14, %vm3591_vm15  ;;  %7502 = vst [vmem:[#allocation67_spill] sm:$0xff] %v3918_v1  ;;  %vm701_vm15 = vcmp.eq.s32.totalorder %v3756_v41, 0  ;;  %vm704_vm14 = vcmp.eq.s32.totalorder %v3735_v23, 0 }
  0x9f   : > { %7503 = vst [vmem:[#allocation68_spill] sm:$0xff] %v3922_v26  ;;  %7504 = vst [vmem:[#allocation69_spill] sm:$0xff] %v3926_v45  ;;  %v3976_v16 = vsel %vm561_vm7, %v3569_v46, 0.0  ;;  %v3999_v46 = vsub.s32 %v3708_v57, %v3651_v9  ;;  %vm741_vm7 = vcmp.eq.s32.totalorder %v3984_v37, 0 }
  0xa0   : > { %7505 = vst [vmem:[#allocation70_spill] sm:$0xff] %v3929_v24  ;;  %vm562_vm5 = vmand %vm7487_vm0, %vm3614_vm9  ;;  %v4049_v24 = vsub.s32 %v3719_v56, %v3680_v53  ;;  %vm748_vm0 = vcmp.eq.s32.totalorder %v4018_v33, 0 }
  0xa1   : > { %7506 = vst [vmem:[#allocation71_spill] sm:$0xff] %v3937_v32  ;;  %7507 = vst [vmem:[#allocation72_spill] sm:$0xff] %v3941_v31  ;;  %v3991_v38 = vsel %vm562_vm5, %v3573_v48, 0.0  ;;  %v4014_v48 = vsub.s32 %v3708_v57, %v3680_v53  ;;  %vm740_vm5 = vcmp.eq.s32.totalorder %v3980_v34, 0  ;;  %vm744_vm2 = vcmp.eq.s32.totalorder %v3999_v46, 0 }
  0xa2   : > { %7508 = vst [vmem:[#allocation73_spill] sm:$0xff] %v3945_v42  ;;  %7509 = vst [vmem:[#allocation74_spill] sm:$0xff] %v3948_v25  ;;  %v4025_v25 = vsub.s32 %v3716_v55, %v3674_v52 }
  0xa3   : > { %vm563_vm9 = vmand %vm3657_vm3, %vm7473_vm11  ;;  %7510 = vst [vmem:[#allocation75_spill] sm:$0xff] %v3956_v0  ;;  %vm702_vm3 = vcmp.eq.s32.totalorder %v3759_v2, 0  ;;  %vm703_vm11 = vcmp.eq.s32.totalorder %v3762_v14, 0 }
  0xa4   : > { %7511 = vst [vmem:[#allocation76_spill] sm:$0xff] %v3960_v36  ;;  %7512 = vst [vmem:[#allocation77_spill] sm:$0xff] %v3964_v15  ;;  %v4006_v54 = vsel %vm563_vm9, %v3585_v29, 0.0  ;;  %v4029_v29 = vsub.s32 %v3716_v55, %v3677_v10  ;;  %vm739_vm9 = vcmp.eq.s32.totalorder %v3964_v15, 0 }
  0xa5   : > { %vm564_vm13 = vmand %vm7496_vm8, %vm3665_vm12  ;;  %7513 = vst [vmem:[#allocation78_spill] sm:$0xff] %v3976_v16  ;;  %v4010_v16 = vsub.s32 %v3708_v57, %v3677_v10  ;;  %v4037_v57 = vsub.s32 %v3719_v56, %v3651_v9  ;;  %vm700_vm12 = vcmp.eq.s32.totalorder %v3732_v22, 0  ;;  %vm742_vm8 = vcmp.eq.s32.totalorder %v3988_v7, 0 }
  0xa6   : > { %7514 = vst [vmem:[#allocation79_spill] sm:$0xff] %v3980_v34  ;;  %7515 = vst [vmem:[#allocation80_spill] sm:$0xff] %v3984_v37 }
  0xa7   : > { %7516 = vst [vmem:[#allocation81_spill] sm:$0xff] %v3988_v7  ;;  %7517 = vst [vmem:[#allocation82_spill] sm:$0xff] %v3991_v38  ;;  %v4021_v38 = vsel %vm564_vm13, %v3597_v40, 0.0  ;;  %v4041_v40 = vsub.s32 %v3719_v56, %v3674_v52  ;;  %vm738_vm13 = vcmp.eq.s32.totalorder %v3960_v36, 0 }
  0xa8   : > { %7518 = vst [vmem:[#allocation83_spill] sm:$0xff] %v3995_v19  ;;  %7519 = vst [vmem:[#allocation84_spill] sm:$0xff] %v3999_v46 }
  0xa9   : > { %7520 = vst [vmem:[#allocation85_spill] sm:$0xff] %v4003_v59  ;;  %7521 = vst [vmem:[#allocation86_spill] sm:$0xff] %v4006_v54  ;;  %v4033_v54 = vsub.s32 %v3716_v55, %v3680_v53  ;;  %v4053_v55 = vsub.s32 %v3722_v39, %v3651_v9 }
  0xaa   : > { %7522 = vst [vmem:[#allocation87_spill] sm:$0xff] %v4010_v16  ;;  %7523 = vst [vmem:[#allocation88_spill] sm:$0xff] %v4014_v48 }
  0xab   : > { %7524 = vst [vmem:[#allocation89_spill] sm:$0xff] %v4018_v33  ;;  %7525 = vst [vmem:[#allocation90_spill] sm:$0xff] %v4021_v38  ;;  %v4045_v38 = vsub.s32 %v3719_v56, %v3677_v10  ;;  %v4069_v56 = vsub.s32 %v3725_v49, %v3651_v9  ;;  %v7541_v9 = vld [vmem:[#allocation17_spill] sm:$0xff] }
  0xac   : > { %7526 = vst [vmem:[#allocation91_spill] sm:$0xff] %v4025_v25  ;;  %7527 = vst [vmem:[#allocation92_spill] sm:$0xff] %v4029_v29  ;;  %v4129_v5 = vrot.slane %v7545_v30, %v7541_v9 }
  0xad   : > { %7528 = vst [vmem:[#allocation93_spill] sm:$0xff] %v4033_v54  ;;  %7529 = vst [vmem:[#allocation94_spill] sm:$0xff] %v4037_v57  ;;  %v4057_v54 = vsub.s32 %v3722_v39, %v3674_v52  ;;  %v4061_v57 = vsub.s32 %v3722_v39, %v3677_v10 }
  0xae   : > { %7530 = vst [vmem:[#allocation95_spill] sm:$0xff] %v4041_v40  ;;  %7531 = vst [vmem:[#allocation96_spill] sm:$0xff] %v4045_v38  ;;  %v4065_v40 = vsub.s32 %v3722_v39, %v3680_v53 }
  0xaf   : > { %7532 = vst [vmem:[#allocation97_spill] sm:$0xff] %v4049_v24  ;;  %7533 = vst [vmem:[#allocation98_spill] sm:$0xff] %v4053_v55  ;;  %v4073_v24 = vsub.s32 %v3725_v49, %v3674_v52  ;;  %v4077_v55 = vsub.s32 %v3725_v49, %v3677_v10  ;;  %v7542_v52 = vld [vmem:[#allocation30_spill] sm:$0xff] }
  0xb0   : > { %7534 = vst [vmem:[#allocation99_spill] sm:$0xff] %v4057_v54  ;;  %7535 = vst [vmem:[#allocation100_spill] sm:$0xff] %v4061_v57  ;;  %v4081_v54 = vsub.s32 %v3725_v49, %v3680_v53  ;;  %v4117_v10 = vrot.slane %v7542_v52, %v7541_v9  ;;  %v7543_v53 = vld [vmem:[#allocation34_spill] sm:$0xff] }
  0xb1   : > { %7536 = vst [vmem:[#allocation101_spill] sm:$0xff] %v4065_v40  ;;  %7537 = vst [vmem:[#allocation102_spill] sm:$0xff] %v4069_v56  ;;  %v4121_v39 = vrot.slane %v7543_v53, %v7541_v9  ;;  %v7544_v49 = vld [vmem:[#allocation38_spill] sm:$0xff] }
  0xb2   : > { %7538 = vst [vmem:[#allocation103_spill] sm:$0xff] %v4073_v24  ;;  %7539 = vst [vmem:[#allocation104_spill] sm:$0xff] %v4077_v55  ;;  %v4125_v47 = vrot.slane %v7544_v49, %v7541_v9  ;;  %v4150_v30 = vsel %vm700_vm12, %v4117_v10, 0.0  ;;  %v4165_v49 = vsel %vm703_vm11, %v4129_v5, 0.0  ;;  %vm749_vm12 = vcmp.eq.s32.totalorder %v4025_v25, 0 }
  0xb3   : > { %7540 = vst [vmem:[#allocation105_spill] sm:$0xff] %v4081_v54  ;;  %7546 = vst [vmem:[#allocation30_spill] sm:$0xff] %v4150_v30  ;;  %v4155_v52 = vsel %vm701_vm15, %v4121_v39, 0.0  ;;  %vm7553_vm15 = vcmp.eq.s32.totalorder %v3775_v12, 0  ;;  %vm760_vm11 = vcmp.eq.s32.totalorder %v4069_v56, 0 }
  0xb4   : > { %7547 = vst [vmem:[#allocation34_spill] sm:$0xff] %v4155_v52  ;;  %v4160_v53 = vsel %vm702_vm3, %v4125_v47, 0.0  ;;  %7549 = vst [vmem:[#allocation42_spill] sm:$0xff] %v4165_v49  ;;  %v7550_v30 = vld [vmem:[#allocation93_spill] sm:$0xff]  ;;  %v4174_v52 = vsel %vm704_vm14, %v4117_v10, 0.0  ;;  %v4184_v49 = vsel %vm7553_vm15, %v4125_v47, 0.0 }
  0xb5   : > { %7548 = vst [vmem:[#allocation38_spill] sm:$0xff] %v4160_v53  ;;  %7551 = vst [vmem:[#allocation106_spill] sm:$0xff] %v4174_v52  ;;  %v4179_v53 = vsel %vm705_vm1, %v4121_v39, 0.0  ;;  %vm7555_vm3 = vcmp.eq.s32.totalorder %v3778_v11, 0  ;;  %v7557_v14 = vld [vmem:[#allocation94_spill] sm:$0xff]  ;;  %v7558_v23 = vld [vmem:[#allocation95_spill] sm:$0xff] }
  0xb6   : > { %7552 = vst [vmem:[#allocation107_spill] sm:$0xff] %v4179_v53  ;;  %7554 = vst [vmem:[#allocation108_spill] sm:$0xff] %v4184_v49  ;;  %v4189_v9 = vsel %vm7555_vm3, %v4129_v5, 0.0  ;;  %v7559_v52 = vld [vmem:[#allocation97_spill] sm:$0xff]  ;;  %vm7560_vm1 = vcmp.eq.s32.totalorder %v3738_v43, 0  ;;  %vm7562_vm15 = vcmp.eq.s32.totalorder %v3788_v63, 0 }
  0xb7   : > { %7556 = vst [vmem:[#allocation109_spill] sm:$0xff] %v4189_v9  ;;  %v4198_v53 = vsel %vm7560_vm1, %v4117_v10, 0.0  ;;  %v4203_v49 = vsel %vm7562_vm15, %v4121_v39, 0.0  ;;  %vm7564_vm3 = vcmp.eq.s32.totalorder %v3791_v13, 0  ;;  %v4213_v11 = vsel %vm7566_vm10, %v4129_v5, 0.0  ;;  %v7568_v12 = vld [vmem:[#allocation98_spill] sm:$0xff] }
  0xb8   : > { %7561 = vst [vmem:[#allocation110_spill] sm:$0xff] %v4198_v53  ;;  %7563 = vst [vmem:[#allocation111_spill] sm:$0xff] %v4203_v49  ;;  %v4208_v9 = vsel %vm7564_vm3, %v4125_v47, 0.0  ;;  %v7569_v43 = vld [vmem:[#allocation99_spill] sm:$0xff]  ;;  %vm7570_vm15 = vcmp.eq.s32.totalorder %v3741_v44, 0  ;;  %vm7572_vm3 = vcmp.eq.s32.totalorder %v3804_v3, 0 }
  0xb9   : > { %7565 = vst [vmem:[#allocation112_spill] sm:$0xff] %v4208_v9  ;;  %7567 = vst [vmem:[#allocation113_spill] sm:$0xff] %v4213_v11  ;;  %v4222_v49 = vsel %vm7570_vm15, %v4117_v10, 0.0  ;;  %v4227_v9 = vsel %vm7572_vm3, %v4121_v39, 0.0  ;;  %vm7574_vm10 = vcmp.eq.s32.totalorder %v3807_v61, 0  ;;  %vm7576_vm14 = vcmp.eq.s32.totalorder %v3810_v35, 0 }
  0xba   : > { %7571 = vst [vmem:[#allocation114_spill] sm:$0xff] %v4222_v49  ;;  %7573 = vst [vmem:[#allocation115_spill] sm:$0xff] %v4227_v9  ;;  %v4232_v11 = vsel %vm7574_vm10, %v4125_v47, 0.0  ;;  %v4237_v53 = vsel %vm7576_vm14, %v4129_v5, 0.0  ;;  %vm761_vm15 = vcmp.eq.s32.totalorder %v4073_v24, 0  ;;  %vm7578_vm3 = vcmp.eq.s32.totalorder %v3825_v21, 0 }
  0xbb   : > { %7575 = vst [vmem:[#allocation116_spill] sm:$0xff] %v4232_v11  ;;  %7577 = vst [vmem:[#allocation117_spill] sm:$0xff] %v4237_v53  ;;  %v4246_v9 = vsel %vm7578_vm3, %v4117_v10, 0.0  ;;  %vm7580_vm10 = vcmp.eq.s32.totalorder %v3828_v8, 0  ;;  %vm7582_vm14 = vcmp.eq.s32.totalorder %v3831_v51, 0  ;;  %vm7584_vm1 = vcmp.eq.s32.totalorder %v3841_v60, 0 }
  0xbc   : > { %7579 = vst [vmem:[#allocation118_spill] sm:$0xff] %v4246_v9  ;;  %v4251_v11 = vsel %vm7580_vm10, %v4121_v39, 0.0  ;;  %v4256_v53 = vsel %vm7582_vm14, %v4125_v47, 0.0  ;;  %v4261_v49 = vsel %vm7584_vm1, %v4129_v5, 0.0  ;;  %v4266_v21 = vsel %vm7586_vm6, %v4117_v10, 0.0 }
  0xbd   : > { %7581 = vst [vmem:[#allocation119_spill] sm:$0xff] %v4251_v11  ;;  %7583 = vst [vmem:[#allocation120_spill] sm:$0xff] %v4256_v53  ;;  %vm7588_vm3 = vcmp.eq.s32.totalorder %v3847_v58, 0  ;;  %vm7590_vm10 = vcmp.eq.s32.totalorder %v3857_v18, 0  ;;  %vm7592_vm14 = vcmp.eq.s32.totalorder %v3860_v4, 0  ;;  %vm7594_vm1 = vcmp.eq.s32.totalorder %v3864_v50, 0 }
  0xbe   : > { %7585 = vst [vmem:[#allocation121_spill] sm:$0xff] %v4261_v49  ;;  %7587 = vst [vmem:[#allocation122_spill] sm:$0xff] %v4266_v21  ;;  %v4271_v9 = vsel %vm7588_vm3, %v4121_v39, 0.0  ;;  %v4276_v11 = vsel %vm7590_vm10, %v4125_v47, 0.0  ;;  %v4281_v53 = vsel %vm7592_vm14, %v4129_v5, 0.0  ;;  %v4286_v49 = vsel %vm7594_vm1, %v4117_v10, 0.0 }
  0xbf   : > { %7589 = vst [vmem:[#allocation123_spill] sm:$0xff] %v4271_v9  ;;  %7591 = vst [vmem:[#allocation124_spill] sm:$0xff] %v4276_v11  ;;  %vm7596_vm6 = vcmp.eq.s32.totalorder %v3875_v17, 0  ;;  %v7598_v9 = vld [vmem:[#allocation60_spill] sm:$0xff]  ;;  %v7601_v11 = vld [vmem:[#allocation61_spill] sm:$0xff]  ;;  %vm7607_vm1 = vcmp.eq.s32.totalorder %v3903_v6, 0 }
  0xc0   : > { %7593 = vst [vmem:[#allocation125_spill] sm:$0xff] %v4281_v53  ;;  %7595 = vst [vmem:[#allocation126_spill] sm:$0xff] %v4286_v49  ;;  %v4291_v21 = vsel %vm7596_vm6, %v4121_v39, 0.0  ;;  %vm7599_vm3 = vcmp.eq.s32.totalorder %v7598_v9, 0  ;;  %vm7602_vm10 = vcmp.eq.s32.totalorder %v7601_v11, 0  ;;  %v7604_v53 = vld [vmem:[#allocation63_spill] sm:$0xff] }
  0xc1   : > { %7597 = vst [vmem:[#allocation127_spill] sm:$0xff] %v4291_v21  ;;  %v4296_v18 = vsel %vm7599_vm3, %v4125_v47, 0.0  ;;  %v4301_v4 = vsel %vm7602_vm10, %v4129_v5, 0.0  ;;  %vm7605_vm14 = vcmp.eq.s32.totalorder %v7604_v53, 0  ;;  %v4311_v49 = vsel %vm7607_vm1, %v4121_v39, 0.0  ;;  %v7675_v58 = vld [vmem:[#allocation17_spill] sm:$0xff] }
  0xc2   : > { %7600 = vst [vmem:[#allocation128_spill] sm:$0xff] %v4296_v18  ;;  %7603 = vst [vmem:[#allocation129_spill] sm:$0xff] %v4301_v4  ;;  %v4306_v50 = vsel %vm7605_vm14, %v4117_v10, 0.0  ;;  %vm7609_vm6 = vcmp.eq.s32.totalorder %v3907_v27, 0  ;;  %vm7611_vm3 = vcmp.eq.s32.totalorder %v3918_v1, 0  ;;  %vm7613_vm10 = vcmp.eq.s32.totalorder %v3922_v26, 0 }
  0xc3   : > { %7606 = vst [vmem:[#allocation130_spill] sm:$0xff] %v4306_v50  ;;  %7608 = vst [vmem:[#allocation131_spill] sm:$0xff] %v4311_v49  ;;  %v4316_v21 = vsel %vm7609_vm6, %v4125_v47, 0.0  ;;  %v4321_v18 = vsel %vm7611_vm3, %v4129_v5, 0.0  ;;  %v4326_v4 = vsel %vm7613_vm10, %v4117_v10, 0.0  ;;  %vm7615_vm14 = vcmp.eq.s32.totalorder %v3926_v45, 0 }
  0xc4   : > { %7610 = vst [vmem:[#allocation132_spill] sm:$0xff] %v4316_v21  ;;  %7612 = vst [vmem:[#allocation133_spill] sm:$0xff] %v4321_v18  ;;  %v4331_v50 = vsel %vm7615_vm14, %v4121_v39, 0.0  ;;  %vm7617_vm1 = vcmp.eq.s32.totalorder %v3937_v32, 0  ;;  %vm7619_vm6 = vcmp.eq.s32.totalorder %v3941_v31, 0  ;;  %vm7621_vm3 = vcmp.eq.s32.totalorder %v3945_v42, 0 }
  0xc5   : > { %7614 = vst [vmem:[#allocation134_spill] sm:$0xff] %v4326_v4  ;;  %7616 = vst [vmem:[#allocation135_spill] sm:$0xff] %v4331_v50  ;;  %v4336_v49 = vsel %vm7617_vm1, %v4125_v47, 0.0  ;;  %v4341_v21 = vsel %vm7619_vm6, %v4129_v5, 0.0  ;;  %v4346_v18 = vsel %vm7621_vm3, %v4117_v10, 0.0  ;;  %vm7623_vm10 = vcmp.eq.s32.totalorder %v3956_v0, 0 }
  0xc6   : > { %7618 = vst [vmem:[#allocation136_spill] sm:$0xff] %v4336_v49  ;;  %7620 = vst [vmem:[#allocation137_spill] sm:$0xff] %v4341_v21  ;;  %v4351_v4 = vsel %vm7623_vm10, %v4121_v39, 0.0  ;;  %v4356_v50 = vsel %vm738_vm13, %v4125_v47, 0.0  ;;  %v4361_v49 = vsel %vm739_vm9, %v4129_v5, 0.0  ;;  %v4366_v21 = vsel %vm740_vm5, %v4117_v10, 0.0 }
  0xc7   : > { %7622 = vst [vmem:[#allocation138_spill] sm:$0xff] %v4346_v18  ;;  %7624 = vst [vmem:[#allocation139_spill] sm:$0xff] %v4351_v4  ;;  %v4371_v18 = vsel %vm741_vm7, %v4121_v39, 0.0  ;;  %v4376_v4 = vsel %vm742_vm8, %v4125_v47, 0.0  ;;  %vm7632_vm5 = vcmp.eq.s32.totalorder %v4003_v59, 0  ;;  %vm7634_vm7 = vcmp.eq.s32.totalorder %v4010_v16, 0 }
  0xc8   : > { %7625 = vst [vmem:[#allocation140_spill] sm:$0xff] %v4356_v50  ;;  %7626 = vst [vmem:[#allocation141_spill] sm:$0xff] %v4361_v49  ;;  %v4381_v50 = vsel %vm743_vm4, %v4129_v5, 0.0  ;;  %v4386_v49 = vsel %vm744_vm2, %v4117_v10, 0.0  ;;  %vm7636_vm8 = vcmp.eq.s32.totalorder %v4014_v48, 0  ;;  %vm7640_vm2 = vcmp.eq.s32.totalorder %v4029_v29, 0 }
  0xc9   : > { %7627 = vst [vmem:[#allocation142_spill] sm:$0xff] %v4366_v21  ;;  %7628 = vst [vmem:[#allocation143_spill] sm:$0xff] %v4371_v18  ;;  %v4391_v21 = vsel %vm7632_vm5, %v4121_v39, 0.0  ;;  %v4396_v18 = vsel %vm7634_vm7, %v4125_v47, 0.0  ;;  %vm7642_vm4 = vcmp.eq.s32.totalorder %v7550_v30, 0  ;;  %vm7644_vm9 = vcmp.eq.s32.totalorder %v7557_v14, 0 }
  0xca   : > { %7629 = vst [vmem:[#allocation144_spill] sm:$0xff] %v4376_v4  ;;  %7630 = vst [vmem:[#allocation145_spill] sm:$0xff] %v4381_v50  ;;  %v4401_v4 = vsel %vm7636_vm8, %v4129_v5, 0.0  ;;  %v4406_v50 = vsel %vm748_vm0, %v4117_v10, 0.0  ;;  %vm7646_vm0 = vcmp.eq.s32.totalorder %v7558_v23, 0  ;;  %vm7648_vm13 = vcmp.eq.s32.totalorder %v4045_v38, 0 }
  0xcb   : > { %7631 = vst [vmem:[#allocation146_spill] sm:$0xff] %v4386_v49  ;;  %7633 = vst [vmem:[#allocation147_spill] sm:$0xff] %v4391_v21  ;;  %v4411_v49 = vsel %vm749_vm12, %v4121_v39, 0.0  ;;  %v4416_v21 = vsel %vm7640_vm2, %v4125_v47, 0.0  ;;  %vm7650_vm12 = vcmp.eq.s32.totalorder %v7559_v52, 0  ;;  %vm7652_vm14 = vcmp.eq.s32.totalorder %v7568_v12, 0 }
  0xcc   : > { %7635 = vst [vmem:[#allocation148_spill] sm:$0xff] %v4396_v18  ;;  %7637 = vst [vmem:[#allocation149_spill] sm:$0xff] %v4401_v4  ;;  %v4421_v18 = vsel %vm7642_vm4, %v4129_v5, 0.0  ;;  %v4426_v4 = vsel %vm7644_vm9, %v4117_v10, 0.0  ;;  %vm7654_vm1 = vcmp.eq.s32.totalorder %v7569_v43, 0  ;;  %vm7656_vm6 = vcmp.eq.s32.totalorder %v4061_v57, 0 }
  0xcd   : > { %7638 = vst [vmem:[#allocation150_spill] sm:$0xff] %v4406_v50  ;;  %7639 = vst [vmem:[#allocation151_spill] sm:$0xff] %v4411_v49  ;;  %v4431_v50 = vsel %vm7646_vm0, %v4121_v39, 0.0  ;;  %v4436_v49 = vsel %vm7648_vm13, %v4125_v47, 0.0  ;;  %vm7658_vm3 = vcmp.eq.s32.totalorder %v4065_v40, 0  ;;  %vm7662_vm10 = vcmp.eq.s32.totalorder %v4077_v55, 0 }
  0xce   : > { %7641 = vst [vmem:[#allocation152_spill] sm:$0xff] %v4416_v21  ;;  %7643 = vst [vmem:[#allocation153_spill] sm:$0xff] %v4421_v18  ;;  %v4441_v21 = vsel %vm7650_vm12, %v4129_v5, 0.0  ;;  %v4446_v18 = vsel %vm7652_vm14, %v4117_v10, 0.0  ;;  %vm7664_vm5 = vcmp.eq.s32.totalorder %v4081_v54, 0  ;;  %vm844_vm7 = vcmp.eq.s32.totalorder %v3732_v22, 1 }
  0xcf   : > { %7645 = vst [vmem:[#allocation154_spill] sm:$0xff] %v4426_v4  ;;  %7647 = vst [vmem:[#allocation155_spill] sm:$0xff] %v4431_v50  ;;  %v4451_v4 = vsel %vm7654_vm1, %v4121_v39, 0.0  ;;  %v4456_v50 = vsel %vm7656_vm6, %v4125_v47, 0.0  ;;  %vm846_vm8 = vcmp.eq.s32.totalorder %v3759_v2, 1  ;;  %vm849_vm4 = vcmp.eq.s32.totalorder %v3772_v62, 1 }
  0xd0   : > { %7649 = vst [vmem:[#allocation156_spill] sm:$0xff] %v4436_v49  ;;  %7651 = vst [vmem:[#allocation157_spill] sm:$0xff] %v4441_v21  ;;  %v4461_v49 = vsel %vm7658_vm3, %v4129_v5, 0.0  ;;  %v4466_v21 = vsel %vm760_vm11, %v4117_v10, 0.0  ;;  %vm845_vm11 = vcmp.eq.s32.totalorder %v3756_v41, 1  ;;  %v7666_v10 = vld [vmem:[#allocation33_spill] sm:$0xff] }
  0xd1   : > { %7653 = vst [vmem:[#allocation158_spill] sm:$0xff] %v4446_v18  ;;  %7655 = vst [vmem:[#allocation159_spill] sm:$0xff] %v4451_v4  ;;  %v4471_v18 = vsel %vm761_vm15, %v4121_v39, 0.0  ;;  %v4476_v4 = vsel %vm7662_vm10, %v4125_v47, 0.0  ;;  %vm847_vm2 = vcmp.eq.s32.totalorder %v7666_v10, 1  ;;  %v7667_v39 = vld [vmem:[#allocation27_spill] sm:$0xff] }
  0xd2   : > { %7657 = vst [vmem:[#allocation160_spill] sm:$0xff] %v4456_v50  ;;  %7659 = vst [vmem:[#allocation161_spill] sm:$0xff] %v4461_v49  ;;  %v4481_v50 = vsel %vm7664_vm5, %v4129_v5, 0.0  ;;  %vm848_vm15 = vcmp.eq.s32.totalorder %v7667_v39, 1  ;;  %v7669_v47 = vld [vmem:[#allocation37_spill] sm:$0xff]  ;;  %v7671_v5 = vld [vmem:[#allocation47_spill] sm:$0xff] }
  0xd3   : > { %7660 = vst [vmem:[#allocation162_spill] sm:$0xff] %v4466_v21  ;;  %7661 = vst [vmem:[#allocation163_spill] sm:$0xff] %v4471_v18  ;;  %v7668_v18 = vld [vmem:[#allocation36_spill] sm:$0xff]  ;;  %v7677_v49 = vld [vmem:[#allocation50_spill] sm:$0xff]  ;;  %vm882_vm5 = vcmp.eq.s32.totalorder %v3960_v36, 1  ;;  %vm883_vm10 = vcmp.eq.s32.totalorder %v3964_v15, 1 }
  0xd4   : > { %7663 = vst [vmem:[#allocation164_spill] sm:$0xff] %v4476_v4  ;;  %7665 = vst [vmem:[#allocation165_spill] sm:$0xff] %v4481_v50  ;;  %v7670_v4 = vld [vmem:[#allocation28_spill] sm:$0xff]  ;;  %v7676_v50 = vld [vmem:[#allocation46_spill] sm:$0xff]  ;;  %v4521_v21 = vrot.slane %v7677_v49, %v7675_v58  ;;  %vm884_vm3 = vcmp.eq.s32.totalorder %v3980_v34, 1  ;;  %vm885_vm6 = vcmp.eq.s32.totalorder %v3984_v37, 1 }
  0xd5   : > { %v4517_v20 = vrot.slane %v7676_v50, %v7675_v58  ;;  %v7678_v9 = vld [vmem:[#allocation54_spill] sm:$0xff]  ;;  %vm886_vm14 = vcmp.eq.s32.totalorder %v3988_v7, 1  ;;  %vm887_vm1 = vcmp.eq.s32.totalorder %v3995_v19, 1  ;;  %vm888_vm12 = vcmp.eq.s32.totalorder %v3999_v46, 1  ;;  %v7698_v22 = vld [vmem:[#allocation52_spill] sm:$0xff] }
  0xd6   : > { %v4525_v17 = vrot.slane %v7678_v9, %v7675_v58  ;;  %v7679_v53 = vld [vmem:[#allocation58_spill] sm:$0xff]  ;;  %v4555_v9 = vsel %vm845_vm11, %v4521_v21, 0.0  ;;  %vm892_vm9 = vcmp.eq.s32.totalorder %v4018_v33, 1  ;;  %v4579_v2 = vsel %vm849_vm4, %v4521_v21, 0.0 }
  0xd7   : > { %v4529_v11 = vrot.slane %v7679_v53, %v7675_v58  ;;  %v4550_v50 = vsel %vm844_vm7, %v4517_v20, 0.0  ;;  %vm893_vm7 = vcmp.eq.s32.totalorder %v4025_v25, 1  ;;  %v4574_v58 = vsel %vm848_vm15, %v4517_v20, 0.0 }
  0xd8   : > { %v4560_v53 = vsel %vm846_vm8, %v4525_v17, 0.0  ;;  %vm7680_vm11 = vcmp.eq.s32.totalorder %v7668_v18, 1  ;;  %vm7681_vm8 = vcmp.eq.s32.totalorder %v7669_v47, 1  ;;  %vm7682_vm4 = vcmp.eq.s32.totalorder %v7670_v4, 1 }
  0xd9   : > { %v4565_v49 = vsel %vm847_vm2, %v4529_v11, 0.0  ;;  %v4584_v10 = vsel %vm7680_vm11, %v4525_v17, 0.0  ;;  %v4589_v41 = vsel %vm7681_vm8, %v4529_v11, 0.0  ;;  %v4598_v62 = vsel %vm7682_vm4, %v4517_v20, 0.0 }
  0xda   : > { %vm7683_vm11 = vcmp.eq.s32.totalorder %v3788_v63, 1  ;;  %vm7684_vm8 = vcmp.eq.s32.totalorder %v3791_v13, 1  ;;  %vm7685_vm13 = vcmp.eq.s32.totalorder %v3794_v28, 1  ;;  %vm7689_vm15 = vcmp.eq.s32.totalorder %v3810_v35, 1 }
  0xdb   : > { %v4603_v18 = vsel %vm7683_vm11, %v4521_v21, 0.0  ;;  %v4608_v47 = vsel %vm7684_vm8, %v4525_v17, 0.0  ;;  %v4613_v39 = vsel %vm7685_vm13, %v4529_v11, 0.0  ;;  %vm7686_vm11 = vcmp.eq.s32.totalorder %v3741_v44, 1 }
  0xdc   : > { %v4622_v63 = vsel %vm7686_vm11, %v4517_v20, 0.0  ;;  %vm7687_vm8 = vcmp.eq.s32.totalorder %v3804_v3, 1  ;;  %vm7688_vm13 = vcmp.eq.s32.totalorder %v3807_v61, 1  ;;  %v4637_v4 = vsel %vm7689_vm15, %v4529_v11, 0.0 }
  0xdd   : > { %v4627_v13 = vsel %vm7687_vm8, %v4521_v21, 0.0  ;;  %v4632_v28 = vsel %vm7688_vm13, %v4525_v17, 0.0  ;;  %vm904_vm2 = vcmp.eq.s32.totalorder %v4069_v56, 1  ;;  %vm905_vm11 = vcmp.eq.s32.totalorder %v4073_v24, 1 }
  0xde   : > { %vm7690_vm8 = vcmp.eq.s32.totalorder %v7671_v5, 1  ;;  %vm7692_vm13 = vcmp.eq.s32.totalorder %v3828_v8, 1  ;;  %vm7694_vm15 = vcmp.eq.s32.totalorder %v3831_v51, 1  ;;  %vm7696_vm4 = vcmp.eq.s32.totalorder %v3841_v60, 1 }
  0xdf   : > { %v4646_v3 = vsel %vm7690_vm8, %v4517_v20, 0.0  ;;  %v4651_v61 = vsel %vm7692_vm13, %v4521_v21, 0.0  ;;  %v4656_v35 = vsel %vm7694_vm15, %v4525_v17, 0.0  ;;  %v4661_v44 = vsel %vm7696_vm4, %v4529_v11, 0.0 }
  0xe0   : > { %7691 = vst [vmem:[#allocation46_spill] sm:$0xff] %v4646_v3  ;;  %7693 = vst [vmem:[#allocation50_spill] sm:$0xff] %v4651_v61  ;;  %vm7699_vm0 = vcmp.eq.s32.totalorder %v7698_v22, 1  ;;  %v7701_v3 = vld [vmem:[#allocation53_spill] sm:$0xff]  ;;  %v7704_v61 = vld [vmem:[#allocation55_spill] sm:$0xff]  ;;  %v4776_v36 = vsel %vm886_vm14, %v4525_v17, 0.0 }
  0xe1   : > { %7695 = vst [vmem:[#allocation54_spill] sm:$0xff] %v4656_v35  ;;  %7697 = vst [vmem:[#allocation58_spill] sm:$0xff] %v4661_v44  ;;  %v4666_v5 = vsel %vm7699_vm0, %v4517_v20, 0.0  ;;  %vm7702_vm8 = vcmp.eq.s32.totalorder %v7701_v3, 1  ;;  %vm7705_vm13 = vcmp.eq.s32.totalorder %v7704_v61, 1  ;;  %v7707_v35 = vld [vmem:[#allocation56_spill] sm:$0xff] }
  0xe2   : > { %7700 = vst [vmem:[#allocation166_spill] sm:$0xff] %v4666_v5  ;;  %v4671_v8 = vsel %vm7702_vm8, %v4521_v21, 0.0  ;;  %v4676_v51 = vsel %vm7705_vm13, %v4525_v17, 0.0  ;;  %vm7708_vm15 = vcmp.eq.s32.totalorder %v7707_v35, 1  ;;  %v7710_v44 = vld [vmem:[#allocation57_spill] sm:$0xff]  ;;  %v7712_v5 = vld [vmem:[#allocation59_spill] sm:$0xff] }
  0xe3   : > { %7703 = vst [vmem:[#allocation167_spill] sm:$0xff] %v4671_v8  ;;  %7706 = vst [vmem:[#allocation168_spill] sm:$0xff] %v4676_v51  ;;  %v4681_v60 = vsel %vm7708_vm15, %v4529_v11, 0.0  ;;  %vm7711_vm4 = vcmp.eq.s32.totalorder %v7710_v44, 1  ;;  %vm7713_vm0 = vcmp.eq.s32.totalorder %v7712_v5, 1  ;;  %v7714_v8 = vld [vmem:[#allocation60_spill] sm:$0xff] }
  0xe4   : > { %7709 = vst [vmem:[#allocation169_spill] sm:$0xff] %v4681_v60  ;;  %v4686_v22 = vsel %vm7711_vm4, %v4517_v20, 0.0  ;;  %v4691_v3 = vsel %vm7713_vm0, %v4521_v21, 0.0  ;;  %vm7715_vm8 = vcmp.eq.s32.totalorder %v7714_v8, 1  ;;  %v7716_v51 = vld [vmem:[#allocation61_spill] sm:$0xff]  ;;  %v7718_v60 = vld [vmem:[#allocation63_spill] sm:$0xff] }
  0xe5   : > { %v4696_v61 = vsel %vm7715_vm8, %v4525_v17, 0.0  ;;  %vm7717_vm13 = vcmp.eq.s32.totalorder %v7716_v51, 1  ;;  %vm7719_vm15 = vcmp.eq.s32.totalorder %v7718_v60, 1  ;;  %vm7720_vm4 = vcmp.eq.s32.totalorder %v3903_v6, 1 }
  0xe6   : > { %v4701_v35 = vsel %vm7717_vm13, %v4529_v11, 0.0  ;;  %v4706_v44 = vsel %vm7719_vm15, %v4517_v20, 0.0  ;;  %v4711_v5 = vsel %vm7720_vm4, %v4521_v21, 0.0  ;;  %vm7721_vm0 = vcmp.eq.s32.totalorder %v3907_v27, 1 }
  0xe7   : > { %v4716_v8 = vsel %vm7721_vm0, %v4525_v17, 0.0  ;;  %vm7722_vm8 = vcmp.eq.s32.totalorder %v3918_v1, 1  ;;  %vm7723_vm13 = vcmp.eq.s32.totalorder %v3922_v26, 1  ;;  %vm7724_vm15 = vcmp.eq.s32.totalorder %v3926_v45, 1 }
  0xe8   : > { %v4721_v51 = vsel %vm7722_vm8, %v4529_v11, 0.0  ;;  %v4726_v60 = vsel %vm7723_vm13, %v4517_v20, 0.0  ;;  %v4731_v6 = vsel %vm7724_vm15, %v4521_v21, 0.0  ;;  %vm7725_vm4 = vcmp.eq.s32.totalorder %v3937_v32, 1 }
  0xe9   : > { %v4736_v27 = vsel %vm7725_vm4, %v4525_v17, 0.0  ;;  %vm7726_vm0 = vcmp.eq.s32.totalorder %v3941_v31, 1  ;;  %vm7727_vm8 = vcmp.eq.s32.totalorder %v3945_v42, 1  ;;  %vm7728_vm13 = vcmp.eq.s32.totalorder %v3956_v0, 1 }
  0xea   : > { %v4741_v1 = vsel %vm7726_vm0, %v4529_v11, 0.0  ;;  %v4746_v26 = vsel %vm7727_vm8, %v4517_v20, 0.0  ;;  %v4751_v45 = vsel %vm7728_vm13, %v4521_v21, 0.0  ;;  %v4756_v32 = vsel %vm882_vm5, %v4525_v17, 0.0 }
  0xeb   : > { %v4761_v31 = vsel %vm883_vm10, %v4529_v11, 0.0  ;;  %v4766_v42 = vsel %vm884_vm3, %v4517_v20, 0.0  ;;  %v4771_v0 = vsel %vm885_vm6, %v4521_v21, 0.0  ;;  %v4781_v15 = vsel %vm887_vm1, %v4529_v11, 0.0 }
  0xec   : > { %v4786_v34 = vsel %vm888_vm12, %v4517_v20, 0.0  ;;  %vm7729_vm3 = vcmp.eq.s32.totalorder %v4003_v59, 1  ;;  %vm7730_vm6 = vcmp.eq.s32.totalorder %v4010_v16, 1  ;;  %vm7731_vm14 = vcmp.eq.s32.totalorder %v4014_v48, 1 }
  0xed   : > { %v4791_v37 = vsel %vm7729_vm3, %v4521_v21, 0.0  ;;  %v4796_v7 = vsel %vm7730_vm6, %v4525_v17, 0.0  ;;  %v4801_v19 = vsel %vm7731_vm14, %v4529_v11, 0.0  ;;  %v4806_v46 = vsel %vm892_vm9, %v4517_v20, 0.0 }
  0xee   : > { %v4811_v59 = vsel %vm893_vm7, %v4521_v21, 0.0  ;;  %vm7732_vm12 = vcmp.eq.s32.totalorder %v4029_v29, 1  ;;  %vm7733_vm1 = vcmp.eq.s32.totalorder %v7550_v30, 1  ;;  %vm7734_vm10 = vcmp.eq.s32.totalorder %v7557_v14, 1 }
  0xef   : > { %v4816_v16 = vsel %vm7732_vm12, %v4525_v17, 0.0  ;;  %v4821_v48 = vsel %vm7733_vm1, %v4529_v11, 0.0  ;;  %v4826_v33 = vsel %vm7734_vm10, %v4517_v20, 0.0  ;;  %vm7735_vm9 = vcmp.eq.s32.totalorder %v7558_v23, 1 }
  0xf0   : > { %v4831_v25 = vsel %vm7735_vm9, %v4521_v21, 0.0  ;;  %vm7736_vm5 = vcmp.eq.s32.totalorder %v4045_v38, 1  ;;  %vm7737_vm7 = vcmp.eq.s32.totalorder %v7559_v52, 1  ;;  %vm7738_vm15 = vcmp.eq.s32.totalorder %v7568_v12, 1 }
  0xf1   : > { %v4836_v29 = vsel %vm7736_vm5, %v4525_v17, 0.0  ;;  %v4841_v30 = vsel %vm7737_vm7, %v4529_v11, 0.0  ;;  %v4846_v14 = vsel %vm7738_vm15, %v4517_v20, 0.0  ;;  %vm7739_vm4 = vcmp.eq.s32.totalorder %v7569_v43, 1 }
  0xf2   : > { %v4851_v23 = vsel %vm7739_vm4, %v4521_v21, 0.0  ;;  %vm7740_vm0 = vcmp.eq.s32.totalorder %v4061_v57, 1  ;;  %vm7741_vm8 = vcmp.eq.s32.totalorder %v4065_v40, 1  ;;  %v4866_v12 = vsel %vm904_vm2, %v4517_v20, 0.0  ;;  %v7748_v20 = vld [vmem:[#allocation34_spill] sm:$0xff] }
  0xf3   : > { %v4856_v38 = vsel %vm7740_vm0, %v4525_v17, 0.0  ;;  %v4861_v52 = vsel %vm7741_vm8, %v4529_v11, 0.0  ;;  %7743 = vst [vmem:[#allocation171_spill] sm:$0xff] %v4866_v12  ;;  %v4871_v43 = vsel %vm905_vm11, %v4521_v21, 0.0  ;;  %vm7744_vm13 = vcmp.eq.s32.totalorder %v4077_v55, 1  ;;  %v7749_v21 = vld [vmem:[#allocation38_spill] sm:$0xff] }
  0xf4   : > { %7742 = vst [vmem:[#allocation170_spill] sm:$0xff] %v4861_v52  ;;  %v4876_v57 = vsel %vm7744_vm13, %v4525_v17, 0.0  ;;  %vm7746_vm3 = vcmp.eq.s32.totalorder %v4081_v54, 1  ;;  %v7747_v52 = vld [vmem:[#allocation30_spill] sm:$0xff]  ;;  %v4889_v12 = vadd.f32 %v4555_v9, %v7748_v20  ;;  %v4893_v24 = vadd.f32 %v4560_v53, %v7749_v21  ;;  %v7754_v54 = vld [vmem:[#allocation107_spill] sm:$0xff]  ;;  %v7758_v20 = vld [vmem:[#allocation109_spill] sm:$0xff] }
  0xf5   : > { %7745 = vst [vmem:[#allocation172_spill] sm:$0xff] %v4876_v57  ;;  %v4881_v40 = vsel %vm7746_vm3, %v4529_v11, 0.0  ;;  %v4885_v56 = vadd.f32 %v4550_v50, %v7747_v52  ;;  %v7750_v55 = vld [vmem:[#allocation42_spill] sm:$0xff]  ;;  %v4905_v52 = vadd.f32 %v4579_v2, %v7754_v54  ;;  %v7756_v50 = vld [vmem:[#allocation108_spill] sm:$0xff]  ;;  %v4913_v53 = vadd.f32 %v4589_v41, %v7758_v20  ;;  %v7766_v54 = vld [vmem:[#allocation113_spill] sm:$0xff] }
  0xf6   : > { %v4897_v17 = vadd.f32 %v4565_v49, %v7750_v55  ;;  %v7752_v57 = vld [vmem:[#allocation106_spill] sm:$0xff]  ;;  %v4909_v9 = vadd.f32 %v4584_v10, %v7756_v50  ;;  %v7762_v49 = vld [vmem:[#allocation111_spill] sm:$0xff]  ;;  %v4929_v10 = vadd.f32 %v4613_v39, %v7766_v54 }
  0xf7   : > { %v4901_v11 = vadd.f32 %v4574_v58, %v7752_v57  ;;  %7755 = vst [vmem:[#allocation38_spill] sm:$0xff] %v4905_v52  ;;  %7759 = vst [vmem:[#allocation106_spill] sm:$0xff] %v4913_v53  ;;  %v7760_v21 = vld [vmem:[#allocation110_spill] sm:$0xff]  ;;  %v4921_v58 = vadd.f32 %v4603_v18, %v7762_v49  ;;  %v7764_v57 = vld [vmem:[#allocation112_spill] sm:$0xff] }
  0xf8   : > { %7751 = vst [vmem:[#allocation30_spill] sm:$0xff] %v4897_v17  ;;  %7757 = vst [vmem:[#allocation42_spill] sm:$0xff] %v4909_v9  ;;  %v4917_v55 = vadd.f32 %v4598_v62, %v7760_v21  ;;  %v4925_v2 = vadd.f32 %v4608_v47, %v7764_v57  ;;  %v7768_v50 = vld [vmem:[#allocation114_spill] sm:$0xff]  ;;  %v7770_v20 = vld [vmem:[#allocation115_spill] sm:$0xff] }
  0xf9   : > { %7753 = vst [vmem:[#allocation34_spill] sm:$0xff] %v4901_v11  ;;  %7763 = vst [vmem:[#allocation108_spill] sm:$0xff] %v4921_v58  ;;  %v4933_v41 = vadd.f32 %v4622_v63, %v7768_v50  ;;  %v4937_v62 = vadd.f32 %v4627_v13, %v7770_v20  ;;  %v7772_v21 = vld [vmem:[#allocation116_spill] sm:$0xff]  ;;  %v7774_v49 = vld [vmem:[#allocation117_spill] sm:$0xff] }
  0xfa   : > { %7761 = vst [vmem:[#allocation107_spill] sm:$0xff] %v4917_v55  ;;  %7765 = vst [vmem:[#allocation109_spill] sm:$0xff] %v4925_v2  ;;  %v4941_v18 = vadd.f32 %v4632_v28, %v7772_v21  ;;  %v4945_v47 = vadd.f32 %v4637_v4, %v7774_v49  ;;  %v7776_v57 = vld [vmem:[#allocation118_spill] sm:$0xff]  ;;  %v7779_v54 = vld [vmem:[#allocation119_spill] sm:$0xff] }
  0xfb   : > { %7767 = vst [vmem:[#allocation110_spill] sm:$0xff] %v4929_v10  ;;  %7769 = vst [vmem:[#allocation111_spill] sm:$0xff] %v4933_v41  ;;  %v7777_v2 = vld [vmem:[#allocation46_spill] sm:$0xff]  ;;  %v7782_v50 = vld [vmem:[#allocation120_spill] sm:$0xff] }
  0xfc   : > { %7771 = vst [vmem:[#allocation112_spill] sm:$0xff] %v4937_v62  ;;  %7773 = vst [vmem:[#allocation113_spill] sm:$0xff] %v4941_v18  ;;  %v4949_v39 = vadd.f32 %v7777_v2, %v7776_v57  ;;  %v7780_v10 = vld [vmem:[#allocation50_spill] sm:$0xff]  ;;  %v7785_v20 = vld [vmem:[#allocation121_spill] sm:$0xff] }
  0xfd   : > { %7775 = vst [vmem:[#allocation114_spill] sm:$0xff] %v4945_v47  ;;  %v4953_v63 = vadd.f32 %v7780_v10, %v7779_v54  ;;  %v7783_v41 = vld [vmem:[#allocation54_spill] sm:$0xff]  ;;  %v7791_v49 = vld [vmem:[#allocation123_spill] sm:$0xff]  ;;  %v7794_v57 = vld [vmem:[#allocation124_spill] sm:$0xff] }
  0xfe   : > { %7778 = vst [vmem:[#allocation115_spill] sm:$0xff] %v4949_v39  ;;  %v4957_v13 = vadd.f32 %v7783_v41, %v7782_v50  ;;  %v7786_v62 = vld [vmem:[#allocation58_spill] sm:$0xff]  ;;  %v7792_v47 = vld [vmem:[#allocation167_spill] sm:$0xff]  ;;  %v7795_v39 = vld [vmem:[#allocation168_spill] sm:$0xff] }
  0xff   : > { %7781 = vst [vmem:[#allocation116_spill] sm:$0xff] %v4953_v63  ;;  %v4961_v28 = vadd.f32 %v7786_v62, %v7785_v20  ;;  %v7788_v21 = vld [vmem:[#allocation122_spill] sm:$0xff]  ;;  %v4969_v2 = vadd.f32 %v7792_v47, %v7791_v49  ;;  %v4973_v10 = vadd.f32 %v7795_v39, %v7794_v57  ;;  %v7797_v54 = vld [vmem:[#allocation125_spill] sm:$0xff]  ;;  %v7802_v20 = vld [vmem:[#allocation127_spill] sm:$0xff] }
 0x100   : > { %7784 = vst [vmem:[#allocation117_spill] sm:$0xff] %v4957_v13  ;;  %v7789_v18 = vld [vmem:[#allocation166_spill] sm:$0xff]  ;;  %v7798_v63 = vld [vmem:[#allocation169_spill] sm:$0xff]  ;;  %v7939_v9 = vld [vmem:[#allocation92_spill] sm:$0xff] }
 0x101   : > { %7787 = vst [vmem:[#allocation118_spill] sm:$0xff] %v4961_v28  ;;  %v4965_v4 = vadd.f32 %v7789_v18, %v7788_v21  ;;  %7793 = vst [vmem:[#allocation119_spill] sm:$0xff] %v4969_v2  ;;  %v4977_v41 = vadd.f32 %v7798_v63, %v7797_v54  ;;  %v7800_v50 = vld [vmem:[#allocation126_spill] sm:$0xff]  ;;  %v4985_v18 = vadd.f32 %v4691_v3, %v7802_v20  ;;  %v7804_v21 = vld [vmem:[#allocation128_spill] sm:$0xff] }
 0x102   : > { %7796 = vst [vmem:[#allocation50_spill] sm:$0xff] %v4973_v10  ;;  %v4981_v62 = vadd.f32 %v4686_v22, %v7800_v50  ;;  %v4989_v47 = vadd.f32 %v4696_v61, %v7804_v21  ;;  %v7806_v49 = vld [vmem:[#allocation129_spill] sm:$0xff]  ;;  %v7808_v57 = vld [vmem:[#allocation130_spill] sm:$0xff]  ;;  %v7810_v54 = vld [vmem:[#allocation131_spill] sm:$0xff] }
 0x103   : > { %7790 = vst [vmem:[#allocation46_spill] sm:$0xff] %v4965_v4  ;;  %7799 = vst [vmem:[#allocation120_spill] sm:$0xff] %v4977_v41  ;;  %v4993_v39 = vadd.f32 %v4701_v35, %v7806_v49  ;;  %v4997_v63 = vadd.f32 %v4706_v44, %v7808_v57  ;;  %v5001_v22 = vadd.f32 %v4711_v5, %v7810_v54  ;;  %v7812_v50 = vld [vmem:[#allocation132_spill] sm:$0xff]  ;;  %v7814_v20 = vld [vmem:[#allocation133_spill] sm:$0xff] }
 0x104   : > { %7801 = vst [vmem:[#allocation54_spill] sm:$0xff] %v4981_v62  ;;  %7803 = vst [vmem:[#allocation121_spill] sm:$0xff] %v4985_v18  ;;  %v5005_v3 = vadd.f32 %v4716_v8, %v7812_v50  ;;  %v5009_v61 = vadd.f32 %v4721_v51, %v7814_v20  ;;  %v7816_v21 = vld [vmem:[#allocation134_spill] sm:$0xff]  ;;  %v7818_v49 = vld [vmem:[#allocation135_spill] sm:$0xff] }
 0x105   : > { %7805 = vst [vmem:[#allocation58_spill] sm:$0xff] %v4989_v47  ;;  %7807 = vst [vmem:[#allocation122_spill] sm:$0xff] %v4993_v39  ;;  %v5013_v35 = vadd.f32 %v4726_v60, %v7816_v21  ;;  %v5017_v44 = vadd.f32 %v4731_v6, %v7818_v49  ;;  %v7820_v57 = vld [vmem:[#allocation136_spill] sm:$0xff]  ;;  %v7822_v54 = vld [vmem:[#allocation137_spill] sm:$0xff] }
 0x106   : > { %7809 = vst [vmem:[#allocation166_spill] sm:$0xff] %v4997_v63  ;;  %7811 = vst [vmem:[#allocation123_spill] sm:$0xff] %v5001_v22  ;;  %v5021_v5 = vadd.f32 %v4736_v27, %v7820_v57  ;;  %v5025_v8 = vadd.f32 %v4741_v1, %v7822_v54  ;;  %v7824_v50 = vld [vmem:[#allocation138_spill] sm:$0xff]  ;;  %v7826_v20 = vld [vmem:[#allocation139_spill] sm:$0xff] }
 0x107   : > { %7813 = vst [vmem:[#allocation167_spill] sm:$0xff] %v5005_v3  ;;  %7815 = vst [vmem:[#allocation124_spill] sm:$0xff] %v5009_v61  ;;  %v5029_v51 = vadd.f32 %v4746_v26, %v7824_v50  ;;  %v5033_v60 = vadd.f32 %v4751_v45, %v7826_v20  ;;  %v7828_v21 = vld [vmem:[#allocation140_spill] sm:$0xff]  ;;  %v7830_v49 = vld [vmem:[#allocation141_spill] sm:$0xff] }
 0x108   : > { %7817 = vst [vmem:[#allocation168_spill] sm:$0xff] %v5013_v35  ;;  %7819 = vst [vmem:[#allocation125_spill] sm:$0xff] %v5017_v44  ;;  %v5037_v6 = vadd.f32 %v4756_v32, %v7828_v21  ;;  %v5041_v27 = vadd.f32 %v4761_v31, %v7830_v49  ;;  %v7832_v57 = vld [vmem:[#allocation142_spill] sm:$0xff]  ;;  %v7834_v54 = vld [vmem:[#allocation143_spill] sm:$0xff] }
 0x109   : > { %7821 = vst [vmem:[#allocation169_spill] sm:$0xff] %v5021_v5  ;;  %7823 = vst [vmem:[#allocation126_spill] sm:$0xff] %v5025_v8  ;;  %v5045_v1 = vadd.f32 %v4766_v42, %v7832_v57  ;;  %v5049_v26 = vadd.f32 %v4771_v0, %v7834_v54  ;;  %v7836_v50 = vld [vmem:[#allocation144_spill] sm:$0xff]  ;;  %v7838_v20 = vld [vmem:[#allocation145_spill] sm:$0xff] }
 0x10a   : > { %7825 = vst [vmem:[#allocation127_spill] sm:$0xff] %v5029_v51  ;;  %7827 = vst [vmem:[#allocation128_spill] sm:$0xff] %v5033_v60  ;;  %v5053_v45 = vadd.f32 %v4776_v36, %v7836_v50  ;;  %v5057_v32 = vadd.f32 %v4781_v15, %v7838_v20  ;;  %v7840_v21 = vld [vmem:[#allocation146_spill] sm:$0xff]  ;;  %v7842_v49 = vld [vmem:[#allocation147_spill] sm:$0xff] }
 0x10b   : > { %7829 = vst [vmem:[#allocation129_spill] sm:$0xff] %v5037_v6  ;;  %7831 = vst [vmem:[#allocation130_spill] sm:$0xff] %v5041_v27  ;;  %v5061_v31 = vadd.f32 %v4786_v34, %v7840_v21  ;;  %v5065_v42 = vadd.f32 %v4791_v37, %v7842_v49  ;;  %v7844_v57 = vld [vmem:[#allocation148_spill] sm:$0xff]  ;;  %v7846_v54 = vld [vmem:[#allocation149_spill] sm:$0xff] }
 0x10c   : > { %7833 = vst [vmem:[#allocation131_spill] sm:$0xff] %v5045_v1  ;;  %7835 = vst [vmem:[#allocation132_spill] sm:$0xff] %v5049_v26  ;;  %v5069_v0 = vadd.f32 %v4796_v7, %v7844_v57  ;;  %v5073_v36 = vadd.f32 %v4801_v19, %v7846_v54  ;;  %v7848_v50 = vld [vmem:[#allocation150_spill] sm:$0xff]  ;;  %v7850_v20 = vld [vmem:[#allocation151_spill] sm:$0xff] }
 0x10d   : > { %7837 = vst [vmem:[#allocation133_spill] sm:$0xff] %v5053_v45  ;;  %7839 = vst [vmem:[#allocation134_spill] sm:$0xff] %v5057_v32  ;;  %v5077_v15 = vadd.f32 %v4806_v46, %v7848_v50  ;;  %v5081_v34 = vadd.f32 %v4811_v59, %v7850_v20  ;;  %v7852_v21 = vld [vmem:[#allocation152_spill] sm:$0xff]  ;;  %v7854_v49 = vld [vmem:[#allocation153_spill] sm:$0xff] }
 0x10e   : > { %7841 = vst [vmem:[#allocation135_spill] sm:$0xff] %v5061_v31  ;;  %7843 = vst [vmem:[#allocation136_spill] sm:$0xff] %v5065_v42  ;;  %v5085_v37 = vadd.f32 %v4816_v16, %v7852_v21  ;;  %v5089_v7 = vadd.f32 %v4821_v48, %v7854_v49  ;;  %v7856_v57 = vld [vmem:[#allocation154_spill] sm:$0xff]  ;;  %v7858_v54 = vld [vmem:[#allocation155_spill] sm:$0xff] }
 0x10f   : > { %7845 = vst [vmem:[#allocation137_spill] sm:$0xff] %v5069_v0  ;;  %7847 = vst [vmem:[#allocation138_spill] sm:$0xff] %v5073_v36  ;;  %v5093_v19 = vadd.f32 %v4826_v33, %v7856_v57  ;;  %v5097_v46 = vadd.f32 %v4831_v25, %v7858_v54  ;;  %v7860_v50 = vld [vmem:[#allocation156_spill] sm:$0xff]  ;;  %v7862_v20 = vld [vmem:[#allocation157_spill] sm:$0xff] }
 0x110   : > { %7849 = vst [vmem:[#allocation139_spill] sm:$0xff] %v5077_v15  ;;  %7851 = vst [vmem:[#allocation140_spill] sm:$0xff] %v5081_v34  ;;  %v5101_v59 = vadd.f32 %v4836_v29, %v7860_v50  ;;  %v5105_v16 = vadd.f32 %v4841_v30, %v7862_v20  ;;  %v7864_v21 = vld [vmem:[#allocation158_spill] sm:$0xff]  ;;  %v7866_v49 = vld [vmem:[#allocation159_spill] sm:$0xff] }
 0x111   : > { %7853 = vst [vmem:[#allocation141_spill] sm:$0xff] %v5085_v37  ;;  %7855 = vst [vmem:[#allocation142_spill] sm:$0xff] %v5089_v7  ;;  %v5109_v48 = vadd.f32 %v4846_v14, %v7864_v21  ;;  %v5113_v33 = vadd.f32 %v4851_v23, %v7866_v49  ;;  %v7868_v57 = vld [vmem:[#allocation160_spill] sm:$0xff]  ;;  %v7870_v54 = vld [vmem:[#allocation161_spill] sm:$0xff] }
 0x112   : > { %7857 = vst [vmem:[#allocation143_spill] sm:$0xff] %v5093_v19  ;;  %7859 = vst [vmem:[#allocation144_spill] sm:$0xff] %v5097_v46  ;;  %v5117_v25 = vadd.f32 %v4856_v38, %v7868_v57  ;;  %v7871_v46 = vld [vmem:[#allocation170_spill] sm:$0xff]  ;;  %v7876_v20 = vld [vmem:[#allocation163_spill] sm:$0xff] }
 0x113   : > { %7861 = vst [vmem:[#allocation145_spill] sm:$0xff] %v5101_v59  ;;  %7863 = vst [vmem:[#allocation146_spill] sm:$0xff] %v5105_v16  ;;  %v5121_v29 = vadd.f32 %v7871_v46, %v7870_v54  ;;  %v7873_v50 = vld [vmem:[#allocation162_spill] sm:$0xff]  ;;  %v7874_v59 = vld [vmem:[#allocation171_spill] sm:$0xff]  ;;  %v5129_v14 = vadd.f32 %v4871_v43, %v7876_v20 }
 0x114   : > { %7865 = vst [vmem:[#allocation147_spill] sm:$0xff] %v5109_v48  ;;  %7867 = vst [vmem:[#allocation148_spill] sm:$0xff] %v5113_v33  ;;  %v5125_v30 = vadd.f32 %v7874_v59, %v7873_v50  ;;  %v7878_v21 = vld [vmem:[#allocation164_spill] sm:$0xff]  ;;  %v7881_v49 = vld [vmem:[#allocation165_spill] sm:$0xff] }
 0x115   : > { %7869 = vst [vmem:[#allocation149_spill] sm:$0xff] %v5117_v25  ;;  %7872 = vst [vmem:[#allocation150_spill] sm:$0xff] %v5121_v29  ;;  %v7879_v48 = vld [vmem:[#allocation172_spill] sm:$0xff]  ;;  %v5137_v38 = vadd.f32 %v4881_v40, %v7881_v49  ;;  %v7883_v57 = vld [vmem:[#allocation26_spill] sm:$0xff] }
 0x116   : > { %7875 = vst [vmem:[#allocation151_spill] sm:$0xff] %v5125_v30  ;;  %7877 = vst [vmem:[#allocation152_spill] sm:$0xff] %v5129_v14  ;;  %v5133_v23 = vadd.f32 %v7879_v48, %v7878_v21  ;;  %vm1052_vm2 = vcmp.eq.s32.totalorder %v7883_v57, 16  ;;  %v7884_v46 = vld [vmem:[#allocation31_spill] sm:$0xff]  ;;  %v7885_v54 = vld [vmem:[#allocation32_spill] sm:$0xff] }
 0x117   : > { %7882 = vst [vmem:[#allocation154_spill] sm:$0xff] %v5137_v38  ;;  %vm1053_vm11 = vcmp.eq.s32.totalorder %v7884_v46, 16  ;;  %vm1054_vm6 = vcmp.eq.s32.totalorder %v7885_v54, 16  ;;  %v7886_v59 = vld [vmem:[#allocation33_spill] sm:$0xff]  ;;  %v7887_v50 = vld [vmem:[#allocation27_spill] sm:$0xff]  ;;  %v7889_v20 = vld [vmem:[#allocation36_spill] sm:$0xff] }
 0x118   : > { %7880 = vst [vmem:[#allocation153_spill] sm:$0xff] %v5133_v23  ;;  %vm1055_vm14 = vcmp.eq.s32.totalorder %v7886_v59, 16  ;;  %vm1056_vm12 = vcmp.eq.s32.totalorder %v7887_v50, 16  ;;  %v7888_v43 = vld [vmem:[#allocation35_spill] sm:$0xff]  ;;  %v7890_v48 = vld [vmem:[#allocation37_spill] sm:$0xff]  ;;  %v7891_v21 = vld [vmem:[#allocation28_spill] sm:$0xff] }
 0x119   : > { %vm1057_vm1 = vcmp.eq.s32.totalorder %v7888_v43, 16  ;;  %v7892_v40 = vld [vmem:[#allocation39_spill] sm:$0xff]  ;;  %v7893_v49 = vld [vmem:[#allocation40_spill] sm:$0xff]  ;;  %v7894_v38 = vld [vmem:[#allocation41_spill] sm:$0xff] }
 0x11a   : > { %v7895_v23 = vld [vmem:[#allocation29_spill] sm:$0xff]  ;;  %v7896_v14 = vld [vmem:[#allocation43_spill] sm:$0xff]  ;;  %v7897_v30 = vld [vmem:[#allocation44_spill] sm:$0xff]  ;;  %vm7957_vm5 = vcmp.eq.s32.totalorder %v7894_v38, 16 }
 0x11b   : > { %v7898_v29 = vld [vmem:[#allocation45_spill] sm:$0xff]  ;;  %v7899_v25 = vld [vmem:[#allocation47_spill] sm:$0xff]  ;;  %v7900_v33 = vld [vmem:[#allocation48_spill] sm:$0xff] }
 0x11c   : > { %v7901_v16 = vld [vmem:[#allocation49_spill] sm:$0xff]  ;;  %v7902_v19 = vld [vmem:[#allocation51_spill] sm:$0xff]  ;;  %v7903_v7 = vld [vmem:[#allocation52_spill] sm:$0xff] }
 0x11d   : > { %v7904_v37 = vld [vmem:[#allocation53_spill] sm:$0xff]  ;;  %v7905_v34 = vld [vmem:[#allocation55_spill] sm:$0xff]  ;;  %v7906_v15 = vld [vmem:[#allocation56_spill] sm:$0xff]  ;;  %vm7977_vm9 = vcmp.eq.s32.totalorder %v7903_v7, 16 }
 0x11e   : > { %v7907_v36 = vld [vmem:[#allocation57_spill] sm:$0xff]  ;;  %v7908_v0 = vld [vmem:[#allocation59_spill] sm:$0xff]  ;;  %v7909_v42 = vld [vmem:[#allocation60_spill] sm:$0xff] }
 0x11f   : > { %v7910_v31 = vld [vmem:[#allocation61_spill] sm:$0xff]  ;;  %v7911_v32 = vld [vmem:[#allocation63_spill] sm:$0xff]  ;;  %v7912_v45 = vld [vmem:[#allocation64_spill] sm:$0xff] }
 0x120   : > { %v7913_v26 = vld [vmem:[#allocation65_spill] sm:$0xff]  ;;  %v7914_v1 = vld [vmem:[#allocation67_spill] sm:$0xff]  ;;  %v7916_v6 = vld [vmem:[#allocation62_spill] sm:$0xff] }
 0x121   : > { %v7915_v27 = vld [vmem:[#allocation17_spill] sm:$0xff]  ;;  %v7917_v51 = vld [vmem:[#allocation66_spill] sm:$0xff]  ;;  %v7920_v3 = vld [vmem:[#allocation68_spill] sm:$0xff] }
 0x122   : > { %v5173_v60 = vrot.slane %v7916_v6, %v7915_v27  ;;  %v5177_v8 = vrot.slane %v7917_v51, %v7915_v27  ;;  %v7918_v5 = vld [vmem:[#allocation70_spill] sm:$0xff]  ;;  %v7921_v22 = vld [vmem:[#allocation69_spill] sm:$0xff]  ;;  %v7922_v63 = vld [vmem:[#allocation71_spill] sm:$0xff] }
 0x123   : > { %v5181_v44 = vrot.slane %v7918_v5, %v7915_v27  ;;  %v7919_v35 = vld [vmem:[#allocation74_spill] sm:$0xff]  ;;  %v7923_v6 = vld [vmem:[#allocation72_spill] sm:$0xff]  ;;  %v7924_v39 = vld [vmem:[#allocation73_spill] sm:$0xff] }
 0x124   : > { %v5185_v61 = vrot.slane %v7919_v35, %v7915_v27  ;;  %v7925_v51 = vld [vmem:[#allocation75_spill] sm:$0xff]  ;;  %v7926_v47 = vld [vmem:[#allocation76_spill] sm:$0xff]  ;;  %v7927_v5 = vld [vmem:[#allocation77_spill] sm:$0xff]  ;;  %v5206_v28 = vsel %vm1052_vm2, %v5173_v60, 0.0  ;;  %v5211_v13 = vsel %vm1053_vm11, %v5177_v8, 0.0  ;;  %v5230_v46 = vsel %vm1056_vm12, %v5173_v60, 0.0 }
 0x125   : > { %vm1090_vm3 = vcmp.eq.s32.totalorder %v7926_v47, 16  ;;  %vm1091_vm13 = vcmp.eq.s32.totalorder %v7927_v5, 16  ;;  %v7928_v18 = vld [vmem:[#allocation79_spill] sm:$0xff]  ;;  %v7929_v35 = vld [vmem:[#allocation80_spill] sm:$0xff]  ;;  %v7930_v27 = vld [vmem:[#allocation81_spill] sm:$0xff]  ;;  %v5216_v58 = vsel %vm1054_vm6, %v5181_v44, 0.0 }
 0x126   : > { %vm1092_vm8 = vcmp.eq.s32.totalorder %v7928_v18, 16  ;;  %vm1093_vm0 = vcmp.eq.s32.totalorder %v7929_v35, 16  ;;  %vm1094_vm15 = vcmp.eq.s32.totalorder %v7930_v27, 16  ;;  %v7931_v62 = vld [vmem:[#allocation83_spill] sm:$0xff]  ;;  %v7932_v41 = vld [vmem:[#allocation84_spill] sm:$0xff]  ;;  %v7933_v10 = vld [vmem:[#allocation85_spill] sm:$0xff] }
 0x127   : > { %vm1095_vm4 = vcmp.eq.s32.totalorder %v7931_v62, 16  ;;  %vm1096_vm7 = vcmp.eq.s32.totalorder %v7932_v41, 16  ;;  %v7934_v2 = vld [vmem:[#allocation87_spill] sm:$0xff]  ;;  %v7935_v4 = vld [vmem:[#allocation88_spill] sm:$0xff]  ;;  %v5221_v55 = vsel %vm1055_vm14, %v5185_v61, 0.0  ;;  %v7937_v53 = vld [vmem:[#allocation89_spill] sm:$0xff] }
 0x128   : > { %7936 = vst [vmem:[#allocation155_spill] sm:$0xff] %v5221_v55  ;;  %vm1100_vm10 = vcmp.eq.s32.totalorder %v7937_v53, 16  ;;  %v7938_v57 = vld [vmem:[#allocation91_spill] sm:$0xff]  ;;  %v7940_v52 = vld [vmem:[#allocation93_spill] sm:$0xff]  ;;  %7941 = vst [vmem:[#allocation156_spill] sm:$0xff] %v5230_v46  ;;  %v5235_v54 = vsel %vm1057_vm1, %v5177_v8, 0.0 }
 0x129   : > { %vm1101_vm2 = vcmp.eq.s32.totalorder %v7938_v57, 16  ;;  %7942 = vst [vmem:[#allocation157_spill] sm:$0xff] %v5235_v54  ;;  %vm7943_vm11 = vcmp.eq.s32.totalorder %v7889_v20, 16  ;;  %vm7945_vm6 = vcmp.eq.s32.totalorder %v7890_v48, 16  ;;  %v7947_v55 = vld [vmem:[#allocation94_spill] sm:$0xff]  ;;  %v7948_v50 = vld [vmem:[#allocation95_spill] sm:$0xff] }
 0x12a   : > { %v5240_v59 = vsel %vm7943_vm11, %v5181_v44, 0.0  ;;  %v5245_v11 = vsel %vm7945_vm6, %v5185_v61, 0.0  ;;  %v7949_v46 = vld [vmem:[#allocation96_spill] sm:$0xff]  ;;  %v7950_v17 = vld [vmem:[#allocation97_spill] sm:$0xff]  ;;  %vm7951_vm1 = vcmp.eq.s32.totalorder %v7891_v21, 16  ;;  %vm7953_vm11 = vcmp.eq.s32.totalorder %v7892_v40, 16 }
 0x12b   : > { %7944 = vst [vmem:[#allocation158_spill] sm:$0xff] %v5240_v59  ;;  %7946 = vst [vmem:[#allocation159_spill] sm:$0xff] %v5245_v11  ;;  %v5254_v43 = vsel %vm7951_vm1, %v5173_v60, 0.0  ;;  %v5259_v20 = vsel %vm7953_vm11, %v5177_v8, 0.0  ;;  %vm7955_vm6 = vcmp.eq.s32.totalorder %v7893_v49, 16  ;;  %v5269_v11 = vsel %vm7957_vm5, %v5185_v61, 0.0 }
 0x12c   : > { %7952 = vst [vmem:[#allocation160_spill] sm:$0xff] %v5254_v43  ;;  %7954 = vst [vmem:[#allocation161_spill] sm:$0xff] %v5259_v20  ;;  %v5264_v48 = vsel %vm7955_vm6, %v5181_v44, 0.0  ;;  %v7959_v59 = vld [vmem:[#allocation98_spill] sm:$0xff]  ;;  %v7960_v21 = vld [vmem:[#allocation99_spill] sm:$0xff]  ;;  %vm7963_vm11 = vcmp.eq.s32.totalorder %v7895_v23, 16 }
 0x12d   : > { %7956 = vst [vmem:[#allocation170_spill] sm:$0xff] %v5264_v48  ;;  %7958 = vst [vmem:[#allocation162_spill] sm:$0xff] %v5269_v11  ;;  %v7961_v43 = vld [vmem:[#allocation100_spill] sm:$0xff]  ;;  %v7962_v54 = vld [vmem:[#allocation101_spill] sm:$0xff]  ;;  %v5278_v40 = vsel %vm7963_vm11, %v5173_v60, 0.0  ;;  %vm7965_vm6 = vcmp.eq.s32.totalorder %v7896_v14, 16 }
 0x12e   : > { %7964 = vst [vmem:[#allocation171_spill] sm:$0xff] %v5278_v40  ;;  %v5283_v49 = vsel %vm7965_vm6, %v5177_v8, 0.0  ;;  %vm7966_vm5 = vcmp.eq.s32.totalorder %v7897_v30, 16  ;;  %vm7967_vm12 = vcmp.eq.s32.totalorder %v7898_v29, 16  ;;  %v7969_v48 = vld [vmem:[#allocation102_spill] sm:$0xff]  ;;  %v7970_v23 = vld [vmem:[#allocation103_spill] sm:$0xff] }
 0x12f   : > { %v5288_v38 = vsel %vm7966_vm5, %v5181_v44, 0.0  ;;  %v5293_v11 = vsel %vm7967_vm12, %v5185_v61, 0.0  ;;  %vm1112_vm14 = vcmp.eq.s32.totalorder %v7969_v48, 16  ;;  %vm1113_vm11 = vcmp.eq.s32.totalorder %v7970_v23, 16  ;;  %v7971_v40 = vld [vmem:[#allocation104_spill] sm:$0xff]  ;;  %v7972_v20 = vld [vmem:[#allocation105_spill] sm:$0xff] }
 0x130   : > { %7968 = vst [vmem:[#allocation163_spill] sm:$0xff] %v5293_v11  ;;  %vm7973_vm6 = vcmp.eq.s32.totalorder %v7899_v25, 16  ;;  %vm7974_vm5 = vcmp.eq.s32.totalorder %v7900_v33, 16  ;;  %vm7975_vm12 = vcmp.eq.s32.totalorder %v7901_v16, 16  ;;  %vm7976_vm1 = vcmp.eq.s32.totalorder %v7902_v19, 16 }
 0x131   : > { %v5302_v14 = vsel %vm7973_vm6, %v5173_v60, 0.0  ;;  %v5307_v30 = vsel %vm7974_vm5, %v5177_v8, 0.0  ;;  %v5312_v29 = vsel %vm7975_vm12, %v5181_v44, 0.0  ;;  %v5317_v11 = vsel %vm7976_vm1, %v5185_v61, 0.0 }
 0x132   : > { %v5322_v25 = vsel %vm7977_vm9, %v5173_v60, 0.0  ;;  %vm7978_vm6 = vcmp.eq.s32.totalorder %v7904_v37, 16  ;;  %vm7979_vm5 = vcmp.eq.s32.totalorder %v7905_v34, 16  ;;  %vm7980_vm12 = vcmp.eq.s32.totalorder %v7906_v15, 16 }
 0x133   : > { %v5327_v33 = vsel %vm7978_vm6, %v5177_v8, 0.0  ;;  %v5332_v16 = vsel %vm7979_vm5, %v5181_v44, 0.0  ;;  %v5337_v19 = vsel %vm7980_vm12, %v5185_v61, 0.0  ;;  %vm7981_vm1 = vcmp.eq.s32.totalorder %v7907_v36, 16 }
 0x134   : > { %v5342_v7 = vsel %vm7981_vm1, %v5173_v60, 0.0  ;;  %vm7982_vm9 = vcmp.eq.s32.totalorder %v7908_v0, 16  ;;  %vm7983_vm6 = vcmp.eq.s32.totalorder %v7909_v42, 16  ;;  %vm7984_vm5 = vcmp.eq.s32.totalorder %v7910_v31, 16 }
 0x135   : > { %v5347_v37 = vsel %vm7982_vm9, %v5177_v8, 0.0  ;;  %v5352_v34 = vsel %vm7983_vm6, %v5181_v44, 0.0  ;;  %v5357_v15 = vsel %vm7984_vm5, %v5185_v61, 0.0  ;;  %vm7985_vm12 = vcmp.eq.s32.totalorder %v7911_v32, 16 }
 0x136   : > { %v5362_v36 = vsel %vm7985_vm12, %v5173_v60, 0.0  ;;  %vm7986_vm1 = vcmp.eq.s32.totalorder %v7912_v45, 16  ;;  %vm7987_vm9 = vcmp.eq.s32.totalorder %v7913_v26, 16  ;;  %vm7988_vm6 = vcmp.eq.s32.totalorder %v7914_v1, 16 }
 0x137   : > { %v5367_v0 = vsel %vm7986_vm1, %v5177_v8, 0.0  ;;  %v5372_v42 = vsel %vm7987_vm9, %v5181_v44, 0.0  ;;  %v5377_v31 = vsel %vm7988_vm6, %v5185_v61, 0.0  ;;  %vm7989_vm5 = vcmp.eq.s32.totalorder %v7920_v3, 16 }
 0x138   : > { %v5382_v32 = vsel %vm7989_vm5, %v5173_v60, 0.0  ;;  %vm7990_vm12 = vcmp.eq.s32.totalorder %v7921_v22, 16  ;;  %vm7991_vm1 = vcmp.eq.s32.totalorder %v7922_v63, 16  ;;  %vm7992_vm9 = vcmp.eq.s32.totalorder %v7923_v6, 16 }
 0x139   : > { %v5387_v45 = vsel %vm7990_vm12, %v5177_v8, 0.0  ;;  %v5392_v26 = vsel %vm7991_vm1, %v5181_v44, 0.0  ;;  %v5397_v1 = vsel %vm7992_vm9, %v5185_v61, 0.0  ;;  %vm7993_vm6 = vcmp.eq.s32.totalorder %v7924_v39, 16 }
 0x13a   : > { %v5402_v3 = vsel %vm7993_vm6, %v5173_v60, 0.0  ;;  %vm7994_vm5 = vcmp.eq.s32.totalorder %v7925_v51, 16  ;;  %v5412_v63 = vsel %vm1090_vm3, %v5181_v44, 0.0  ;;  %v5417_v6 = vsel %vm1091_vm13, %v5185_v61, 0.0 }
 0x13b   : > { %v5407_v22 = vsel %vm7994_vm5, %v5177_v8, 0.0  ;;  %v5422_v39 = vsel %vm1092_vm8, %v5173_v60, 0.0  ;;  %v5427_v51 = vsel %vm1093_vm0, %v5177_v8, 0.0  ;;  %v5432_v47 = vsel %vm1094_vm15, %v5181_v44, 0.0 }
 0x13c   : > { %v5437_v5 = vsel %vm1095_vm4, %v5185_v61, 0.0  ;;  %v5442_v18 = vsel %vm1096_vm7, %v5173_v60, 0.0  ;;  %vm7995_vm8 = vcmp.eq.s32.totalorder %v7933_v10, 16  ;;  %vm7996_vm0 = vcmp.eq.s32.totalorder %v7934_v2, 16 }
 0x13d   : > { %v5447_v35 = vsel %vm7995_vm8, %v5177_v8, 0.0  ;;  %v5452_v27 = vsel %vm7996_vm0, %v5181_v44, 0.0  ;;  %vm7997_vm15 = vcmp.eq.s32.totalorder %v7935_v4, 16  ;;  %v5462_v41 = vsel %vm1100_vm10, %v5173_v60, 0.0 }
 0x13e   : > { %v5457_v62 = vsel %vm7997_vm15, %v5185_v61, 0.0  ;;  %v5467_v10 = vsel %vm1101_vm2, %v5177_v8, 0.0  ;;  %vm7998_vm7 = vcmp.eq.s32.totalorder %v7939_v9, 16  ;;  %vm7999_vm4 = vcmp.eq.s32.totalorder %v7940_v52, 16 }
 0x13f   : > { %v5472_v2 = vsel %vm7998_vm7, %v5181_v44, 0.0  ;;  %v5477_v4 = vsel %vm7999_vm4, %v5185_v61, 0.0  ;;  %vm8000_vm13 = vcmp.eq.s32.totalorder %v7947_v55, 16  ;;  %vm8001_vm10 = vcmp.eq.s32.totalorder %v7948_v50, 16 }
 0x140   : > { %v5482_v53 = vsel %vm8000_vm13, %v5173_v60, 0.0  ;;  %v5487_v57 = vsel %vm8001_vm10, %v5177_v8, 0.0  ;;  %vm8002_vm3 = vcmp.eq.s32.totalorder %v7949_v46, 16  ;;  %vm8003_vm2 = vcmp.eq.s32.totalorder %v7950_v17, 16 }
 0x141   : > { %v5492_v9 = vsel %vm8002_vm3, %v5181_v44, 0.0  ;;  %v5497_v52 = vsel %vm8003_vm2, %v5185_v61, 0.0  ;;  %vm8004_vm12 = vcmp.eq.s32.totalorder %v7959_v59, 16  ;;  %vm8005_vm1 = vcmp.eq.s32.totalorder %v7960_v21, 16 }
 0x142   : > { %v5502_v55 = vsel %vm8004_vm12, %v5173_v60, 0.0  ;;  %v5507_v50 = vsel %vm8005_vm1, %v5177_v8, 0.0  ;;  %vm8006_vm9 = vcmp.eq.s32.totalorder %v7961_v43, 16  ;;  %vm8007_vm6 = vcmp.eq.s32.totalorder %v7962_v54, 16 }
 0x143   : > { %v5512_v46 = vsel %vm8006_vm9, %v5181_v44, 0.0  ;;  %v5517_v17 = vsel %vm8007_vm6, %v5185_v61, 0.0  ;;  %v5522_v59 = vsel %vm1112_vm14, %v5173_v60, 0.0  ;;  %v5527_v21 = vsel %vm1113_vm11, %v5177_v8, 0.0 }
 0x144   : > { %8008 = vst [vmem:[#allocation164_spill] sm:$0xff] %v5527_v21  ;;  %vm8009_vm5 = vcmp.eq.s32.totalorder %v7971_v40, 16  ;;  %vm8011_vm8 = vcmp.eq.s32.totalorder %v7972_v20, 16  ;;  %v5541_v48 = vadd.f32 %v5206_v28, %v4885_v56  ;;  %v5545_v60 = vadd.f32 %v5211_v13, %v4889_v12  ;;  %v8016_v40 = vld [vmem:[#allocation30_spill] sm:$0xff]  ;;  %v8020_v20 = vld [vmem:[#allocation156_spill] sm:$0xff]  ;;  %v8023_v21 = vld [vmem:[#allocation157_spill] sm:$0xff] }
 0x145   : > { %v5532_v43 = vsel %vm8009_vm5, %v5181_v44, 0.0  ;;  %v5537_v54 = vsel %vm8011_vm8, %v5185_v61, 0.0  ;;  %v5549_v8 = vadd.f32 %v5216_v58, %v4893_v24  ;;  %v8017_v44 = vld [vmem:[#allocation155_spill] sm:$0xff]  ;;  %v8025_v28 = vld [vmem:[#allocation42_spill] sm:$0xff] }
 0x146   : > { %8010 = vst [vmem:[#allocation172_spill] sm:$0xff] %v5532_v43  ;;  %8012 = vst [vmem:[#allocation165_spill] sm:$0xff] %v5537_v54  ;;  %v5553_v23 = vadd.f32 %v8017_v44, %v8016_v40  ;;  %v8019_v43 = vld [vmem:[#allocation34_spill] sm:$0xff]  ;;  %v8031_v58 = vld [vmem:[#allocation107_spill] sm:$0xff] }
 0x147   : > { %8013 = vst [vmem:[#allocation62_spill] sm:$0xff] %v5541_v48  ;;  %8014 = vst [vmem:[#allocation66_spill] sm:$0xff] %v5545_v60  ;;  %v5557_v61 = vadd.f32 %v8020_v20, %v8019_v43  ;;  %v8022_v54 = vld [vmem:[#allocation38_spill] sm:$0xff]  ;;  %v8029_v60 = vld [vmem:[#allocation159_spill] sm:$0xff] }
 0x148   : > { %8015 = vst [vmem:[#allocation70_spill] sm:$0xff] %v5549_v8  ;;  %8018 = vst [vmem:[#allocation74_spill] sm:$0xff] %v5553_v23  ;;  %v5561_v56 = vadd.f32 %v8023_v21, %v8022_v54  ;;  %v8026_v48 = vld [vmem:[#allocation158_spill] sm:$0xff]  ;;  %v8032_v8 = vld [vmem:[#allocation160_spill] sm:$0xff] }
 0x149   : > { %8021 = vst [vmem:[#allocation30_spill] sm:$0xff] %v5557_v61  ;;  %v5565_v12 = vadd.f32 %v8026_v48, %v8025_v28  ;;  %v8028_v13 = vld [vmem:[#allocation106_spill] sm:$0xff]  ;;  %v5573_v40 = vadd.f32 %v8032_v8, %v8031_v58  ;;  %v8034_v44 = vld [vmem:[#allocation108_spill] sm:$0xff]  ;;  %v8035_v23 = vld [vmem:[#allocation161_spill] sm:$0xff] }
 0x14a   : > { %8024 = vst [vmem:[#allocation155_spill] sm:$0xff] %v5561_v56  ;;  %v5569_v24 = vadd.f32 %v8029_v60, %v8028_v13  ;;  %v5577_v43 = vadd.f32 %v8035_v23, %v8034_v44  ;;  %v8037_v20 = vld [vmem:[#allocation109_spill] sm:$0xff]  ;;  %v8038_v61 = vld [vmem:[#allocation170_spill] sm:$0xff]  ;;  %v8043_v28 = vld [vmem:[#allocation111_spill] sm:$0xff] }
 0x14b   : > { %8027 = vst [vmem:[#allocation34_spill] sm:$0xff] %v5565_v12  ;;  %8033 = vst [vmem:[#allocation38_spill] sm:$0xff] %v5573_v40  ;;  %v5581_v54 = vadd.f32 %v8038_v61, %v8037_v20  ;;  %v8040_v21 = vld [vmem:[#allocation110_spill] sm:$0xff]  ;;  %v8044_v12 = vld [vmem:[#allocation171_spill] sm:$0xff] }
 0x14c   : > { %8030 = vst [vmem:[#allocation156_spill] sm:$0xff] %v5569_v24  ;;  %8036 = vst [vmem:[#allocation157_spill] sm:$0xff] %v5577_v43  ;;  %v8041_v56 = vld [vmem:[#allocation162_spill] sm:$0xff]  ;;  %v5589_v60 = vadd.f32 %v8044_v12, %v8043_v28  ;;  %v8046_v13 = vld [vmem:[#allocation112_spill] sm:$0xff] }
 0x14d   : > { %8039 = vst [vmem:[#allocation42_spill] sm:$0xff] %v5581_v54  ;;  %v5585_v48 = vadd.f32 %v8041_v56, %v8040_v21  ;;  %v5593_v8 = vadd.f32 %v5283_v49, %v8046_v13  ;;  %v8048_v58 = vld [vmem:[#allocation113_spill] sm:$0xff]  ;;  %v8050_v44 = vld [vmem:[#allocation114_spill] sm:$0xff]  ;;  %v8051_v43 = vld [vmem:[#allocation163_spill] sm:$0xff] }
 0x14e   : > { %8045 = vst [vmem:[#allocation106_spill] sm:$0xff] %v5589_v60  ;;  %v5597_v23 = vadd.f32 %v5288_v38, %v8048_v58  ;;  %v5601_v61 = vadd.f32 %v8051_v43, %v8050_v44  ;;  %v8053_v20 = vld [vmem:[#allocation115_spill] sm:$0xff]  ;;  %v8055_v21 = vld [vmem:[#allocation116_spill] sm:$0xff]  ;;  %v8057_v28 = vld [vmem:[#allocation117_spill] sm:$0xff] }
 0x14f   : > { %8042 = vst [vmem:[#allocation158_spill] sm:$0xff] %v5585_v48  ;;  %8047 = vst [vmem:[#allocation159_spill] sm:$0xff] %v5593_v8  ;;  %v5605_v56 = vadd.f32 %v5302_v14, %v8053_v20  ;;  %v5609_v12 = vadd.f32 %v5307_v30, %v8055_v21  ;;  %v5613_v49 = vadd.f32 %v5312_v29, %v8057_v28  ;;  %v8059_v13 = vld [vmem:[#allocation118_spill] sm:$0xff]  ;;  %v8063_v44 = vld [vmem:[#allocation119_spill] sm:$0xff] }
 0x150   : > { %8049 = vst [vmem:[#allocation107_spill] sm:$0xff] %v5597_v23  ;;  %8052 = vst [vmem:[#allocation160_spill] sm:$0xff] %v5601_v61  ;;  %v5617_v38 = vadd.f32 %v5317_v11, %v8059_v13  ;;  %v8061_v58 = vld [vmem:[#allocation46_spill] sm:$0xff]  ;;  %v5625_v14 = vadd.f32 %v5327_v33, %v8063_v44  ;;  %v8067_v21 = vld [vmem:[#allocation120_spill] sm:$0xff] }
 0x151   : > { %8054 = vst [vmem:[#allocation108_spill] sm:$0xff] %v5605_v56  ;;  %8056 = vst [vmem:[#allocation161_spill] sm:$0xff] %v5609_v12  ;;  %v5621_v43 = vadd.f32 %v5322_v25, %v8061_v58  ;;  %v8065_v20 = vld [vmem:[#allocation50_spill] sm:$0xff]  ;;  %v5633_v29 = vadd.f32 %v5337_v19, %v8067_v21  ;;  %v8071_v13 = vld [vmem:[#allocation121_spill] sm:$0xff] }
 0x152   : > { %8058 = vst [vmem:[#allocation109_spill] sm:$0xff] %v5613_v49  ;;  %8060 = vst [vmem:[#allocation170_spill] sm:$0xff] %v5617_v38  ;;  %v5629_v30 = vadd.f32 %v5332_v16, %v8065_v20  ;;  %v8069_v28 = vld [vmem:[#allocation54_spill] sm:$0xff]  ;;  %v5641_v25 = vadd.f32 %v5347_v37, %v8071_v13  ;;  %v8079_v21 = vld [vmem:[#allocation123_spill] sm:$0xff] }
 0x153   : > { %8062 = vst [vmem:[#allocation110_spill] sm:$0xff] %v5621_v43  ;;  %8064 = vst [vmem:[#allocation162_spill] sm:$0xff] %v5625_v14  ;;  %v5637_v11 = vadd.f32 %v5342_v7, %v8069_v28  ;;  %v8073_v58 = vld [vmem:[#allocation58_spill] sm:$0xff]  ;;  %v5657_v7 = vadd.f32 %v5367_v0, %v8079_v21  ;;  %v8081_v28 = vld [vmem:[#allocation167_spill] sm:$0xff] }
 0x154   : > { %8066 = vst [vmem:[#allocation111_spill] sm:$0xff] %v5629_v30  ;;  %8068 = vst [vmem:[#allocation171_spill] sm:$0xff] %v5633_v29  ;;  %v5645_v33 = vadd.f32 %v5352_v34, %v8073_v58  ;;  %v8075_v44 = vld [vmem:[#allocation122_spill] sm:$0xff]  ;;  %v5661_v37 = vadd.f32 %v5372_v42, %v8081_v28  ;;  %v8083_v13 = vld [vmem:[#allocation124_spill] sm:$0xff] }
 0x155   : > { %8070 = vst [vmem:[#allocation112_spill] sm:$0xff] %v5637_v11  ;;  %8072 = vst [vmem:[#allocation113_spill] sm:$0xff] %v5641_v25  ;;  %v5649_v16 = vadd.f32 %v5357_v15, %v8075_v44  ;;  %v8077_v20 = vld [vmem:[#allocation166_spill] sm:$0xff]  ;;  %v5665_v34 = vadd.f32 %v5377_v31, %v8083_v13  ;;  %v8085_v58 = vld [vmem:[#allocation168_spill] sm:$0xff] }
 0x156   : > { %8074 = vst [vmem:[#allocation114_spill] sm:$0xff] %v5645_v33  ;;  %v5653_v19 = vadd.f32 %v5362_v36, %v8077_v20  ;;  %8080 = vst [vmem:[#allocation116_spill] sm:$0xff] %v5657_v7  ;;  %v5669_v15 = vadd.f32 %v5382_v32, %v8085_v58  ;;  %v8087_v44 = vld [vmem:[#allocation125_spill] sm:$0xff]  ;;  %v8091_v21 = vld [vmem:[#allocation126_spill] sm:$0xff] }
 0x157   : > { %8076 = vst [vmem:[#allocation163_spill] sm:$0xff] %v5649_v16  ;;  %8082 = vst [vmem:[#allocation117_spill] sm:$0xff] %v5661_v37  ;;  %v5673_v36 = vadd.f32 %v5387_v45, %v8087_v44  ;;  %v8089_v20 = vld [vmem:[#allocation169_spill] sm:$0xff]  ;;  %v5681_v42 = vadd.f32 %v5397_v1, %v8091_v21  ;;  %v8093_v28 = vld [vmem:[#allocation127_spill] sm:$0xff] }
 0x158   : > { %8078 = vst [vmem:[#allocation115_spill] sm:$0xff] %v5653_v19  ;;  %8084 = vst [vmem:[#allocation118_spill] sm:$0xff] %v5665_v34  ;;  %v5677_v0 = vadd.f32 %v5392_v26, %v8089_v20  ;;  %v5685_v31 = vadd.f32 %v5402_v3, %v8093_v28  ;;  %v8095_v13 = vld [vmem:[#allocation128_spill] sm:$0xff]  ;;  %v8097_v58 = vld [vmem:[#allocation129_spill] sm:$0xff] }
 0x159   : > { %8086 = vst [vmem:[#allocation46_spill] sm:$0xff] %v5669_v15  ;;  %8088 = vst [vmem:[#allocation119_spill] sm:$0xff] %v5673_v36  ;;  %v5689_v32 = vadd.f32 %v5407_v22, %v8095_v13  ;;  %v5693_v45 = vadd.f32 %v5412_v63, %v8097_v58  ;;  %v8099_v44 = vld [vmem:[#allocation130_spill] sm:$0xff]  ;;  %v8101_v20 = vld [vmem:[#allocation131_spill] sm:$0xff] }
 0x15a   : > { %8090 = vst [vmem:[#allocation50_spill] sm:$0xff] %v5677_v0  ;;  %8092 = vst [vmem:[#allocation120_spill] sm:$0xff] %v5681_v42  ;;  %v5697_v26 = vadd.f32 %v5417_v6, %v8099_v44  ;;  %v5701_v1 = vadd.f32 %v5422_v39, %v8101_v20  ;;  %v8103_v21 = vld [vmem:[#allocation132_spill] sm:$0xff]  ;;  %v8105_v28 = vld [vmem:[#allocation133_spill] sm:$0xff] }
 0x15b   : > { %8094 = vst [vmem:[#allocation54_spill] sm:$0xff] %v5685_v31  ;;  %8096 = vst [vmem:[#allocation121_spill] sm:$0xff] %v5689_v32  ;;  %v5705_v3 = vadd.f32 %v5427_v51, %v8103_v21  ;;  %v5709_v22 = vadd.f32 %v5432_v47, %v8105_v28  ;;  %v8107_v13 = vld [vmem:[#allocation134_spill] sm:$0xff]  ;;  %v8109_v58 = vld [vmem:[#allocation135_spill] sm:$0xff] }
 0x15c   : > { %8098 = vst [vmem:[#allocation58_spill] sm:$0xff] %v5693_v45  ;;  %8100 = vst [vmem:[#allocation122_spill] sm:$0xff] %v5697_v26  ;;  %v5713_v63 = vadd.f32 %v5437_v5, %v8107_v13  ;;  %v5717_v6 = vadd.f32 %v5442_v18, %v8109_v58  ;;  %v8111_v44 = vld [vmem:[#allocation136_spill] sm:$0xff]  ;;  %v8113_v20 = vld [vmem:[#allocation137_spill] sm:$0xff] }
 0x15d   : > { %8102 = vst [vmem:[#allocation166_spill] sm:$0xff] %v5701_v1  ;;  %8104 = vst [vmem:[#allocation123_spill] sm:$0xff] %v5705_v3  ;;  %v5721_v39 = vadd.f32 %v5447_v35, %v8111_v44  ;;  %v5725_v51 = vadd.f32 %v5452_v27, %v8113_v20  ;;  %v8115_v21 = vld [vmem:[#allocation138_spill] sm:$0xff]  ;;  %v8117_v28 = vld [vmem:[#allocation139_spill] sm:$0xff] }
 0x15e   : > { %8106 = vst [vmem:[#allocation167_spill] sm:$0xff] %v5709_v22  ;;  %8108 = vst [vmem:[#allocation124_spill] sm:$0xff] %v5713_v63  ;;  %v5729_v47 = vadd.f32 %v5457_v62, %v8115_v21  ;;  %v5733_v5 = vadd.f32 %v5462_v41, %v8117_v28  ;;  %v8119_v13 = vld [vmem:[#allocation140_spill] sm:$0xff]  ;;  %v8121_v58 = vld [vmem:[#allocation141_spill] sm:$0xff] }
 0x15f   : > { %8110 = vst [vmem:[#allocation168_spill] sm:$0xff] %v5717_v6  ;;  %8112 = vst [vmem:[#allocation125_spill] sm:$0xff] %v5721_v39  ;;  %v5737_v18 = vadd.f32 %v5467_v10, %v8119_v13  ;;  %v5741_v35 = vadd.f32 %v5472_v2, %v8121_v58  ;;  %v8123_v44 = vld [vmem:[#allocation142_spill] sm:$0xff]  ;;  %v8125_v20 = vld [vmem:[#allocation143_spill] sm:$0xff] }
 0x160   : > { %8114 = vst [vmem:[#allocation169_spill] sm:$0xff] %v5725_v51  ;;  %8116 = vst [vmem:[#allocation126_spill] sm:$0xff] %v5729_v47  ;;  %v5745_v27 = vadd.f32 %v5477_v4, %v8123_v44  ;;  %v5749_v62 = vadd.f32 %v5482_v53, %v8125_v20  ;;  %v8127_v21 = vld [vmem:[#allocation144_spill] sm:$0xff]  ;;  %v8129_v28 = vld [vmem:[#allocation145_spill] sm:$0xff] }
 0x161   : > { %8118 = vst [vmem:[#allocation127_spill] sm:$0xff] %v5733_v5  ;;  %8120 = vst [vmem:[#allocation128_spill] sm:$0xff] %v5737_v18  ;;  %v5753_v41 = vadd.f32 %v5487_v57, %v8127_v21  ;;  %v5757_v10 = vadd.f32 %v5492_v9, %v8129_v28  ;;  %v8131_v13 = vld [vmem:[#allocation146_spill] sm:$0xff]  ;;  %v8133_v58 = vld [vmem:[#allocation147_spill] sm:$0xff] }
 0x162   : > { %8122 = vst [vmem:[#allocation129_spill] sm:$0xff] %v5741_v35  ;;  %8124 = vst [vmem:[#allocation130_spill] sm:$0xff] %v5745_v27  ;;  %v5761_v2 = vadd.f32 %v5497_v52, %v8131_v13  ;;  %v5765_v4 = vadd.f32 %v5502_v55, %v8133_v58  ;;  %v8135_v44 = vld [vmem:[#allocation148_spill] sm:$0xff]  ;;  %v8137_v20 = vld [vmem:[#allocation149_spill] sm:$0xff] }
 0x163   : > { %8126 = vst [vmem:[#allocation131_spill] sm:$0xff] %v5749_v62  ;;  %8128 = vst [vmem:[#allocation132_spill] sm:$0xff] %v5753_v41  ;;  %v5769_v53 = vadd.f32 %v5507_v50, %v8135_v44  ;;  %v5773_v57 = vadd.f32 %v5512_v46, %v8137_v20  ;;  %v8139_v21 = vld [vmem:[#allocation150_spill] sm:$0xff]  ;;  %v8141_v28 = vld [vmem:[#allocation151_spill] sm:$0xff] }
 0x164   : > { %8130 = vst [vmem:[#allocation133_spill] sm:$0xff] %v5757_v10  ;;  %8132 = vst [vmem:[#allocation134_spill] sm:$0xff] %v5761_v2  ;;  %v5777_v9 = vadd.f32 %v5517_v17, %v8139_v21  ;;  %v5781_v52 = vadd.f32 %v5522_v59, %v8141_v28  ;;  %v8143_v13 = vld [vmem:[#allocation152_spill] sm:$0xff]  ;;  %v8146_v58 = vld [vmem:[#allocation153_spill] sm:$0xff] }
 0x165   : > { %8134 = vst [vmem:[#allocation135_spill] sm:$0xff] %v5765_v4  ;;  %8136 = vst [vmem:[#allocation136_spill] sm:$0xff] %v5769_v53  ;;  %v8144_v2 = vld [vmem:[#allocation164_spill] sm:$0xff]  ;;  %v8149_v44 = vld [vmem:[#allocation154_spill] sm:$0xff] }
 0x166   : > { %8138 = vst [vmem:[#allocation137_spill] sm:$0xff] %v5773_v57  ;;  %8140 = vst [vmem:[#allocation138_spill] sm:$0xff] %v5777_v9  ;;  %v5785_v55 = vadd.f32 %v8144_v2, %v8143_v13  ;;  %v8147_v4 = vld [vmem:[#allocation172_spill] sm:$0xff]  ;;  %v8150_v53 = vld [vmem:[#allocation165_spill] sm:$0xff] }
 0x167   : > { %8142 = vst [vmem:[#allocation139_spill] sm:$0xff] %v5781_v52  ;;  %v5789_v50 = vadd.f32 %v8147_v4, %v8146_v58  ;;  %v5793_v46 = vadd.f32 %v8150_v53, %v8149_v44  ;;  %v8152_v20 = vld [vmem:[#allocation26_spill] sm:$0xff]  ;;  %v8153_v17 = vld [vmem:[#allocation31_spill] sm:$0xff]  ;;  %v8154_v21 = vld [vmem:[#allocation32_spill] sm:$0xff] }
 0x168   : > { %8145 = vst [vmem:[#allocation140_spill] sm:$0xff] %v5785_v55  ;;  %vm1260_vm14 = vcmp.eq.s32.totalorder %v8152_v20, 17  ;;  %vm1261_vm11 = vcmp.eq.s32.totalorder %v8153_v17, 17  ;;  %vm1262_vm0 = vcmp.eq.s32.totalorder %v8154_v21, 17  ;;  %v8155_v59 = vld [vmem:[#allocation33_spill] sm:$0xff]  ;;  %v8156_v28 = vld [vmem:[#allocation27_spill] sm:$0xff] }
 0x169   : > { %8148 = vst [vmem:[#allocation141_spill] sm:$0xff] %v5789_v50  ;;  %8151 = vst [vmem:[#allocation142_spill] sm:$0xff] %v5793_v46  ;;  %vm1263_vm15 = vcmp.eq.s32.totalorder %v8155_v59, 17  ;;  %vm1264_vm7 = vcmp.eq.s32.totalorder %v8156_v28, 17  ;;  %v8157_v2 = vld [vmem:[#allocation35_spill] sm:$0xff]  ;;  %v8158_v13 = vld [vmem:[#allocation36_spill] sm:$0xff] }
 0x16a   : > { %vm1265_vm4 = vcmp.eq.s32.totalorder %v8157_v2, 17  ;;  %v8159_v4 = vld [vmem:[#allocation37_spill] sm:$0xff]  ;;  %v8160_v58 = vld [vmem:[#allocation28_spill] sm:$0xff]  ;;  %v8161_v53 = vld [vmem:[#allocation39_spill] sm:$0xff] }
 0x16b   : > { %v8162_v44 = vld [vmem:[#allocation40_spill] sm:$0xff]  ;;  %v8163_v46 = vld [vmem:[#allocation41_spill] sm:$0xff]  ;;  %v8165_v55 = vld [vmem:[#allocation43_spill] sm:$0xff] }
 0x16c   : > { %v8164_v50 = vld [vmem:[#allocation29_spill] sm:$0xff]  ;;  %v8166_v52 = vld [vmem:[#allocation44_spill] sm:$0xff]  ;;  %v8168_v57 = vld [vmem:[#allocation47_spill] sm:$0xff]  ;;  %vm8223_vm5 = vcmp.eq.s32.totalorder %v8163_v46, 17 }
 0x16d   : > { %v8167_v9 = vld [vmem:[#allocation45_spill] sm:$0xff]  ;;  %v8169_v10 = vld [vmem:[#allocation48_spill] sm:$0xff]  ;;  %v8171_v62 = vld [vmem:[#allocation51_spill] sm:$0xff] }
 0x16e   : > { %v8170_v41 = vld [vmem:[#allocation49_spill] sm:$0xff]  ;;  %v8172_v27 = vld [vmem:[#allocation52_spill] sm:$0xff]  ;;  %v8174_v18 = vld [vmem:[#allocation55_spill] sm:$0xff] }
 0x16f   : > { %v8173_v35 = vld [vmem:[#allocation53_spill] sm:$0xff]  ;;  %v8175_v5 = vld [vmem:[#allocation56_spill] sm:$0xff]  ;;  %v8177_v51 = vld [vmem:[#allocation59_spill] sm:$0xff]  ;;  %vm8243_vm6 = vcmp.eq.s32.totalorder %v8172_v27, 17 }
 0x170   : > { %v8176_v47 = vld [vmem:[#allocation57_spill] sm:$0xff]  ;;  %v8178_v39 = vld [vmem:[#allocation60_spill] sm:$0xff]  ;;  %v8180_v63 = vld [vmem:[#allocation63_spill] sm:$0xff] }
 0x171   : > { %v8179_v6 = vld [vmem:[#allocation61_spill] sm:$0xff]  ;;  %v8181_v22 = vld [vmem:[#allocation64_spill] sm:$0xff]  ;;  %v8183_v1 = vld [vmem:[#allocation67_spill] sm:$0xff] }
 0x172   : > { %v8182_v3 = vld [vmem:[#allocation65_spill] sm:$0xff]  ;;  %vm1291_vm1 = vcmp.eq.s32.totalorder %v8183_v1, 17  ;;  %v8184_v26 = vld [vmem:[#allocation68_spill] sm:$0xff]  ;;  %v8186_v32 = vld [vmem:[#allocation71_spill] sm:$0xff] }
 0x173   : > { %vm1290_vm12 = vcmp.eq.s32.totalorder %v8182_v3, 17  ;;  %v8185_v45 = vld [vmem:[#allocation69_spill] sm:$0xff]  ;;  %v8187_v31 = vld [vmem:[#allocation72_spill] sm:$0xff]  ;;  %v8189_v0 = vld [vmem:[#allocation75_spill] sm:$0xff] }
 0x174   : > { %v8188_v42 = vld [vmem:[#allocation73_spill] sm:$0xff]  ;;  %v8190_v36 = vld [vmem:[#allocation76_spill] sm:$0xff]  ;;  %v8193_v37 = vld [vmem:[#allocation78_spill] sm:$0xff] }
 0x175   : > { %v8191_v15 = vld [vmem:[#allocation77_spill] sm:$0xff]  ;;  %v8194_v19 = vld [vmem:[#allocation82_spill] sm:$0xff]  ;;  %v8197_v30 = vld [vmem:[#allocation79_spill] sm:$0xff] }
 0x176   : > { %v8192_v34 = vld [vmem:[#allocation17_spill] sm:$0xff]  ;;  %v8195_v33 = vld [vmem:[#allocation86_spill] sm:$0xff]  ;;  %vm1300_vm3 = vcmp.eq.s32.totalorder %v8197_v30, 17  ;;  %v8198_v14 = vld [vmem:[#allocation80_spill] sm:$0xff] }
 0x177   : > { %v5837_v7 = vrot.slane %v8193_v37, %v8192_v34  ;;  %v5841_v16 = vrot.slane %v8194_v19, %v8192_v34  ;;  %v5845_v25 = vrot.slane %v8195_v33, %v8192_v34  ;;  %v8196_v11 = vld [vmem:[#allocation90_spill] sm:$0xff]  ;;  %vm1301_vm2 = vcmp.eq.s32.totalorder %v8198_v14, 17  ;;  %v8199_v43 = vld [vmem:[#allocation81_spill] sm:$0xff]  ;;  %v8200_v37 = vld [vmem:[#allocation83_spill] sm:$0xff] }
 0x178   : > { %v5849_v29 = vrot.slane %v8196_v11, %v8192_v34  ;;  %vm1302_vm10 = vcmp.eq.s32.totalorder %v8199_v43, 17  ;;  %vm1303_vm13 = vcmp.eq.s32.totalorder %v8200_v37, 17  ;;  %v8201_v38 = vld [vmem:[#allocation84_spill] sm:$0xff]  ;;  %v8202_v19 = vld [vmem:[#allocation85_spill] sm:$0xff]  ;;  %v8203_v49 = vld [vmem:[#allocation87_spill] sm:$0xff] }
 0x179   : > { %vm1304_vm8 = vcmp.eq.s32.totalorder %v8201_v38, 17  ;;  %v8204_v33 = vld [vmem:[#allocation88_spill] sm:$0xff]  ;;  %v5862_v11 = vsel %vm1260_vm14, %v5837_v7, 0.0  ;;  %v5867_v34 = vsel %vm1261_vm11, %v5841_v16, 0.0  ;;  %v5872_v12 = vsel %vm1262_vm0, %v5845_v25, 0.0  ;;  %v8205_v61 = vld [vmem:[#allocation89_spill] sm:$0xff] }
 0x17a   : > { %v5877_v56 = vsel %vm1263_vm15, %v5849_v29, 0.0  ;;  %vm1308_vm9 = vcmp.eq.s32.totalorder %v8205_v61, 17  ;;  %v8206_v20 = vld [vmem:[#allocation91_spill] sm:$0xff]  ;;  %v8207_v23 = vld [vmem:[#allocation92_spill] sm:$0xff]  ;;  %v8208_v8 = vld [vmem:[#allocation93_spill] sm:$0xff]  ;;  %v5886_v17 = vsel %vm1264_vm7, %v5837_v7, 0.0 }
 0x17b   : > { %vm1309_vm14 = vcmp.eq.s32.totalorder %v8206_v20, 17  ;;  %v5891_v21 = vsel %vm1265_vm4, %v5841_v16, 0.0  ;;  %vm8209_vm11 = vcmp.eq.s32.totalorder %v8158_v13, 17  ;;  %vm8211_vm0 = vcmp.eq.s32.totalorder %v8159_v4, 17  ;;  %v8213_v48 = vld [vmem:[#allocation94_spill] sm:$0xff]  ;;  %v8214_v28 = vld [vmem:[#allocation95_spill] sm:$0xff] }
 0x17c   : > { %v5896_v59 = vsel %vm8209_vm11, %v5845_v25, 0.0  ;;  %v5901_v60 = vsel %vm8211_vm0, %v5849_v29, 0.0  ;;  %v8215_v54 = vld [vmem:[#allocation96_spill] sm:$0xff]  ;;  %v8216_v40 = vld [vmem:[#allocation97_spill] sm:$0xff]  ;;  %vm8217_vm4 = vcmp.eq.s32.totalorder %v8160_v58, 17  ;;  %vm8219_vm11 = vcmp.eq.s32.totalorder %v8161_v53, 17 }
 0x17d   : > { %8210 = vst [vmem:[#allocation143_spill] sm:$0xff] %v5896_v59  ;;  %8212 = vst [vmem:[#allocation144_spill] sm:$0xff] %v5901_v60  ;;  %v5910_v2 = vsel %vm8217_vm4, %v5837_v7, 0.0  ;;  %v5915_v13 = vsel %vm8219_vm11, %v5841_v16, 0.0  ;;  %vm8221_vm0 = vcmp.eq.s32.totalorder %v8162_v44, 17  ;;  %v5925_v60 = vsel %vm8223_vm5, %v5849_v29, 0.0 }
 0x17e   : > { %8218 = vst [vmem:[#allocation145_spill] sm:$0xff] %v5910_v2  ;;  %8220 = vst [vmem:[#allocation146_spill] sm:$0xff] %v5915_v13  ;;  %v5920_v4 = vsel %vm8221_vm0, %v5845_v25, 0.0  ;;  %v8225_v24 = vld [vmem:[#allocation98_spill] sm:$0xff]  ;;  %v8226_v58 = vld [vmem:[#allocation99_spill] sm:$0xff]  ;;  %vm8229_vm11 = vcmp.eq.s32.totalorder %v8164_v50, 17 }
 0x17f   : > { %8222 = vst [vmem:[#allocation147_spill] sm:$0xff] %v5920_v4  ;;  %8224 = vst [vmem:[#allocation148_spill] sm:$0xff] %v5925_v60  ;;  %v8227_v2 = vld [vmem:[#allocation100_spill] sm:$0xff]  ;;  %v8228_v59 = vld [vmem:[#allocation101_spill] sm:$0xff]  ;;  %v5934_v53 = vsel %vm8229_vm11, %v5837_v7, 0.0  ;;  %vm8231_vm0 = vcmp.eq.s32.totalorder %v8165_v55, 17 }
 0x180   : > { %8230 = vst [vmem:[#allocation149_spill] sm:$0xff] %v5934_v53  ;;  %v5939_v44 = vsel %vm8231_vm0, %v5841_v16, 0.0  ;;  %vm8232_vm5 = vcmp.eq.s32.totalorder %v8166_v52, 17  ;;  %vm8233_vm7 = vcmp.eq.s32.totalorder %v8167_v9, 17  ;;  %v8235_v4 = vld [vmem:[#allocation102_spill] sm:$0xff]  ;;  %v8236_v50 = vld [vmem:[#allocation103_spill] sm:$0xff] }
 0x181   : > { %v5944_v46 = vsel %vm8232_vm5, %v5845_v25, 0.0  ;;  %v5949_v60 = vsel %vm8233_vm7, %v5849_v29, 0.0  ;;  %vm1320_vm15 = vcmp.eq.s32.totalorder %v8235_v4, 17  ;;  %vm1321_vm11 = vcmp.eq.s32.totalorder %v8236_v50, 17  ;;  %v8237_v53 = vld [vmem:[#allocation104_spill] sm:$0xff]  ;;  %v8238_v13 = vld [vmem:[#allocation105_spill] sm:$0xff] }
 0x182   : > { %8234 = vst [vmem:[#allocation150_spill] sm:$0xff] %v5949_v60  ;;  %vm8239_vm0 = vcmp.eq.s32.totalorder %v8168_v57, 17  ;;  %vm8240_vm5 = vcmp.eq.s32.totalorder %v8169_v10, 17  ;;  %vm8241_vm7 = vcmp.eq.s32.totalorder %v8170_v41, 17  ;;  %vm8242_vm4 = vcmp.eq.s32.totalorder %v8171_v62, 17 }
 0x183   : > { %v5958_v55 = vsel %vm8239_vm0, %v5837_v7, 0.0  ;;  %v5963_v52 = vsel %vm8240_vm5, %v5841_v16, 0.0  ;;  %v5968_v9 = vsel %vm8241_vm7, %v5845_v25, 0.0  ;;  %v5973_v60 = vsel %vm8242_vm4, %v5849_v29, 0.0 }
 0x184   : > { %v5978_v57 = vsel %vm8243_vm6, %v5837_v7, 0.0  ;;  %vm8244_vm0 = vcmp.eq.s32.totalorder %v8173_v35, 17  ;;  %vm8245_vm5 = vcmp.eq.s32.totalorder %v8174_v18, 17  ;;  %vm8246_vm7 = vcmp.eq.s32.totalorder %v8175_v5, 17 }
 0x185   : > { %v5983_v10 = vsel %vm8244_vm0, %v5841_v16, 0.0  ;;  %v5988_v41 = vsel %vm8245_vm5, %v5845_v25, 0.0  ;;  %v5993_v62 = vsel %vm8246_vm7, %v5849_v29, 0.0  ;;  %vm8247_vm4 = vcmp.eq.s32.totalorder %v8176_v47, 17 }
 0x186   : > { %v5998_v27 = vsel %vm8247_vm4, %v5837_v7, 0.0  ;;  %vm8248_vm6 = vcmp.eq.s32.totalorder %v8177_v51, 17  ;;  %vm8249_vm0 = vcmp.eq.s32.totalorder %v8178_v39, 17  ;;  %vm8250_vm5 = vcmp.eq.s32.totalorder %v8179_v6, 17 }
 0x187   : > { %v6003_v35 = vsel %vm8248_vm6, %v5841_v16, 0.0  ;;  %v6008_v18 = vsel %vm8249_vm0, %v5845_v25, 0.0  ;;  %v6013_v5 = vsel %vm8250_vm5, %v5849_v29, 0.0  ;;  %vm8251_vm7 = vcmp.eq.s32.totalorder %v8180_v63, 17 }
 0x188   : > { %v6018_v47 = vsel %vm8251_vm7, %v5837_v7, 0.0  ;;  %vm8252_vm4 = vcmp.eq.s32.totalorder %v8181_v22, 17  ;;  %v6028_v39 = vsel %vm1290_vm12, %v5845_v25, 0.0  ;;  %v6033_v6 = vsel %vm1291_vm1, %v5849_v29, 0.0 }
 0x189   : > { %v6023_v51 = vsel %vm8252_vm4, %v5841_v16, 0.0  ;;  %vm8253_vm6 = vcmp.eq.s32.totalorder %v8184_v26, 17  ;;  %vm8254_vm0 = vcmp.eq.s32.totalorder %v8185_v45, 17  ;;  %vm8255_vm5 = vcmp.eq.s32.totalorder %v8186_v32, 17 }
 0x18a   : > { %v6038_v63 = vsel %vm8253_vm6, %v5837_v7, 0.0  ;;  %v6043_v22 = vsel %vm8254_vm0, %v5841_v16, 0.0  ;;  %v6048_v3 = vsel %vm8255_vm5, %v5845_v25, 0.0  ;;  %vm8256_vm12 = vcmp.eq.s32.totalorder %v8187_v31, 17 }
 0x18b   : > { %v6053_v1 = vsel %vm8256_vm12, %v5849_v29, 0.0  ;;  %vm8257_vm1 = vcmp.eq.s32.totalorder %v8188_v42, 17  ;;  %vm8258_vm7 = vcmp.eq.s32.totalorder %v8189_v0, 17  ;;  %vm8259_vm4 = vcmp.eq.s32.totalorder %v8190_v36, 17 }
 0x18c   : > { %v6058_v26 = vsel %vm8257_vm1, %v5837_v7, 0.0  ;;  %v6063_v45 = vsel %vm8258_vm7, %v5841_v16, 0.0  ;;  %v6068_v32 = vsel %vm8259_vm4, %v5845_v25, 0.0  ;;  %vm8260_vm6 = vcmp.eq.s32.totalorder %v8191_v15, 17 }
 0x18d   : > { %v6073_v31 = vsel %vm8260_vm6, %v5849_v29, 0.0  ;;  %v6078_v42 = vsel %vm1300_vm3, %v5837_v7, 0.0  ;;  %v6083_v0 = vsel %vm1301_vm2, %v5841_v16, 0.0  ;;  %v6088_v36 = vsel %vm1302_vm10, %v5845_v25, 0.0 }
 0x18e   : > { %v6093_v15 = vsel %vm1303_vm13, %v5849_v29, 0.0  ;;  %v6098_v30 = vsel %vm1304_vm8, %v5837_v7, 0.0  ;;  %vm8261_vm3 = vcmp.eq.s32.totalorder %v8202_v19, 17  ;;  %vm8262_vm2 = vcmp.eq.s32.totalorder %v8203_v49, 17 }
 0x18f   : > { %v6103_v14 = vsel %vm8261_vm3, %v5841_v16, 0.0  ;;  %v6108_v43 = vsel %vm8262_vm2, %v5845_v25, 0.0  ;;  %vm8263_vm10 = vcmp.eq.s32.totalorder %v8204_v33, 17  ;;  %v6118_v38 = vsel %vm1308_vm9, %v5837_v7, 0.0 }
 0x190   : > { %v6113_v37 = vsel %vm8263_vm10, %v5849_v29, 0.0  ;;  %v6123_v19 = vsel %vm1309_vm14, %v5841_v16, 0.0  ;;  %vm8264_vm13 = vcmp.eq.s32.totalorder %v8207_v23, 17  ;;  %vm8265_vm8 = vcmp.eq.s32.totalorder %v8208_v8, 17 }
 0x191   : > { %v6128_v49 = vsel %vm8264_vm13, %v5845_v25, 0.0  ;;  %v6133_v33 = vsel %vm8265_vm8, %v5849_v29, 0.0  ;;  %vm8266_vm0 = vcmp.eq.s32.totalorder %v8213_v48, 17  ;;  %vm8267_vm9 = vcmp.eq.s32.totalorder %v8214_v28, 17 }
 0x192   : > { %v6138_v61 = vsel %vm8266_vm0, %v5837_v7, 0.0  ;;  %v6143_v20 = vsel %vm8267_vm9, %v5841_v16, 0.0  ;;  %vm8268_vm14 = vcmp.eq.s32.totalorder %v8215_v54, 17  ;;  %vm8269_vm5 = vcmp.eq.s32.totalorder %v8216_v40, 17 }
 0x193   : > { %v6148_v23 = vsel %vm8268_vm14, %v5845_v25, 0.0  ;;  %v6153_v8 = vsel %vm8269_vm5, %v5849_v29, 0.0  ;;  %vm8270_vm12 = vcmp.eq.s32.totalorder %v8225_v24, 17  ;;  %vm8271_vm1 = vcmp.eq.s32.totalorder %v8226_v58, 17 }
 0x194   : > { %v6158_v48 = vsel %vm8270_vm12, %v5837_v7, 0.0  ;;  %v6163_v28 = vsel %vm8271_vm1, %v5841_v16, 0.0  ;;  %vm8272_vm7 = vcmp.eq.s32.totalorder %v8227_v2, 17  ;;  %vm8273_vm4 = vcmp.eq.s32.totalorder %v8228_v59, 17 }
 0x195   : > { %v6168_v54 = vsel %vm8272_vm7, %v5845_v25, 0.0  ;;  %v6173_v40 = vsel %vm8273_vm4, %v5849_v29, 0.0  ;;  %v6178_v24 = vsel %vm1320_vm15, %v5837_v7, 0.0  ;;  %v6183_v58 = vsel %vm1321_vm11, %v5841_v16, 0.0  ;;  %v8281_v7 = vld [vmem:[#allocation66_spill] sm:$0xff] }
 0x196   : > { %8274 = vst [vmem:[#allocation151_spill] sm:$0xff] %v6173_v40  ;;  %8275 = vst [vmem:[#allocation152_spill] sm:$0xff] %v6178_v24  ;;  %vm8276_vm6 = vcmp.eq.s32.totalorder %v8237_v53, 17  ;;  %vm8278_vm3 = vcmp.eq.s32.totalorder %v8238_v13, 17  ;;  %v8279_v40 = vld [vmem:[#allocation62_spill] sm:$0xff]  ;;  %v6201_v24 = vadd.f32 %v5867_v34, %v8281_v7  ;;  %v8289_v13 = vld [vmem:[#allocation155_spill] sm:$0xff] }
 0x197   : > { %v6188_v2 = vsel %vm8276_vm6, %v5845_v25, 0.0  ;;  %v6193_v59 = vsel %vm8278_vm3, %v5849_v29, 0.0  ;;  %v6197_v4 = vadd.f32 %v5862_v11, %v8279_v40  ;;  %v8283_v16 = vld [vmem:[#allocation70_spill] sm:$0xff]  ;;  %v6217_v11 = vadd.f32 %v5891_v21, %v8289_v13  ;;  %v8294_v7 = vld [vmem:[#allocation156_spill] sm:$0xff] }
 0x198   : > { %8277 = vst [vmem:[#allocation164_spill] sm:$0xff] %v6188_v2  ;;  %8282 = vst [vmem:[#allocation172_spill] sm:$0xff] %v6201_v24  ;;  %v6205_v50 = vadd.f32 %v5872_v12, %v8283_v16  ;;  %v8285_v53 = vld [vmem:[#allocation74_spill] sm:$0xff]  ;;  %v8295_v24 = vld [vmem:[#allocation144_spill] sm:$0xff] }
 0x199   : > { %8280 = vst [vmem:[#allocation153_spill] sm:$0xff] %v6197_v4  ;;  %v6209_v25 = vadd.f32 %v5877_v56, %v8285_v53  ;;  %v8287_v2 = vld [vmem:[#allocation30_spill] sm:$0xff]  ;;  %8290 = vst [vmem:[#allocation31_spill] sm:$0xff] %v6217_v11  ;;  %v8292_v4 = vld [vmem:[#allocation143_spill] sm:$0xff]  ;;  %v6225_v12 = vadd.f32 %v8295_v24, %v8294_v7 }
 0x19a   : > { %8284 = vst [vmem:[#allocation154_spill] sm:$0xff] %v6205_v50  ;;  %v6213_v29 = vadd.f32 %v5886_v17, %v8287_v2  ;;  %v8291_v40 = vld [vmem:[#allocation34_spill] sm:$0xff]  ;;  %v8298_v50 = vld [vmem:[#allocation145_spill] sm:$0xff]  ;;  %v8307_v11 = vld [vmem:[#allocation148_spill] sm:$0xff] }
 0x19b   : > { %8286 = vst [vmem:[#allocation165_spill] sm:$0xff] %v6209_v25  ;;  %v6221_v34 = vadd.f32 %v8292_v4, %v8291_v40  ;;  %8296 = vst [vmem:[#allocation33_spill] sm:$0xff] %v6225_v12  ;;  %v8297_v16 = vld [vmem:[#allocation38_spill] sm:$0xff]  ;;  %v8300_v53 = vld [vmem:[#allocation157_spill] sm:$0xff] }
 0x19c   : > { %8288 = vst [vmem:[#allocation26_spill] sm:$0xff] %v6213_v29  ;;  %v6229_v56 = vadd.f32 %v8298_v50, %v8297_v16  ;;  %v8301_v25 = vld [vmem:[#allocation146_spill] sm:$0xff]  ;;  %v8304_v29 = vld [vmem:[#allocation147_spill] sm:$0xff] }
 0x19d   : > { %8293 = vst [vmem:[#allocation32_spill] sm:$0xff] %v6221_v34  ;;  %v6233_v17 = vadd.f32 %v8301_v25, %v8300_v53  ;;  %v8303_v2 = vld [vmem:[#allocation42_spill] sm:$0xff]  ;;  %v8310_v34 = vld [vmem:[#allocation149_spill] sm:$0xff]  ;;  %v8312_v7 = vld [vmem:[#allocation159_spill] sm:$0xff] }
 0x19e   : > { %8299 = vst [vmem:[#allocation27_spill] sm:$0xff] %v6229_v56  ;;  %v6237_v21 = vadd.f32 %v8304_v29, %v8303_v2  ;;  %v8306_v13 = vld [vmem:[#allocation158_spill] sm:$0xff]  ;;  %v6249_v50 = vadd.f32 %v5939_v44, %v8312_v7  ;;  %v8313_v16 = vld [vmem:[#allocation107_spill] sm:$0xff]  ;;  %v8315_v53 = vld [vmem:[#allocation160_spill] sm:$0xff] }
 0x19f   : > { %8302 = vst [vmem:[#allocation35_spill] sm:$0xff] %v6233_v17  ;;  %v6241_v4 = vadd.f32 %v8307_v11, %v8306_v13  ;;  %v8309_v40 = vld [vmem:[#allocation106_spill] sm:$0xff]  ;;  %v6253_v25 = vadd.f32 %v5944_v46, %v8313_v16  ;;  %v8318_v2 = vld [vmem:[#allocation108_spill] sm:$0xff]  ;;  %v8319_v13 = vld [vmem:[#allocation161_spill] sm:$0xff] }
 0x1a0   : > { %8305 = vst [vmem:[#allocation36_spill] sm:$0xff] %v6237_v21  ;;  %v6245_v24 = vadd.f32 %v8310_v34, %v8309_v40  ;;  %v8316_v12 = vld [vmem:[#allocation150_spill] sm:$0xff]  ;;  %v6261_v11 = vadd.f32 %v5958_v55, %v8318_v2  ;;  %v6265_v34 = vadd.f32 %v5963_v52, %v8319_v13  ;;  %v8320_v40 = vld [vmem:[#allocation109_spill] sm:$0xff]  ;;  %v8324_v2 = vld [vmem:[#allocation111_spill] sm:$0xff] }
 0x1a1   : > { %8308 = vst [vmem:[#allocation37_spill] sm:$0xff] %v6241_v4  ;;  %8314 = vst [vmem:[#allocation39_spill] sm:$0xff] %v6253_v25  ;;  %v6257_v29 = vadd.f32 %v8316_v12, %v8315_v53  ;;  %v6269_v44 = vadd.f32 %v5968_v9, %v8320_v40  ;;  %v8321_v7 = vld [vmem:[#allocation170_spill] sm:$0xff]  ;;  %v6285_v52 = vadd.f32 %v5988_v41, %v8324_v2  ;;  %v8325_v13 = vld [vmem:[#allocation171_spill] sm:$0xff] }
 0x1a2   : > { %8311 = vst [vmem:[#allocation28_spill] sm:$0xff] %v6245_v24  ;;  %v6273_v46 = vadd.f32 %v5973_v60, %v8321_v7  ;;  %v8322_v16 = vld [vmem:[#allocation110_spill] sm:$0xff]  ;;  %v6289_v9 = vadd.f32 %v5993_v62, %v8325_v13  ;;  %v8326_v40 = vld [vmem:[#allocation112_spill] sm:$0xff]  ;;  %v8327_v7 = vld [vmem:[#allocation113_spill] sm:$0xff] }
 0x1a3   : > { %8317 = vst [vmem:[#allocation40_spill] sm:$0xff] %v6257_v29  ;;  %v6277_v12 = vadd.f32 %v5978_v57, %v8322_v16  ;;  %v8323_v53 = vld [vmem:[#allocation162_spill] sm:$0xff]  ;;  %v6293_v60 = vadd.f32 %v5998_v27, %v8326_v40  ;;  %v6297_v57 = vadd.f32 %v6003_v35, %v8327_v7  ;;  %v8330_v2 = vld [vmem:[#allocation115_spill] sm:$0xff]  ;;  %v8331_v13 = vld [vmem:[#allocation116_spill] sm:$0xff] }
 0x1a4   : > { %v6281_v55 = vadd.f32 %v5983_v10, %v8323_v53  ;;  %v8328_v16 = vld [vmem:[#allocation114_spill] sm:$0xff]  ;;  %v8329_v53 = vld [vmem:[#allocation163_spill] sm:$0xff]  ;;  %v6309_v62 = vadd.f32 %v6018_v47, %v8330_v2  ;;  %v6313_v27 = vadd.f32 %v6023_v51, %v8331_v13  ;;  %v8332_v40 = vld [vmem:[#allocation117_spill] sm:$0xff] }
 0x1a5   : > { %v6301_v10 = vadd.f32 %v6008_v18, %v8328_v16  ;;  %v6305_v41 = vadd.f32 %v6013_v5, %v8329_v53  ;;  %v6317_v35 = vadd.f32 %v6028_v39, %v8332_v40  ;;  %v8333_v7 = vld [vmem:[#allocation118_spill] sm:$0xff]  ;;  %v8335_v53 = vld [vmem:[#allocation119_spill] sm:$0xff]  ;;  %v8337_v13 = vld [vmem:[#allocation120_spill] sm:$0xff] }
 0x1a6   : > { %v6321_v18 = vadd.f32 %v6033_v6, %v8333_v7  ;;  %v8334_v16 = vld [vmem:[#allocation46_spill] sm:$0xff]  ;;  %v6329_v47 = vadd.f32 %v6043_v22, %v8335_v53  ;;  %v6337_v39 = vadd.f32 %v6053_v1, %v8337_v13  ;;  %v8339_v7 = vld [vmem:[#allocation121_spill] sm:$0xff]  ;;  %v8343_v13 = vld [vmem:[#allocation123_spill] sm:$0xff] }
 0x1a7   : > { %v6325_v5 = vadd.f32 %v6038_v63, %v8334_v16  ;;  %v8336_v2 = vld [vmem:[#allocation50_spill] sm:$0xff]  ;;  %v6345_v63 = vadd.f32 %v6063_v45, %v8339_v7  ;;  %v8345_v7 = vld [vmem:[#allocation124_spill] sm:$0xff]  ;;  %v8358_v56 = vld [vmem:[#allocation135_spill] sm:$0xff] }
 0x1a8   : > { %v6333_v51 = vadd.f32 %v6048_v3, %v8336_v2  ;;  %v8338_v40 = vld [vmem:[#allocation54_spill] sm:$0xff]  ;;  %v8363_v25 = vld [vmem:[#allocation139_spill] sm:$0xff]  ;;  %v8365_v24 = vld [vmem:[#allocation140_spill] sm:$0xff] }
 0x1a9   : > { %v6341_v6 = vadd.f32 %v6058_v26, %v8338_v40  ;;  %v8340_v16 = vld [vmem:[#allocation58_spill] sm:$0xff]  ;;  %v6361_v26 = vadd.f32 %v6083_v0, %v8343_v13  ;;  %v8344_v40 = vld [vmem:[#allocation167_spill] sm:$0xff] }
 0x1aa   : > { %v6349_v22 = vadd.f32 %v6068_v32, %v8340_v16  ;;  %v8341_v53 = vld [vmem:[#allocation122_spill] sm:$0xff]  ;;  %v6365_v45 = vadd.f32 %v6088_v36, %v8344_v40  ;;  %v6369_v32 = vadd.f32 %v6093_v15, %v8345_v7  ;;  %v8346_v16 = vld [vmem:[#allocation168_spill] sm:$0xff]  ;;  %v8350_v40 = vld [vmem:[#allocation127_spill] sm:$0xff] }
 0x1ab   : > { %v6353_v3 = vadd.f32 %v6073_v31, %v8341_v53  ;;  %v8342_v2 = vld [vmem:[#allocation166_spill] sm:$0xff]  ;;  %v6373_v31 = vadd.f32 %v6098_v30, %v8346_v16  ;;  %v8347_v53 = vld [vmem:[#allocation125_spill] sm:$0xff]  ;;  %v6389_v15 = vadd.f32 %v6118_v38, %v8350_v40  ;;  %v8351_v7 = vld [vmem:[#allocation128_spill] sm:$0xff] }
 0x1ac   : > { %v6357_v1 = vadd.f32 %v6078_v42, %v8342_v2  ;;  %v6377_v42 = vadd.f32 %v6103_v14, %v8347_v53  ;;  %v8348_v2 = vld [vmem:[#allocation169_spill] sm:$0xff]  ;;  %v8349_v13 = vld [vmem:[#allocation126_spill] sm:$0xff]  ;;  %v6393_v30 = vadd.f32 %v6123_v19, %v8351_v7 }
 0x1ad   : > { %v6381_v0 = vadd.f32 %v6108_v43, %v8348_v2  ;;  %v6385_v36 = vadd.f32 %v6113_v37, %v8349_v13  ;;  %v8352_v16 = vld [vmem:[#allocation129_spill] sm:$0xff]  ;;  %v8353_v43 = vld [vmem:[#allocation130_spill] sm:$0xff]  ;;  %v8354_v37 = vld [vmem:[#allocation131_spill] sm:$0xff] }
 0x1ae   : > { %v6397_v14 = vadd.f32 %v6128_v49, %v8352_v16  ;;  %v6401_v53 = vadd.f32 %v6133_v33, %v8353_v43  ;;  %v1456_v2 = vadd.f32 %v6138_v61, %v8354_v37  ;;  %v8355_v13 = vld [vmem:[#allocation132_spill] sm:$0xff]  ;;  %v8356_v40 = vld [vmem:[#allocation133_spill] sm:$0xff]  ;;  %v8357_v19 = vld [vmem:[#allocation134_spill] sm:$0xff]  ;;  %v1460_v49 = vadd.f32 %v6158_v48, %v8358_v56  ;;  %1471 = sbr.rel (%p2813_p6) target bundleno = 452 (0x1c4), region = 70 }
 0x1af   : > { %v1457_v38 = vadd.f32 %v6143_v20, %v8355_v13  ;;  %v1458_v21 = vadd.f32 %v6148_v23, %v8356_v40  ;;  %v1459_v7 = vadd.f32 %v6153_v8, %v8357_v19  ;;  %v8359_v16 = vld [vmem:[#allocation136_spill] sm:$0xff]  ;;  %v8360_v33 = vld [vmem:[#allocation137_spill] sm:$0xff]  ;;  %v8361_v17 = vld [vmem:[#allocation138_spill] sm:$0xff]  ;;  %v1465_v23 = vadd.f32 %v6183_v58, %v8365_v24 }
 0x1b0   : > { %v1461_v4 = vadd.f32 %v6163_v28, %v8359_v16  ;;  %v1462_v43 = vadd.f32 %v6168_v54, %v8360_v33  ;;  %v8362_v61 = vld [vmem:[#allocation151_spill] sm:$0xff]  ;;  %v8364_v20 = vld [vmem:[#allocation152_spill] sm:$0xff]  ;;  %v8366_v40 = vld [vmem:[#allocation141_spill] sm:$0xff] }
 0x1b1   : > { %v1463_v37 = vadd.f32 %v8362_v61, %v8361_v17  ;;  %v1464_v13 = vadd.f32 %v8364_v20, %v8363_v25  ;;  %v8367_v8 = vld [vmem:[#allocation164_spill] sm:$0xff]  ;;  %v8368_v29 = vld [vmem:[#allocation142_spill] sm:$0xff] }
 0x1b2   : > { %v1466_v19 = vadd.f32 %v8367_v8, %v8366_v40  ;;  %v1467_v48 = vadd.f32 %v6193_v59, %v8368_v29 }
 0x1b3   : > { %v3068_v28 = vmov 0.0  }
 0x1b4   : > { %1472 = vst [vmem:[#allocation2 + $0xb0] sm:$0xff] %v3068_v28  ;;  %1473 = vst [vmem:[#allocation2] sm:$0xff] %v3068_v28 }
 0x1b5   : > { %1474 = vst [vmem:[#allocation2 + $0xd8] sm:$0xff] %v3068_v28  ;;  %1475 = vst [vmem:[#allocation2 + $0x18] sm:$0xff] %v3068_v28 }
 0x1b6   : > { %1476 = vst [vmem:[#allocation2 + $0x50] sm:$0xff] %v3068_v28  ;;  %1477 = vst [vmem:[#allocation2 + $0x68] sm:$0xff] %v3068_v28 }
 0x1b7   : > { %1478 = vst [vmem:[#allocation2 + $0x30] sm:$0xff] %v3068_v28  ;;  %1479 = vst [vmem:[#allocation2 + $0x48] sm:$0xff] %v3068_v28 }
 0x1b8   : > { %1480 = vst [vmem:[#allocation2 + $0x80] sm:$0xff] %v3068_v28  ;;  %1481 = vst [vmem:[#allocation2 + $0x88] sm:$0xff] %v3068_v28 }
 0x1b9   : > { %1482 = vst [vmem:[#allocation2 + $0xe8] sm:$0xff] %v3068_v28  ;;  %1483 = vst [vmem:[#allocation2 + $0xb8] sm:$0xff] %v3068_v28 }
 0x1ba   : > { %1484 = vst [vmem:[#allocation2 + $0x60] sm:$0xff] %v3068_v28  ;;  %1485 = vst [vmem:[#allocation2 + $0xf0] sm:$0xff] %v3068_v28 }
 0x1bb   : > { %1486 = vst [vmem:[#allocation2 + $0x8] sm:$0xff] %v3068_v28  ;;  %1487 = vst [vmem:[#allocation2 + $0x78] sm:$0xff] %v3068_v28 }
 0x1bc   : > { %1488 = vst [vmem:[#allocation2 + $0x38] sm:$0xff] %v3068_v28  ;;  %1489 = vst [vmem:[#allocation2 + $0x58] sm:$0xff] %v3068_v28 }
 0x1bd   : > { %1490 = vst [vmem:[#allocation2 + $0x40] sm:$0xff] %v3068_v28  ;;  %1491 = vst [vmem:[#allocation2 + $0xc8] sm:$0xff] %v3068_v28 }
 0x1be   : > { %1492 = vst [vmem:[#allocation2 + $0xe0] sm:$0xff] %v3068_v28  ;;  %1493 = vst [vmem:[#allocation2 + $0x90] sm:$0xff] %v3068_v28 }
 0x1bf   : > { %1494 = vst [vmem:[#allocation2 + $0x70] sm:$0xff] %v3068_v28  ;;  %1495 = vst [vmem:[#allocation2 + $0xc0] sm:$0xff] %v3068_v28 }
 0x1c0   : > { %1496 = vst [vmem:[#allocation2 + $0xa8] sm:$0xff] %v3068_v28  ;;  %1497 = vst [vmem:[#allocation2 + $0xd0] sm:$0xff] %v3068_v28 }
 0x1c1   : > { %1498 = vst [vmem:[#allocation2 + $0x10] sm:$0xff] %v3068_v28  ;;  %1499 = vst [vmem:[#allocation2 + $0x28] sm:$0xff] %v3068_v28 }
 0x1c2   : > { %1500 = vst [vmem:[#allocation2 + $0xa0] sm:$0xff] %v3068_v28  ;;  %1501 = vst [vmem:[#allocation2 + $0xf8] sm:$0xff] %v3068_v28 }
 0x1c3   : > { %1502 = vst [vmem:[#allocation2 + $0x20] sm:$0xff] %v3068_v28  ;;  %1503 = vst [vmem:[#allocation2 + $0x98] sm:$0xff] %v3068_v28 }
 0x1c4 PF: > { %1544 = vmatprep.subr.mxu0 %v1465_v23  ;;  %1657 = vmatprep.subr.mxu1 %v1467_v48  ;;  %v8369_v54 = vld [vmem:[#allocation40_spill] sm:$0xff]  ;;  %v8371_v59 = vld [vmem:[#allocation39_spill] sm:$0xff]  ;;  %v8373_v17 = vld [vmem:[#allocation37_spill] sm:$0xff]  ;;  %p2814_p7 = scmp.ne.s32.totalorder %s3042_s14, 1 }
 0x1c5   : > { %1545 = vmatpush1.msra.mxu0 %v1464_v13  ;;  %1658 = vmatpush1.msra.mxu1 %v1466_v19  ;;  %v8370_v58 = vld [vmem:[#allocation28_spill] sm:$0xff]  ;;  %v8372_v56 = vld [vmem:[#allocation35_spill] sm:$0xff]  ;;  %v8377_v25 = vld [vmem:[#allocation33_spill] sm:$0xff] }
 0x1c6   : > { %1546 = vmatprep.subr.mxu0 %v1461_v4  ;;  %1659 = vmatprep.subr.mxu1 %v1463_v37  ;;  %v8375_v4 = vld [vmem:[#allocation36_spill] sm:$0xff]  ;;  %v8376_v24 = vld [vmem:[#allocation31_spill] sm:$0xff]  ;;  %v1513_v33 = vld [vmem:[#allocation2 + $0x88] sm:$0xff] }
 0x1c7   : > { %1547 = vmatpush1.msra.mxu0 %v1460_v49  ;;  %1660 = vmatpush1.msra.mxu1 %v1462_v43  ;;  %v8379_v29 = vld [vmem:[#allocation32_spill] sm:$0xff]  ;;  %v1516_v23 = vld [vmem:[#allocation2 + $0x60] sm:$0xff]  ;;  %v1518_v40 = vld [vmem:[#allocation2 + $0x8] sm:$0xff] }
 0x1c8   : > { %1548 = vmatprep.subr.mxu0 %v1457_v38  ;;  %1661 = vmatprep.subr.mxu1 %v1459_v7  ;;  %v1515_v43 = vld [vmem:[#allocation2 + $0xb8] sm:$0xff] }
 0x1c9   : > { %1549 = vmatpush1.msra.mxu0 %v1456_v2  ;;  %1662 = vmatpush1.msra.mxu1 %v1458_v21  ;;  %v8374_v21 = vld [vmem:[#allocation27_spill] sm:$0xff]  ;;  %v1514_v2 = vld [vmem:[#allocation2 + $0xe8] sm:$0xff] }
 0x1ca   : > { %1550 = vmatprep.subr.mxu0 %v6393_v30  ;;  %1663 = vmatprep.subr.mxu1 %v6401_v53  ;;  %v1512_v53 = vld [vmem:[#allocation2 + $0x80] sm:$0xff] }
 0x1cb   : > { %1551 = vmatpush1.msra.mxu0 %v6389_v15  ;;  %1664 = vmatpush1.msra.mxu1 %v6397_v14 }
 0x1cc   : > { %1552 = vmatprep.subr.mxu0 %v6377_v42  ;;  %1665 = vmatprep.subr.mxu1 %v6385_v36  ;;  %v1509_v42 = vld [vmem:[#allocation2 + $0x68] sm:$0xff] }
 0x1cd   : > { %1553 = vmatpush1.msra.mxu0 %v6373_v31  ;;  %1666 = vmatpush1.msra.mxu1 %v6381_v0  ;;  %v1511_v0 = vld [vmem:[#allocation2 + $0x48] sm:$0xff] }
 0x1ce   : > { %1554 = vmatprep.subr.mxu0 %v6361_v26  ;;  %1667 = vmatprep.subr.mxu1 %v6369_v32 }
 0x1cf   : > { %1555 = vmatpush1.msra.mxu0 %v6357_v1  ;;  %1668 = vmatpush1.msra.mxu1 %v6365_v45  ;;  %v1510_v1 = vld [vmem:[#allocation2 + $0x30] sm:$0xff] }
 0x1d0   : > { %1556 = vmatprep.subr.mxu0 %v6345_v63  ;;  %1669 = vmatprep.subr.mxu1 %v6353_v3  ;;  %v1508_v3 = vld [vmem:[#allocation2 + $0x50] sm:$0xff] }
 0x1d1   : > { %1557 = vmatpush1.msra.mxu0 %v6341_v6  ;;  %1670 = vmatpush1.msra.mxu1 %v6349_v22 }
 0x1d2   : > { %1558 = vmatprep.subr.mxu0 %v6329_v47  ;;  %1671 = vmatprep.subr.mxu1 %v6337_v39  ;;  %v1505_v47 = vld [vmem:[#allocation2] sm:$0xff] }
 0x1d3   : > { %1559 = vmatpush1.msra.mxu0 %v6325_v5  ;;  %1672 = vmatpush1.msra.mxu1 %v6333_v51  ;;  %v1507_v51 = vld [vmem:[#allocation2 + $0x18] sm:$0xff] }
 0x1d4   : > { %1560 = vmatprep.subr.mxu0 %v6313_v27  ;;  %1673 = vmatprep.subr.mxu1 %v6321_v18  ;;  %v1504_v27 = vld [vmem:[#allocation2 + $0xb0] sm:$0xff] }
 0x1d5   : > { %1561 = vmatpush1.msra.mxu0 %v6309_v62  ;;  %1674 = vmatpush1.msra.mxu1 %v6317_v35  ;;  %v1543_v62 = vld [vmem:[%s6428_s12 + $0x38] sm:$0xff] }
 0x1d6   : > { %1562 = vmatprep.subr.mxu0 %v6297_v57  ;;  %1675 = vmatprep.subr.mxu1 %v6305_v41  ;;  %v1540_v57 = vld [vmem:[%s6428_s12 + $0x20] sm:$0xff]  ;;  %v1542_v41 = vld [vmem:[%s6428_s12 + $0x30] sm:$0xff]  ;;  %v1506_v35 = vld [vmem:[#allocation2 + $0xd8] sm:$0xff] }
 0x1d7   : > { %1563 = vmatpush1.msra.mxu0 %v6293_v60  ;;  %1676 = vmatpush1.msra.mxu1 %v6301_v10  ;;  %v1539_v60 = vld [vmem:[%s6428_s12 + $0x18] sm:$0xff]  ;;  %v1541_v10 = vld [vmem:[%s6428_s12 + $0x28] sm:$0xff] }
 0x1d8   : > { %1564 = vmatprep.subr.mxu0 %v6281_v55  ;;  %1677 = vmatprep.subr.mxu1 %v6289_v9  ;;  %v8383_v55 = vld [vmem:[#allocation154_spill] sm:$0xff]  ;;  %v1538_v9 = vld [vmem:[%s6428_s12 + $0x10] sm:$0xff] }
 0x1d9   : > { %1565 = vmatpush1.msra.mxu0 %v6277_v12  ;;  %1678 = vmatpush1.msra.mxu1 %v6285_v52  ;;  %v3069_v12 = vmov 0.0   ;;  %v1537_v52 = vld [vmem:[%s6428_s12 + $0x8] sm:$0xff] }
 0x1da   : > { %1566 = vmatprep.subr.mxu0 %v6265_v34  ;;  %1679 = vmatprep.subr.mxu1 %v6273_v46  ;;  %v8381_v34 = vld [vmem:[#allocation165_spill] sm:$0xff] }
 0x1db   : > { %1567 = vmatpush1.msra.mxu0 %v6261_v11  ;;  %1680 = vmatpush1.msra.mxu1 %v6269_v44  ;;  %v8380_v11 = vld [vmem:[#allocation172_spill] sm:$0xff]  ;;  %v1536_v44 = vld [vmem:[%s6428_s12] sm:$0xff] }
 0x1dc   : > { %1568 = vmatprep.subr.mxu0 %v6249_v50  ;;  %1681 = vmatprep.subr.mxu1 %v8369_v54  ;;  %v8378_v50 = vld [vmem:[#allocation26_spill] sm:$0xff]  ;;  %v8382_v46 = vld [vmem:[#allocation153_spill] sm:$0xff]  ;;  %v1517_v54 = vld [vmem:[#allocation2 + $0xf0] sm:$0xff] }
 0x1dd   : > { %1569 = vmatpush1.msra.mxu0 %v8370_v58  ;;  %1682 = vmatpush1.msra.mxu1 %v8371_v59  ;;  %v1519_v58 = vld [vmem:[#allocation2 + $0x78] sm:$0xff] }
 0x1de   : > { %1570 = vmatprep.subr.mxu0 %v8372_v56  ;;  %1683 = vmatprep.subr.mxu1 %v8373_v17 }
 0x1df   : > { %1571 = vmatpush1.msra.mxu0 %v8374_v21  ;;  %1684 = vmatpush1.msra.mxu1 %v8375_v4  ;;  %v1520_v4 = vld [vmem:[#allocation2 + $0x38] sm:$0xff] }
 0x1e0   : > { %1572 = vmatprep.subr.mxu0 %v8376_v24  ;;  %1685 = vmatprep.subr.mxu1 %v8377_v25  ;;  %v1522_v24 = vld [vmem:[#allocation2 + $0x40] sm:$0xff] }
 0x1e1   : > { %1573 = vmatpush1.msra.mxu0 %v8378_v50  ;;  %1686 = vmatpush1.msra.mxu1 %v8379_v29 }
 0x1e2   : > { %1574 = vmatprep.subr.mxu0 %v8380_v11  ;;  %1687 = vmatprep.subr.mxu1 %v8381_v34  ;;  %v1521_v34 = vld [vmem:[#allocation2 + $0x58] sm:$0xff] }
 0x1e3   : > { %1575 = vmatpush1.msra.mxu0 %v8382_v46  ;;  %1608 = vmatprep.mubr.f32.mxu0 %v3069_v12 }
 0x1e4   : > { %1688 = vmatpush1.msra.mxu1 %v8383_v55  ;;  %1721 = vmatprep.mubr.f32.mxu1 %v3069_v12 }
 0x1e5   : > { %1609 = vmatmul.mubr.f32.vlgmr.msra.gmra.mxu0 %v1536_v44  ;;  %1722 = vmatmul.mubr.f32.vlgmr.msra.gmra.mxu1 %v1536_v44  ;;  %v1523_v44 = vld [vmem:[#allocation2 + $0xc8] sm:$0xff] }
 0x1e6   : > { %1614 = vmatprep.mubr.f32.mxu0 %v3069_v12  ;;  %1727 = vmatprep.mubr.f32.mxu1 %v3069_v12 }
 0x1e9   : > { %1615 = vmatmul.mubr.f32.gmra.mxu0 %v1537_v52  ;;  %1728 = vmatmul.mubr.f32.gmra.mxu1 %v1537_v52 }
 0x1ea   : > { %1620 = vmatprep.mubr.f32.mxu0 %v3069_v12  ;;  %1733 = vmatprep.mubr.f32.mxu1 %v3069_v12 }
 0x1ed   : > { %1621 = vmatmul.mubr.f32.gmra.mxu0 %v1538_v9  ;;  %1734 = vmatmul.mubr.f32.gmra.mxu1 %v1538_v9  ;;  %v1524_v9 = vld [vmem:[#allocation2 + $0xe0] sm:$0xff] }
 0x1ee   : > { %1626 = vmatprep.mubr.f32.mxu0 %v3069_v12  ;;  %1739 = vmatprep.mubr.f32.mxu1 %v3069_v12 }
 0x1f1   : > { %1627 = vmatmul.mubr.f32.gmra.mxu0 %v1539_v60  ;;  %1740 = vmatmul.mubr.f32.gmra.mxu1 %v1539_v60  ;;  %v1526_v60 = vld [vmem:[#allocation2 + $0x70] sm:$0xff] }
 0x1f2   : > { %1632 = vmatprep.mubr.f32.mxu0 %v3069_v12  ;;  %1745 = vmatprep.mubr.f32.mxu1 %v3069_v12 }
 0x1f5   : > { %1633 = vmatmul.mubr.f32.gmra.mxu0 %v1540_v57  ;;  %1746 = vmatmul.mubr.f32.gmra.mxu1 %v1540_v57 }
 0x1f6   : > { %1638 = vmatprep.mubr.f32.mxu0 %v3069_v12  ;;  %1751 = vmatprep.mubr.f32.mxu1 %v3069_v12 }
 0x1f9   : > { %1639 = vmatmul.mubr.f32.gmra.mxu0 %v1541_v10  ;;  %1752 = vmatmul.mubr.f32.gmra.mxu1 %v1541_v10 }
 0x1fa   : > { %1644 = vmatprep.mubr.f32.mxu0 %v3069_v12  ;;  %1757 = vmatprep.mubr.f32.mxu1 %v3069_v12 }
 0x1fd   : > { %1645 = vmatmul.mubr.f32.gmra.mxu0 %v1542_v41  ;;  %1758 = vmatmul.mubr.f32.gmra.mxu1 %v1542_v41 }
 0x1fe   : > { %1650 = vmatprep.mubr.f32.mxu0 %v3069_v12  ;;  %1763 = vmatprep.mubr.f32.mxu1 %v3069_v12 }
 0x201   : > { %1651 = vmatmul.mubr.f32.gmra.mxu0 %v1543_v62  ;;  %1764 = vmatmul.mubr.f32.gmra.mxu1 %v1543_v62 }
 0x2a5   : > { %v1610_v18 = vpop.f32.mrf.mxu0  ;;  %v1723_v5 = vpop.f32.mrf.mxu1 }
 0x2a6   : > { %v1770_v39 = vadd.f32 %v1610_v18, %v1504_v27  ;;  %v1772_v6 = vadd.f32 %v1723_v5, %v1506_v35  ;;  %v1525_v27 = vld [vmem:[#allocation2 + $0x90] sm:$0xff]  ;;  %v1527_v35 = vld [vmem:[#allocation2 + $0xc0] sm:$0xff] }
 0x2a7   : > { %v1612_v63 = vpop.f32.mrf.mxu0  ;;  %v1725_v22 = vpop.f32.mrf.mxu1 }
 0x2a8   : > { %1802 = vst [vmem:[#allocation2 + $0xb0] sm:$0xff] %v1770_v39  ;;  %1804 = vst [vmem:[#allocation2 + $0xd8] sm:$0xff] %v1772_v6  ;;  %v1771_v26 = vadd.f32 %v1612_v63, %v1505_v47  ;;  %v1773_v45 = vadd.f32 %v1725_v22, %v1507_v51  ;;  %v1528_v39 = vld [vmem:[#allocation2 + $0xa8] sm:$0xff]  ;;  %v1530_v6 = vld [vmem:[#allocation2 + $0x10] sm:$0xff] }
 0x2a9   : > { %v1616_v32 = vpop.f32.mrf.mxu0  ;;  %v1729_v31 = vpop.f32.mrf.mxu1 }
 0x2aa   : > { %1803 = vst [vmem:[#allocation2] sm:$0xff] %v1771_v26  ;;  %1805 = vst [vmem:[#allocation2 + $0x18] sm:$0xff] %v1773_v45  ;;  %v1774_v36 = vadd.f32 %v1616_v32, %v1508_v3  ;;  %v1776_v15 = vadd.f32 %v1729_v31, %v1510_v1  ;;  %v1529_v26 = vld [vmem:[#allocation2 + $0xd0] sm:$0xff]  ;;  %v1531_v45 = vld [vmem:[#allocation2 + $0x28] sm:$0xff] }
 0x2ab   : > { %v1618_v30 = vpop.f32.mrf.mxu0  ;;  %v1731_v14 = vpop.f32.mrf.mxu1 }
 0x2ac   : > { %1806 = vst [vmem:[#allocation2 + $0x50] sm:$0xff] %v1774_v36  ;;  %1808 = vst [vmem:[#allocation2 + $0x30] sm:$0xff] %v1776_v15  ;;  %v1775_v38 = vadd.f32 %v1618_v30, %v1509_v42  ;;  %v1777_v7 = vadd.f32 %v1731_v14, %v1511_v0  ;;  %v1532_v36 = vld [vmem:[#allocation2 + $0xa0] sm:$0xff] }
 0x2ad   : > { %v1622_v49 = vpop.f32.mrf.mxu0  ;;  %v1735_v16 = vpop.f32.mrf.mxu1  ;;  %v1534_v15 = vld [vmem:[#allocation2 + $0x20] sm:$0xff] }
 0x2ae   : > { %1807 = vst [vmem:[#allocation2 + $0x68] sm:$0xff] %v1775_v38  ;;  %1809 = vst [vmem:[#allocation2 + $0x48] sm:$0xff] %v1777_v7  ;;  %v1778_v61 = vadd.f32 %v1622_v49, %v1512_v53  ;;  %v1780_v37 = vadd.f32 %v1735_v16, %v1514_v2  ;;  %v1533_v38 = vld [vmem:[#allocation2 + $0xf8] sm:$0xff] }
 0x2af   : > { %v1624_v20 = vpop.f32.mrf.mxu0  ;;  %v1737_v13 = vpop.f32.mrf.mxu1  ;;  %v1535_v7 = vld [vmem:[#allocation2 + $0x98] sm:$0xff] }
 0x2b0   : > { %1810 = vst [vmem:[#allocation2 + $0x80] sm:$0xff] %v1778_v61  ;;  %1812 = vst [vmem:[#allocation2 + $0xe8] sm:$0xff] %v1780_v37  ;;  %v1779_v8 = vadd.f32 %v1624_v20, %v1513_v33  ;;  %v1781_v19 = vadd.f32 %v1737_v13, %v1515_v43 }
 0x2b1   : > { %v1628_v48 = vpop.f32.mrf.mxu0  ;;  %v1741_v28 = vpop.f32.mrf.mxu1 }
 0x2b2   : > { %1811 = vst [vmem:[#allocation2 + $0x88] sm:$0xff] %v1779_v8  ;;  %1813 = vst [vmem:[#allocation2 + $0xb8] sm:$0xff] %v1781_v19  ;;  %v1782_v59 = vadd.f32 %v1628_v48, %v1516_v23  ;;  %v1784_v56 = vadd.f32 %v1741_v28, %v1518_v40 }
 0x2b3   : > { %v1630_v17 = vpop.f32.mrf.mxu0  ;;  %v1743_v21 = vpop.f32.mrf.mxu1 }
 0x2b4   : > { %1814 = vst [vmem:[#allocation2 + $0x60] sm:$0xff] %v1782_v59  ;;  %1816 = vst [vmem:[#allocation2 + $0x8] sm:$0xff] %v1784_v56  ;;  %v1783_v25 = vadd.f32 %v1630_v17, %v1517_v54  ;;  %v1785_v50 = vadd.f32 %v1743_v21, %v1519_v58 }
 0x2b5   : > { %v1634_v29 = vpop.f32.mrf.mxu0  ;;  %v1747_v11 = vpop.f32.mrf.mxu1 }
 0x2b6   : > { %1815 = vst [vmem:[#allocation2 + $0xf0] sm:$0xff] %v1783_v25  ;;  %1817 = vst [vmem:[#allocation2 + $0x78] sm:$0xff] %v1785_v50  ;;  %v1786_v46 = vadd.f32 %v1634_v29, %v1520_v4  ;;  %v1788_v12 = vadd.f32 %v1747_v11, %v1522_v24 }
 0x2b7   : > { %v1636_v55 = vpop.f32.mrf.mxu0  ;;  %v1749_v52 = vpop.f32.mrf.mxu1 }
 0x2b8   : > { %1818 = vst [vmem:[#allocation2 + $0x38] sm:$0xff] %v1786_v46  ;;  %1820 = vst [vmem:[#allocation2 + $0x40] sm:$0xff] %v1788_v12  ;;  %v1787_v57 = vadd.f32 %v1636_v55, %v1521_v34  ;;  %v1789_v10 = vadd.f32 %v1749_v52, %v1523_v44 }
 0x2b9   : > { %v1640_v41 = vpop.f32.mrf.mxu0  ;;  %v1753_v62 = vpop.f32.mrf.mxu1 }
 0x2ba   : > { %1819 = vst [vmem:[#allocation2 + $0x58] sm:$0xff] %v1787_v57  ;;  %1821 = vst [vmem:[#allocation2 + $0xc8] sm:$0xff] %v1789_v10  ;;  %v1790_v18 = vadd.f32 %v1640_v41, %v1524_v9  ;;  %v1792_v5 = vadd.f32 %v1753_v62, %v1526_v60 }
 0x2bb   : > { %v1642_v47 = vpop.f32.mrf.mxu0  ;;  %v1755_v51 = vpop.f32.mrf.mxu1 }
 0x2bc   : > { %1822 = vst [vmem:[#allocation2 + $0xe0] sm:$0xff] %v1790_v18  ;;  %1824 = vst [vmem:[#allocation2 + $0x70] sm:$0xff] %v1792_v5  ;;  %v1791_v63 = vadd.f32 %v1642_v47, %v1525_v27  ;;  %v1793_v22 = vadd.f32 %v1755_v51, %v1527_v35 }
 0x2bd   : > { %v1646_v3 = vpop.f32.mrf.mxu0  ;;  %v1759_v1 = vpop.f32.mrf.mxu1 }
 0x2be   : > { %1823 = vst [vmem:[#allocation2 + $0x90] sm:$0xff] %v1791_v63  ;;  %1825 = vst [vmem:[#allocation2 + $0xc0] sm:$0xff] %v1793_v22  ;;  %v1794_v32 = vadd.f32 %v1646_v3, %v1528_v39  ;;  %v1796_v31 = vadd.f32 %v1759_v1, %v1530_v6 }
 0x2bf   : > { %v1648_v42 = vpop.f32.mrf.mxu0  ;;  %v1761_v0 = vpop.f32.mrf.mxu1 }
 0x2c0   : > { %1826 = vst [vmem:[#allocation2 + $0xa8] sm:$0xff] %v1794_v32  ;;  %1828 = vst [vmem:[#allocation2 + $0x10] sm:$0xff] %v1796_v31  ;;  %v1795_v30 = vadd.f32 %v1648_v42, %v1529_v26  ;;  %v1797_v14 = vadd.f32 %v1761_v0, %v1531_v45 }
 0x2c1   : > { %v1652_v53 = vpop.f32.mrf.mxu0  ;;  %v1765_v2 = vpop.f32.mrf.mxu1 }
 0x2c2   : > { %1827 = vst [vmem:[#allocation2 + $0xd0] sm:$0xff] %v1795_v30  ;;  %1829 = vst [vmem:[#allocation2 + $0x28] sm:$0xff] %v1797_v14  ;;  %v1798_v49 = vadd.f32 %v1652_v53, %v1532_v36  ;;  %v1800_v16 = vadd.f32 %v1765_v2, %v1534_v15  ;;  %1837 = sbr.rel (%p2814_p7) target bundleno = 847 (0x34f), region = 74 }
 0x2c3   : > { %v1654_v33 = vpop.f32.mrf.mxu0  ;;  %v1767_v43 = vpop.f32.mrf.mxu1 }
 0x2c4   : > { %1830 = vst [vmem:[#allocation2 + $0xa0] sm:$0xff] %v1798_v49  ;;  %1832 = vst [vmem:[#allocation2 + $0x20] sm:$0xff] %v1800_v16  ;;  %v1799_v61 = vadd.f32 %v1654_v33, %v1533_v38  ;;  %v1801_v37 = vadd.f32 %v1767_v43, %v1535_v7 }
 0x2c6   : > { %1831 = vst [vmem:[#allocation2 + $0xf8] sm:$0xff] %v1799_v61  ;;  %1833 = vst [vmem:[#allocation2 + $0x98] sm:$0xff] %v1801_v37 }
 0x2c7   : > { %v8384_v20 = vld [vmem:[#allocation9_spill] sm:$0xff]  ;;  %v8385_v23 = vld [vmem:[#allocation10_spill] sm:$0xff]  ;;  %v8386_v8 = vld [vmem:[#allocation11_spill] sm:$0xff] }
 0x2c8   : > { %v2829_v13 = vtrunc.f32 %v8384_v20  ;;  %v2831_v40 = vtrunc.f32 %v8385_v23  ;;  %v2833_v19 = vtrunc.f32 %v8386_v8  ;;  %v8387_v48 = vld [vmem:[#allocation12_spill] sm:$0xff]  ;;  %v8388_v54 = vld [vmem:[#allocation13_spill] sm:$0xff]  ;;  %v8390_v59 = vld [vmem:[#allocation18_spill] sm:$0xff] }
 0x2c9   : > { %v2835_v28 = vtrunc.f32 %v8387_v48  ;;  %v8389_v58 = vsub.f32 1.0, %v8388_v54  ;;  %vm8391_vm15 = vnez %v8390_v59  ;;  %v8392_v17 = vld [vmem:[#allocation14_spill] sm:$0xff]  ;;  %v8394_v4 = vld [vmem:[#allocation19_spill] sm:$0xff]  ;;  %v8398_v29 = vld [vmem:[#allocation20_spill] sm:$0xff] }
 0x2ca   : > { %v8393_v21 = vsub.f32 1.0, %v8392_v17  ;;  %vm8395_vm11 = vnez %v8394_v4  ;;  %v8396_v25 = vld [vmem:[#allocation15_spill] sm:$0xff]  ;;  %vm8399_vm2 = vnez %v8398_v29  ;;  %v8400_v34 = vld [vmem:[#allocation16_spill] sm:$0xff]  ;;  %v8402_v46 = vld [vmem:[#allocation21_spill] sm:$0xff]  ;;  %v6523_v55 = vcvt.f32.s32 %v2829_v13 }
 0x2cb   : > { %v6503_v56 = vsel %vm8391_vm15, %v8389_v58, 0.0  ;;  %v8397_v50 = vsub.f32 1.0, %v8396_v25  ;;  %v8401_v44 = vsub.f32 1.0, %v8400_v34  ;;  %vm8403_vm10 = vnez %v8402_v46  ;;  %v8404_v57 = vld [vmem:[#allocation22_spill] sm:$0xff]  ;;  %v8406_v41 = vld [vmem:[#allocation23_spill] sm:$0xff]  ;;  %v8408_v27 = vld [vmem:[#allocation24_spill] sm:$0xff] }
 0x2cc   : > { %v6509_v24 = vsel %vm8395_vm11, %v8393_v21, 0.0  ;;  %v6525_v52 = vcvt.f32.s32 %v2831_v40  ;;  %v6527_v9 = vcvt.f32.s32 %v2833_v19  ;;  %v6529_v60 = vcvt.f32.s32 %v2835_v28  ;;  %v8410_v18 = vld [vmem:[#allocation25_spill] sm:$0xff]  ;;  %v1870_v42 = vld [vmem:[#allocation2 + $0xb0] sm:$0xf]  ;;  %v1872_v36 = vld [vmem:[#allocation2 + $0xd8] sm:$0xf] }
 0x2cd   : > { %v6515_v11 = vsel %vm8399_vm2, %v8397_v50, 0.0  ;;  %v6521_v12 = vsel %vm8403_vm10, %v8401_v44, 0.0  ;;  %vm8405_vm13 = vnez %v8404_v57  ;;  %vm8407_vm8 = vnez %v8406_v41  ;;  %v1871_v0 = vld [vmem:[#allocation2] sm:$0xf]  ;;  %v1873_v15 = vld [vmem:[#allocation2 + $0x18] sm:$0xf] }
 0x2ce   : > { %v6534_v10 = vsel %vm8405_vm13, %v8388_v54, 0.0  ;;  %v6539_v62 = vsel %vm8407_vm8, %v8392_v17, 0.0  ;;  %vm8409_vm0 = vnez %v8408_v27  ;;  %vm8411_vm9 = vnez %v8410_v18  ;;  %v8412_v30 = vld [vmem:[#allocation17_spill] sm:$0xff]  ;;  %v1914_v58 = vld [vmem:[#allocation2 + $0xb0] sm:$0xf0] }
 0x2cf   : > { %v6544_v35 = vsel %vm8409_vm0, %v8396_v25, 0.0  ;;  %v6549_v5 = vsel %vm8411_vm9, %v8400_v34, 0.0  ;;  %vm1850_vm14 = vcmp.eq.s32.totalorder %v6523_v55, 0  ;;  %vm1851_vm5 = vcmp.eq.s32.totalorder %v6525_v52, 0  ;;  %v1915_v59 = vld [vmem:[#allocation2] sm:$0xf0] }
 0x2d0   : > { %vm1852_vm12 = vcmp.eq.s32.totalorder %v6527_v9, 0  ;;  %vm1853_vm1 = vcmp.eq.s32.totalorder %v6529_v60, 0  ;;  %v1854_v47 = vsel %vm1850_vm14, %v6503_v56, 0.0  ;;  %v1855_v51 = vsel %vm1851_vm5, %v6509_v24, 0.0  ;;  %v1916_v17 = vld [vmem:[#allocation2 + $0xd8] sm:$0xf0] }
 0x2d1   : > { %v1856_v39 = vsel %vm1852_vm12, %v6515_v11, 0.0  ;;  %v1857_v6 = vsel %vm1853_vm1, %v6521_v12, 0.0  ;;  %vm1858_vm7 = vcmp.eq.s32.totalorder %v6523_v55, 4294967295  ;;  %vm1859_vm4 = vcmp.eq.s32.totalorder %v6525_v52, 4294967295  ;;  %v1917_v21 = vld [vmem:[#allocation2 + $0x18] sm:$0xf0] }
 0x2d2   : > { %vm1860_vm6 = vcmp.eq.s32.totalorder %v6527_v9, 4294967295  ;;  %vm1861_vm3 = vcmp.eq.s32.totalorder %v6529_v60, 4294967295  ;;  %v1862_v63 = vsel %vm1858_vm7, %v6534_v10, 0.0  ;;  %v1863_v22 = vsel %vm1859_vm4, %v6539_v62, 0.0 }
 0x2d3   : > { %v1864_v3 = vsel %vm1860_vm6, %v6544_v35, 0.0  ;;  %v1865_v1 = vsel %vm1861_vm3, %v6549_v5, 0.0  ;;  %v1866_v26 = vadd.f32 %v1862_v63, %v1854_v47  ;;  %v1867_v45 = vadd.f32 %v1863_v22, %v1855_v51 }
 0x2d4   : > { %v1868_v32 = vadd.f32 %v1864_v3, %v1856_v39  ;;  %v1869_v31 = vadd.f32 %v1865_v1, %v1857_v6  ;;  %vm1898_vm15 = vcmp.eq.s32.totalorder %v6523_v55, 1  ;;  %vm1899_vm11 = vcmp.eq.s32.totalorder %v6525_v52, 1 }
 0x2d5   : > { %vm1900_vm2 = vcmp.eq.s32.totalorder %v6527_v9, 1  ;;  %vm1901_vm10 = vcmp.eq.s32.totalorder %v6529_v60, 1  ;;  %v1877_v14 = vrot.slane %v1866_v26, %v8412_v30  ;;  %v1881_v53 = vrot.slane %v1867_v45, %v8412_v30 }
 0x2d6   : > { %v1885_v2 = vrot.slane %v1868_v32, %v8412_v30  ;;  %v1889_v38 = vrot.slane %v1869_v31, %v8412_v30  ;;  %v1902_v7 = vsel %vm1898_vm15, %v6503_v56, 0.0  ;;  %v1903_v49 = vsel %vm1899_vm11, %v6509_v24, 0.0 }
 0x2d7   : > { %v1904_v16 = vsel %vm1900_vm2, %v6515_v11, 0.0  ;;  %v1905_v33 = vsel %vm1901_vm10, %v6521_v12, 0.0  ;;  %v1890_v43 = vmul.f32 %v1877_v14, %v1870_v42  ;;  %v1891_v61 = vmul.f32 %v1881_v53, %v1871_v0  ;;  %v1970_v0 = vld [vmem:[#allocation2 + $0x50] sm:$0xf] }
 0x2d8   : > { %v1892_v37 = vmul.f32 %v1885_v2, %v1872_v36  ;;  %v1893_v20 = vmul.f32 %v1889_v38, %v1873_v15  ;;  %v1906_v13 = vsel %vm1850_vm14, %v6534_v10, 0.0  ;;  %v1907_v23 = vsel %vm1851_vm5, %v6539_v62, 0.0  ;;  %v1971_v2 = vld [vmem:[#allocation2 + $0x68] sm:$0xf]  ;;  %v1972_v38 = vld [vmem:[#allocation2 + $0x30] sm:$0xf] }
 0x2d9   : > { %v1908_v40 = vsel %vm1852_vm12, %v6544_v35, 0.0  ;;  %v1909_v8 = vsel %vm1853_vm1, %v6549_v5, 0.0  ;;  %v1910_v19 = vadd.f32 %v1906_v13, %v1902_v7  ;;  %v1911_v48 = vadd.f32 %v1907_v23, %v1903_v49  ;;  %v1973_v7 = vld [vmem:[#allocation2 + $0x48] sm:$0xf] }
 0x2da   : > { %v1912_v28 = vadd.f32 %v1908_v40, %v1904_v16  ;;  %v1913_v54 = vadd.f32 %v1909_v8, %v1905_v33  ;;  %vm1954_vm13 = vcmp.eq.s32.totalorder %v6523_v55, 2  ;;  %vm1955_vm8 = vcmp.eq.s32.totalorder %v6525_v52, 2 }
 0x2db   : > { %vm1956_vm0 = vcmp.eq.s32.totalorder %v6527_v9, 2  ;;  %vm1957_vm9 = vcmp.eq.s32.totalorder %v6529_v60, 2  ;;  %v1921_v4 = vrot.slane %v1910_v19, %v8412_v30  ;;  %v1925_v25 = vrot.slane %v1911_v48, %v8412_v30 }
 0x2dc   : > { %v1929_v50 = vrot.slane %v1912_v28, %v8412_v30  ;;  %v1933_v29 = vrot.slane %v1913_v54, %v8412_v30  ;;  %v1958_v34 = vsel %vm1954_vm13, %v6503_v56, 0.0  ;;  %v1959_v44 = vsel %vm1955_vm8, %v6509_v24, 0.0 }
 0x2dd   : > { %v1960_v46 = vsel %vm1956_vm0, %v6515_v11, 0.0  ;;  %v1961_v57 = vsel %vm1957_vm9, %v6521_v12, 0.0  ;;  %v1934_v41 = vmul.f32 %v1921_v4, %v1914_v58  ;;  %v1935_v27 = vmul.f32 %v1925_v25, %v1915_v59 }
 0x2de   : > { %v1936_v18 = vmul.f32 %v1929_v50, %v1916_v17  ;;  %v1937_v47 = vmul.f32 %v1933_v29, %v1917_v21  ;;  %v1962_v51 = vsel %vm1898_vm15, %v6534_v10, 0.0  ;;  %v1963_v39 = vsel %vm1899_vm11, %v6539_v62, 0.0 }
 0x2df   : > { %v1964_v6 = vsel %vm1900_vm2, %v6544_v35, 0.0  ;;  %v1965_v63 = vsel %vm1901_vm10, %v6549_v5, 0.0  ;;  %v1942_v22 = vrot.slane %v1934_v41, 4  ;;  %v1943_v3 = vrot.slane %v1935_v27, 4  ;;  %v2017_v41 = vld [vmem:[#allocation2 + $0x48] sm:$0xf0] }
 0x2e0   : > { %v1944_v1 = vrot.slane %v1936_v18, 4  ;;  %v1945_v26 = vrot.slane %v1937_v47, 4  ;;  %v1966_v45 = vadd.f32 %v1962_v51, %v1958_v34  ;;  %v1967_v32 = vadd.f32 %v1963_v39, %v1959_v44  ;;  %v2014_v44 = vld [vmem:[#allocation2 + $0x50] sm:$0xf0] }
 0x2e1   : > { %v1968_v31 = vadd.f32 %v1964_v6, %v1960_v46  ;;  %v1969_v42 = vadd.f32 %v1965_v63, %v1961_v57  ;;  %v1950_v36 = vadd.f32 %v1942_v22, %v1890_v43  ;;  %v1951_v15 = vadd.f32 %v1943_v3, %v1891_v61  ;;  %v2015_v46 = vld [vmem:[#allocation2 + $0x68] sm:$0xf0]  ;;  %v2016_v57 = vld [vmem:[#allocation2 + $0x30] sm:$0xf0] }
 0x2e2   : > { %v1952_v14 = vadd.f32 %v1944_v1, %v1892_v37  ;;  %v1953_v53 = vadd.f32 %v1945_v26, %v1893_v20  ;;  %v1977_v49 = vrot.slane %v1966_v45, %v8412_v30  ;;  %v1981_v16 = vrot.slane %v1967_v32, %v8412_v30 }
 0x2e3   : > { %v1985_v33 = vrot.slane %v1968_v31, %v8412_v30  ;;  %v1989_v13 = vrot.slane %v1969_v42, %v8412_v30  ;;  %vm1998_vm14 = vcmp.eq.s32.totalorder %v6523_v55, 3  ;;  %vm1999_vm5 = vcmp.eq.s32.totalorder %v6525_v52, 3 }
 0x2e4   : > { %vm2000_vm12 = vcmp.eq.s32.totalorder %v6527_v9, 3  ;;  %vm2001_vm1 = vcmp.eq.s32.totalorder %v6529_v60, 3  ;;  %v1990_v43 = vmul.f32 %v1977_v49, %v1970_v0  ;;  %v1991_v61 = vmul.f32 %v1981_v16, %v1971_v2  ;;  %v2070_v16 = vld [vmem:[#allocation2 + $0x80] sm:$0xf] }
 0x2e5   : > { %v1992_v37 = vmul.f32 %v1985_v33, %v1972_v38  ;;  %v1993_v20 = vmul.f32 %v1989_v13, %v1973_v7  ;;  %v2002_v23 = vsel %vm1998_vm14, %v6503_v56, 0.0  ;;  %v2003_v40 = vsel %vm1999_vm5, %v6509_v24, 0.0 }
 0x2e6   : > { %v2004_v8 = vsel %vm2000_vm12, %v6515_v11, 0.0  ;;  %v2005_v19 = vsel %vm2001_vm1, %v6521_v12, 0.0  ;;  %v1994_v48 = vadd.f32 %v1990_v43, %v1950_v36  ;;  %v1995_v28 = vadd.f32 %v1991_v61, %v1951_v15 }
 0x2e7   : > { %v1996_v54 = vadd.f32 %v1992_v37, %v1952_v14  ;;  %v1997_v58 = vadd.f32 %v1993_v20, %v1953_v53  ;;  %v2006_v59 = vsel %vm1954_vm13, %v6534_v10, 0.0  ;;  %v2007_v17 = vsel %vm1955_vm8, %v6539_v62, 0.0  ;;  %v2071_v37 = vld [vmem:[#allocation2 + $0x88] sm:$0xf] }
 0x2e8   : > { %v2008_v21 = vsel %vm1956_vm0, %v6544_v35, 0.0  ;;  %v2009_v4 = vsel %vm1957_vm9, %v6549_v5, 0.0  ;;  %v2010_v25 = vadd.f32 %v2006_v59, %v2002_v23  ;;  %v2011_v50 = vadd.f32 %v2007_v17, %v2003_v40  ;;  %v2072_v20 = vld [vmem:[#allocation2 + $0xe8] sm:$0xf]  ;;  %v2073_v23 = vld [vmem:[#allocation2 + $0xb8] sm:$0xf] }
 0x2e9   : > { %v2012_v29 = vadd.f32 %v2008_v21, %v2004_v8  ;;  %v2013_v34 = vadd.f32 %v2009_v4, %v2005_v19  ;;  %vm2054_vm7 = vcmp.eq.s32.totalorder %v6523_v55, 4  ;;  %vm2055_vm4 = vcmp.eq.s32.totalorder %v6525_v52, 4 }
 0x2ea   : > { %vm2056_vm6 = vcmp.eq.s32.totalorder %v6527_v9, 4  ;;  %vm2057_vm3 = vcmp.eq.s32.totalorder %v6529_v60, 4  ;;  %v2021_v27 = vrot.slane %v2010_v25, %v8412_v30  ;;  %v2025_v18 = vrot.slane %v2011_v50, %v8412_v30 }
 0x2eb   : > { %v2029_v47 = vrot.slane %v2012_v29, %v8412_v30  ;;  %v2033_v51 = vrot.slane %v2013_v34, %v8412_v30  ;;  %v2058_v39 = vsel %vm2054_vm7, %v6503_v56, 0.0  ;;  %v2059_v6 = vsel %vm2055_vm4, %v6509_v24, 0.0 }
 0x2ec   : > { %v2060_v63 = vsel %vm2056_vm6, %v6515_v11, 0.0  ;;  %v2061_v22 = vsel %vm2057_vm3, %v6521_v12, 0.0  ;;  %v2034_v3 = vmul.f32 %v2021_v27, %v2014_v44  ;;  %v2035_v1 = vmul.f32 %v2025_v18, %v2015_v46 }
 0x2ed   : > { %v2036_v26 = vmul.f32 %v2029_v47, %v2016_v57  ;;  %v2037_v45 = vmul.f32 %v2033_v51, %v2017_v41  ;;  %v2062_v32 = vsel %vm1998_vm14, %v6534_v10, 0.0  ;;  %v2063_v31 = vsel %vm1999_vm5, %v6539_v62, 0.0 }
 0x2ee   : > { %v2064_v42 = vsel %vm2000_vm12, %v6544_v35, 0.0  ;;  %v2065_v0 = vsel %vm2001_vm1, %v6549_v5, 0.0  ;;  %v2042_v36 = vrot.slane %v2034_v3, 4  ;;  %v2043_v15 = vrot.slane %v2035_v1, 4  ;;  %v2117_v3 = vld [vmem:[#allocation2 + $0xb8] sm:$0xf0] }
 0x2ef   : > { %v2044_v14 = vrot.slane %v2036_v26, 4  ;;  %v2045_v53 = vrot.slane %v2037_v45, 4  ;;  %v2066_v2 = vadd.f32 %v2062_v32, %v2058_v39  ;;  %v2067_v38 = vadd.f32 %v2063_v31, %v2059_v6  ;;  %v2114_v6 = vld [vmem:[#allocation2 + $0x80] sm:$0xf0] }
 0x2f0   : > { %v2068_v7 = vadd.f32 %v2064_v42, %v2060_v63  ;;  %v2069_v49 = vadd.f32 %v2065_v0, %v2061_v22  ;;  %v2050_v33 = vadd.f32 %v2042_v36, %v1994_v48  ;;  %v2051_v13 = vadd.f32 %v2043_v15, %v1995_v28  ;;  %v2115_v63 = vld [vmem:[#allocation2 + $0x88] sm:$0xf0] }
 0x2f1   : > { %v2052_v43 = vadd.f32 %v2044_v14, %v1996_v54  ;;  %v2053_v61 = vadd.f32 %v2045_v53, %v1997_v58  ;;  %v2077_v40 = vrot.slane %v2066_v2, %v8412_v30  ;;  %v2081_v8 = vrot.slane %v2067_v38, %v8412_v30  ;;  %v2116_v22 = vld [vmem:[#allocation2 + $0xe8] sm:$0xf0] }
 0x2f2   : > { %v2085_v19 = vrot.slane %v2068_v7, %v8412_v30  ;;  %v2089_v59 = vrot.slane %v2069_v49, %v8412_v30  ;;  %vm2098_vm15 = vcmp.eq.s32.totalorder %v6523_v55, 5  ;;  %vm2099_vm11 = vcmp.eq.s32.totalorder %v6525_v52, 5 }
 0x2f3   : > { %vm2100_vm2 = vcmp.eq.s32.totalorder %v6527_v9, 5  ;;  %vm2101_vm10 = vcmp.eq.s32.totalorder %v6529_v60, 5  ;;  %v2090_v48 = vmul.f32 %v2077_v40, %v2070_v16  ;;  %v2091_v28 = vmul.f32 %v2081_v8, %v2071_v37  ;;  %v2170_v8 = vld [vmem:[#allocation2 + $0x60] sm:$0xf] }
 0x2f4   : > { %v2092_v54 = vmul.f32 %v2085_v19, %v2072_v20  ;;  %v2093_v58 = vmul.f32 %v2089_v59, %v2073_v23  ;;  %v2102_v17 = vsel %vm2098_vm15, %v6503_v56, 0.0  ;;  %v2103_v21 = vsel %vm2099_vm11, %v6509_v24, 0.0 }
 0x2f5   : > { %v2104_v4 = vsel %vm2100_vm2, %v6515_v11, 0.0  ;;  %v2105_v25 = vsel %vm2101_vm10, %v6521_v12, 0.0  ;;  %v2094_v50 = vadd.f32 %v2090_v48, %v2050_v33  ;;  %v2095_v29 = vadd.f32 %v2091_v28, %v2051_v13 }
 0x2f6   : > { %v2096_v34 = vadd.f32 %v2092_v54, %v2052_v43  ;;  %v2097_v44 = vadd.f32 %v2093_v58, %v2053_v61  ;;  %v2106_v46 = vsel %vm2054_vm7, %v6534_v10, 0.0  ;;  %v2107_v57 = vsel %vm2055_vm4, %v6539_v62, 0.0  ;;  %v2171_v54 = vld [vmem:[#allocation2 + $0xf0] sm:$0xf]  ;;  %v2172_v58 = vld [vmem:[#allocation2 + $0x8] sm:$0xf] }
 0x2f7   : > { %v2108_v41 = vsel %vm2056_vm6, %v6544_v35, 0.0  ;;  %v2109_v27 = vsel %vm2057_vm3, %v6549_v5, 0.0  ;;  %v2110_v18 = vadd.f32 %v2106_v46, %v2102_v17  ;;  %v2111_v47 = vadd.f32 %v2107_v57, %v2103_v21  ;;  %v2173_v17 = vld [vmem:[#allocation2 + $0x78] sm:$0xf] }
 0x2f8   : > { %v2112_v51 = vadd.f32 %v2108_v41, %v2104_v4  ;;  %v2113_v39 = vadd.f32 %v2109_v27, %v2105_v25  ;;  %vm2154_vm13 = vcmp.eq.s32.totalorder %v6523_v55, 6  ;;  %vm2155_vm8 = vcmp.eq.s32.totalorder %v6525_v52, 6 }
 0x2f9   : > { %vm2156_vm0 = vcmp.eq.s32.totalorder %v6527_v9, 6  ;;  %vm2157_vm9 = vcmp.eq.s32.totalorder %v6529_v60, 6  ;;  %v2121_v1 = vrot.slane %v2110_v18, %v8412_v30  ;;  %v2125_v26 = vrot.slane %v2111_v47, %v8412_v30 }
 0x2fa   : > { %v2129_v45 = vrot.slane %v2112_v51, %v8412_v30  ;;  %v2133_v32 = vrot.slane %v2113_v39, %v8412_v30  ;;  %v2158_v31 = vsel %vm2154_vm13, %v6503_v56, 0.0  ;;  %v2159_v42 = vsel %vm2155_vm8, %v6509_v24, 0.0 }
 0x2fb   : > { %v2160_v0 = vsel %vm2156_vm0, %v6515_v11, 0.0  ;;  %v2161_v36 = vsel %vm2157_vm9, %v6521_v12, 0.0  ;;  %v2134_v15 = vmul.f32 %v2121_v1, %v2114_v6  ;;  %v2135_v14 = vmul.f32 %v2125_v26, %v2115_v63 }
 0x2fc   : > { %v2136_v53 = vmul.f32 %v2129_v45, %v2116_v22  ;;  %v2137_v2 = vmul.f32 %v2133_v32, %v2117_v3  ;;  %v2162_v38 = vsel %vm2098_vm15, %v6534_v10, 0.0  ;;  %v2163_v7 = vsel %vm2099_vm11, %v6539_v62, 0.0 }
 0x2fd   : > { %v2164_v49 = vsel %vm2100_vm2, %v6544_v35, 0.0  ;;  %v2165_v16 = vsel %vm2101_vm10, %v6549_v5, 0.0  ;;  %v2142_v33 = vrot.slane %v2134_v15, 4  ;;  %v2143_v13 = vrot.slane %v2135_v14, 4  ;;  %v2217_v15 = vld [vmem:[#allocation2 + $0x78] sm:$0xf0] }
 0x2fe   : > { %v2144_v43 = vrot.slane %v2136_v53, 4  ;;  %v2145_v61 = vrot.slane %v2137_v2, 4  ;;  %v2166_v37 = vadd.f32 %v2162_v38, %v2158_v31  ;;  %v2167_v20 = vadd.f32 %v2163_v7, %v2159_v42  ;;  %v2214_v42 = vld [vmem:[#allocation2 + $0x60] sm:$0xf0] }
 0x2ff   : > { %v2168_v23 = vadd.f32 %v2164_v49, %v2160_v0  ;;  %v2169_v40 = vadd.f32 %v2165_v16, %v2161_v36  ;;  %v2150_v19 = vadd.f32 %v2142_v33, %v2094_v50  ;;  %v2151_v59 = vadd.f32 %v2143_v13, %v2095_v29  ;;  %v2215_v0 = vld [vmem:[#allocation2 + $0xf0] sm:$0xf0]  ;;  %v2216_v36 = vld [vmem:[#allocation2 + $0x8] sm:$0xf0] }
 0x300   : > { %v2152_v48 = vadd.f32 %v2144_v43, %v2096_v34  ;;  %v2153_v28 = vadd.f32 %v2145_v61, %v2097_v44  ;;  %v2177_v21 = vrot.slane %v2166_v37, %v8412_v30  ;;  %v2181_v4 = vrot.slane %v2167_v20, %v8412_v30 }
 0x301   : > { %v2185_v25 = vrot.slane %v2168_v23, %v8412_v30  ;;  %v2189_v46 = vrot.slane %v2169_v40, %v8412_v30  ;;  %vm2198_vm14 = vcmp.eq.s32.totalorder %v6523_v55, 7  ;;  %vm2199_vm5 = vcmp.eq.s32.totalorder %v6525_v52, 7 }
 0x302   : > { %vm2200_vm12 = vcmp.eq.s32.totalorder %v6527_v9, 7  ;;  %vm2201_vm1 = vcmp.eq.s32.totalorder %v6529_v60, 7  ;;  %v2190_v50 = vmul.f32 %v2177_v21, %v2170_v8  ;;  %v2191_v29 = vmul.f32 %v2181_v4, %v2171_v54  ;;  %v2270_v4 = vld [vmem:[#allocation2 + $0x38] sm:$0xf] }
 0x303   : > { %v2192_v34 = vmul.f32 %v2185_v25, %v2172_v58  ;;  %v2193_v44 = vmul.f32 %v2189_v46, %v2173_v17  ;;  %v2202_v57 = vsel %vm2198_vm14, %v6503_v56, 0.0  ;;  %v2203_v41 = vsel %vm2199_vm5, %v6509_v24, 0.0 }
 0x304   : > { %v2204_v27 = vsel %vm2200_vm12, %v6515_v11, 0.0  ;;  %v2205_v18 = vsel %vm2201_vm1, %v6521_v12, 0.0  ;;  %v2194_v47 = vadd.f32 %v2190_v50, %v2150_v19  ;;  %v2195_v51 = vadd.f32 %v2191_v29, %v2151_v59 }
 0x305   : > { %v2196_v39 = vadd.f32 %v2192_v34, %v2152_v48  ;;  %v2197_v6 = vadd.f32 %v2193_v44, %v2153_v28  ;;  %v2206_v63 = vsel %vm2154_vm13, %v6534_v10, 0.0  ;;  %v2207_v22 = vsel %vm2155_vm8, %v6539_v62, 0.0  ;;  %v2271_v34 = vld [vmem:[#allocation2 + $0x58] sm:$0xf]  ;;  %v2272_v44 = vld [vmem:[#allocation2 + $0x40] sm:$0xf] }
 0x306   : > { %v2208_v3 = vsel %vm2156_vm0, %v6544_v35, 0.0  ;;  %v2209_v1 = vsel %vm2157_vm9, %v6549_v5, 0.0  ;;  %v2210_v26 = vadd.f32 %v2206_v63, %v2202_v57  ;;  %v2211_v45 = vadd.f32 %v2207_v22, %v2203_v41  ;;  %v2273_v57 = vld [vmem:[#allocation2 + $0xc8] sm:$0xf] }
 0x307   : > { %v2212_v32 = vadd.f32 %v2208_v3, %v2204_v27  ;;  %v2213_v31 = vadd.f32 %v2209_v1, %v2205_v18  ;;  %vm2254_vm7 = vcmp.eq.s32.totalorder %v6523_v55, 8  ;;  %vm2255_vm4 = vcmp.eq.s32.totalorder %v6525_v52, 8 }
 0x308   : > { %vm2256_vm6 = vcmp.eq.s32.totalorder %v6527_v9, 8  ;;  %vm2257_vm3 = vcmp.eq.s32.totalorder %v6529_v60, 8  ;;  %v2221_v14 = vrot.slane %v2210_v26, %v8412_v30  ;;  %v2225_v53 = vrot.slane %v2211_v45, %v8412_v30 }
 0x309   : > { %v2229_v2 = vrot.slane %v2212_v32, %v8412_v30  ;;  %v2233_v38 = vrot.slane %v2213_v31, %v8412_v30  ;;  %v2258_v7 = vsel %vm2254_vm7, %v6503_v56, 0.0  ;;  %v2259_v49 = vsel %vm2255_vm4, %v6509_v24, 0.0 }
 0x30a   : > { %v2260_v16 = vsel %vm2256_vm6, %v6515_v11, 0.0  ;;  %v2261_v33 = vsel %vm2257_vm3, %v6521_v12, 0.0  ;;  %v2234_v13 = vmul.f32 %v2221_v14, %v2214_v42  ;;  %v2235_v43 = vmul.f32 %v2225_v53, %v2215_v0 }
 0x30b   : > { %v2236_v61 = vmul.f32 %v2229_v2, %v2216_v36  ;;  %v2237_v37 = vmul.f32 %v2233_v38, %v2217_v15  ;;  %v2262_v20 = vsel %vm2198_vm14, %v6534_v10, 0.0  ;;  %v2263_v23 = vsel %vm2199_vm5, %v6539_v62, 0.0 }
 0x30c   : > { %v2264_v40 = vsel %vm2200_vm12, %v6544_v35, 0.0  ;;  %v2265_v8 = vsel %vm2201_vm1, %v6549_v5, 0.0  ;;  %v2242_v19 = vrot.slane %v2234_v13, 4  ;;  %v2243_v59 = vrot.slane %v2235_v43, 4  ;;  %v2317_v13 = vld [vmem:[#allocation2 + $0xc8] sm:$0xf0] }
 0x30d   : > { %v2244_v48 = vrot.slane %v2236_v61, 4  ;;  %v2245_v28 = vrot.slane %v2237_v37, 4  ;;  %v2266_v54 = vadd.f32 %v2262_v20, %v2258_v7  ;;  %v2267_v58 = vadd.f32 %v2263_v23, %v2259_v49  ;;  %v2314_v49 = vld [vmem:[#allocation2 + $0x38] sm:$0xf0] }
 0x30e   : > { %v2268_v17 = vadd.f32 %v2264_v40, %v2260_v16  ;;  %v2269_v21 = vadd.f32 %v2265_v8, %v2261_v33  ;;  %v2250_v25 = vadd.f32 %v2242_v19, %v2194_v47  ;;  %v2251_v46 = vadd.f32 %v2243_v59, %v2195_v51  ;;  %v2315_v16 = vld [vmem:[#allocation2 + $0x58] sm:$0xf0]  ;;  %v2316_v33 = vld [vmem:[#allocation2 + $0x40] sm:$0xf0] }
 0x30f   : > { %v2252_v50 = vadd.f32 %v2244_v48, %v2196_v39  ;;  %v2253_v29 = vadd.f32 %v2245_v28, %v2197_v6  ;;  %v2277_v41 = vrot.slane %v2266_v54, %v8412_v30  ;;  %v2281_v27 = vrot.slane %v2267_v58, %v8412_v30 }
 0x310   : > { %v2285_v18 = vrot.slane %v2268_v17, %v8412_v30  ;;  %v2289_v63 = vrot.slane %v2269_v21, %v8412_v30  ;;  %vm2298_vm15 = vcmp.eq.s32.totalorder %v6523_v55, 9  ;;  %vm2299_vm11 = vcmp.eq.s32.totalorder %v6525_v52, 9 }
 0x311   : > { %vm2300_vm2 = vcmp.eq.s32.totalorder %v6527_v9, 9  ;;  %vm2301_vm10 = vcmp.eq.s32.totalorder %v6529_v60, 9  ;;  %v2290_v47 = vmul.f32 %v2277_v41, %v2270_v4  ;;  %v2291_v51 = vmul.f32 %v2281_v27, %v2271_v34  ;;  %v2370_v27 = vld [vmem:[#allocation2 + $0xe0] sm:$0xf] }
 0x312   : > { %v2292_v39 = vmul.f32 %v2285_v18, %v2272_v44  ;;  %v2293_v6 = vmul.f32 %v2289_v63, %v2273_v57  ;;  %v2302_v22 = vsel %vm2298_vm15, %v6503_v56, 0.0  ;;  %v2303_v3 = vsel %vm2299_vm11, %v6509_v24, 0.0 }
 0x313   : > { %v2304_v1 = vsel %vm2300_vm2, %v6515_v11, 0.0  ;;  %v2305_v26 = vsel %vm2301_vm10, %v6521_v12, 0.0  ;;  %v2294_v45 = vadd.f32 %v2290_v47, %v2250_v25  ;;  %v2295_v32 = vadd.f32 %v2291_v51, %v2251_v46 }
 0x314   : > { %v2296_v31 = vadd.f32 %v2292_v39, %v2252_v50  ;;  %v2297_v42 = vadd.f32 %v2293_v6, %v2253_v29  ;;  %v2306_v0 = vsel %vm2254_vm7, %v6534_v10, 0.0  ;;  %v2307_v36 = vsel %vm2255_vm4, %v6539_v62, 0.0  ;;  %v2371_v39 = vld [vmem:[#allocation2 + $0x90] sm:$0xf] }
 0x315   : > { %v2308_v15 = vsel %vm2256_vm6, %v6544_v35, 0.0  ;;  %v2309_v14 = vsel %vm2257_vm3, %v6549_v5, 0.0  ;;  %v2310_v53 = vadd.f32 %v2306_v0, %v2302_v22  ;;  %v2311_v2 = vadd.f32 %v2307_v36, %v2303_v3  ;;  %v2372_v6 = vld [vmem:[#allocation2 + $0x70] sm:$0xf]  ;;  %v2373_v22 = vld [vmem:[#allocation2 + $0xc0] sm:$0xf] }
 0x316   : > { %v2312_v38 = vadd.f32 %v2308_v15, %v2304_v1  ;;  %v2313_v7 = vadd.f32 %v2309_v14, %v2305_v26  ;;  %vm2354_vm13 = vcmp.eq.s32.totalorder %v6523_v55, 10  ;;  %vm2355_vm8 = vcmp.eq.s32.totalorder %v6525_v52, 10 }
 0x317   : > { %vm2356_vm0 = vcmp.eq.s32.totalorder %v6527_v9, 10  ;;  %vm2357_vm9 = vcmp.eq.s32.totalorder %v6529_v60, 10  ;;  %v2321_v43 = vrot.slane %v2310_v53, %v8412_v30  ;;  %v2325_v61 = vrot.slane %v2311_v2, %v8412_v30 }
 0x318   : > { %v2329_v37 = vrot.slane %v2312_v38, %v8412_v30  ;;  %v2333_v20 = vrot.slane %v2313_v7, %v8412_v30  ;;  %v2358_v23 = vsel %vm2354_vm13, %v6503_v56, 0.0  ;;  %v2359_v40 = vsel %vm2355_vm8, %v6509_v24, 0.0 }
 0x319   : > { %v2360_v8 = vsel %vm2356_vm0, %v6515_v11, 0.0  ;;  %v2361_v19 = vsel %vm2357_vm9, %v6521_v12, 0.0  ;;  %v2334_v59 = vmul.f32 %v2321_v43, %v2314_v49  ;;  %v2335_v48 = vmul.f32 %v2325_v61, %v2315_v16 }
 0x31a   : > { %v2336_v28 = vmul.f32 %v2329_v37, %v2316_v33  ;;  %v2337_v54 = vmul.f32 %v2333_v20, %v2317_v13  ;;  %v2362_v58 = vsel %vm2298_vm15, %v6534_v10, 0.0  ;;  %v2363_v17 = vsel %vm2299_vm11, %v6539_v62, 0.0 }
 0x31b   : > { %v2364_v21 = vsel %vm2300_vm2, %v6544_v35, 0.0  ;;  %v2365_v4 = vsel %vm2301_vm10, %v6549_v5, 0.0  ;;  %v2342_v25 = vrot.slane %v2334_v59, 4  ;;  %v2343_v46 = vrot.slane %v2335_v48, 4  ;;  %v2417_v59 = vld [vmem:[#allocation2 + $0xc0] sm:$0xf0] }
 0x31c   : > { %v2344_v50 = vrot.slane %v2336_v28, 4  ;;  %v2345_v29 = vrot.slane %v2337_v54, 4  ;;  %v2366_v34 = vadd.f32 %v2362_v58, %v2358_v23  ;;  %v2367_v44 = vadd.f32 %v2363_v17, %v2359_v40  ;;  %v2414_v40 = vld [vmem:[#allocation2 + $0xe0] sm:$0xf0] }
 0x31d   : > { %v2368_v57 = vadd.f32 %v2364_v21, %v2360_v8  ;;  %v2369_v41 = vadd.f32 %v2365_v4, %v2361_v19  ;;  %v2350_v18 = vadd.f32 %v2342_v25, %v2294_v45  ;;  %v2351_v63 = vadd.f32 %v2343_v46, %v2295_v32  ;;  %v2415_v8 = vld [vmem:[#allocation2 + $0x90] sm:$0xf0] }
 0x31e   : > { %v2352_v47 = vadd.f32 %v2344_v50, %v2296_v31  ;;  %v2353_v51 = vadd.f32 %v2345_v29, %v2297_v42  ;;  %v2377_v3 = vrot.slane %v2366_v34, %v8412_v30  ;;  %v2381_v1 = vrot.slane %v2367_v44, %v8412_v30  ;;  %v2416_v19 = vld [vmem:[#allocation2 + $0x70] sm:$0xf0] }
 0x31f   : > { %v2385_v26 = vrot.slane %v2368_v57, %v8412_v30  ;;  %v2389_v0 = vrot.slane %v2369_v41, %v8412_v30  ;;  %vm2398_vm14 = vcmp.eq.s32.totalorder %v6523_v55, 11  ;;  %vm2399_vm5 = vcmp.eq.s32.totalorder %v6525_v52, 11 }
 0x320   : > { %vm2400_vm12 = vcmp.eq.s32.totalorder %v6527_v9, 11  ;;  %vm2401_vm1 = vcmp.eq.s32.totalorder %v6529_v60, 11  ;;  %v2390_v45 = vmul.f32 %v2377_v3, %v2370_v27  ;;  %v2391_v32 = vmul.f32 %v2381_v1, %v2371_v39  ;;  %v2470_v1 = vld [vmem:[#allocation2 + $0xa8] sm:$0xf] }
 0x321   : > { %v2392_v31 = vmul.f32 %v2385_v26, %v2372_v6  ;;  %v2393_v42 = vmul.f32 %v2389_v0, %v2373_v22  ;;  %v2402_v36 = vsel %vm2398_vm14, %v6503_v56, 0.0  ;;  %v2403_v15 = vsel %vm2399_vm5, %v6509_v24, 0.0 }
 0x322   : > { %v2404_v14 = vsel %vm2400_vm12, %v6515_v11, 0.0  ;;  %v2405_v53 = vsel %vm2401_vm1, %v6521_v12, 0.0  ;;  %v2394_v2 = vadd.f32 %v2390_v45, %v2350_v18  ;;  %v2395_v38 = vadd.f32 %v2391_v32, %v2351_v63 }
 0x323   : > { %v2396_v7 = vadd.f32 %v2392_v31, %v2352_v47  ;;  %v2397_v49 = vadd.f32 %v2393_v42, %v2353_v51  ;;  %v2406_v16 = vsel %vm2354_vm13, %v6534_v10, 0.0  ;;  %v2407_v33 = vsel %vm2355_vm8, %v6539_v62, 0.0  ;;  %v2471_v31 = vld [vmem:[#allocation2 + $0xd0] sm:$0xf] }
 0x324   : > { %v2408_v13 = vsel %vm2356_vm0, %v6544_v35, 0.0  ;;  %v2409_v43 = vsel %vm2357_vm9, %v6549_v5, 0.0  ;;  %v2410_v61 = vadd.f32 %v2406_v16, %v2402_v36  ;;  %v2411_v37 = vadd.f32 %v2407_v33, %v2403_v15  ;;  %v2472_v42 = vld [vmem:[#allocation2 + $0x10] sm:$0xf]  ;;  %v2473_v36 = vld [vmem:[#allocation2 + $0x28] sm:$0xf] }
 0x325   : > { %v2412_v20 = vadd.f32 %v2408_v13, %v2404_v14  ;;  %v2413_v23 = vadd.f32 %v2409_v43, %v2405_v53  ;;  %vm2454_vm7 = vcmp.eq.s32.totalorder %v6523_v55, 12  ;;  %vm2455_vm4 = vcmp.eq.s32.totalorder %v6525_v52, 12 }
 0x326   : > { %vm2456_vm6 = vcmp.eq.s32.totalorder %v6527_v9, 12  ;;  %vm2457_vm3 = vcmp.eq.s32.totalorder %v6529_v60, 12  ;;  %v2421_v48 = vrot.slane %v2410_v61, %v8412_v30  ;;  %v2425_v28 = vrot.slane %v2411_v37, %v8412_v30 }
 0x327   : > { %v2429_v54 = vrot.slane %v2412_v20, %v8412_v30  ;;  %v2433_v58 = vrot.slane %v2413_v23, %v8412_v30  ;;  %v2458_v17 = vsel %vm2454_vm7, %v6503_v56, 0.0  ;;  %v2459_v21 = vsel %vm2455_vm4, %v6509_v24, 0.0 }
 0x328   : > { %v2460_v4 = vsel %vm2456_vm6, %v6515_v11, 0.0  ;;  %v2461_v25 = vsel %vm2457_vm3, %v6521_v12, 0.0  ;;  %v2434_v46 = vmul.f32 %v2421_v48, %v2414_v40  ;;  %v2435_v50 = vmul.f32 %v2425_v28, %v2415_v8 }
 0x329   : > { %v2436_v29 = vmul.f32 %v2429_v54, %v2416_v19  ;;  %v2437_v34 = vmul.f32 %v2433_v58, %v2417_v59  ;;  %v2462_v44 = vsel %vm2398_vm14, %v6534_v10, 0.0  ;;  %v2463_v57 = vsel %vm2399_vm5, %v6539_v62, 0.0 }
 0x32a   : > { %v2464_v41 = vsel %vm2400_vm12, %v6544_v35, 0.0  ;;  %v2465_v27 = vsel %vm2401_vm1, %v6549_v5, 0.0  ;;  %v2442_v18 = vrot.slane %v2434_v46, 4  ;;  %v2443_v63 = vrot.slane %v2435_v50, 4  ;;  %v2517_v46 = vld [vmem:[#allocation2 + $0x28] sm:$0xf0] }
 0x32b   : > { %v2444_v47 = vrot.slane %v2436_v29, 4  ;;  %v2445_v51 = vrot.slane %v2437_v34, 4  ;;  %v2466_v39 = vadd.f32 %v2462_v44, %v2458_v17  ;;  %v2467_v6 = vadd.f32 %v2463_v57, %v2459_v21  ;;  %v2514_v21 = vld [vmem:[#allocation2 + $0xa8] sm:$0xf0] }
 0x32c   : > { %v2468_v22 = vadd.f32 %v2464_v41, %v2460_v4  ;;  %v2469_v3 = vadd.f32 %v2465_v27, %v2461_v25  ;;  %v2450_v26 = vadd.f32 %v2442_v18, %v2394_v2  ;;  %v2451_v0 = vadd.f32 %v2443_v63, %v2395_v38  ;;  %v2515_v4 = vld [vmem:[#allocation2 + $0xd0] sm:$0xf0] }
 0x32d   : > { %v2452_v45 = vadd.f32 %v2444_v47, %v2396_v7  ;;  %v2453_v32 = vadd.f32 %v2445_v51, %v2397_v49  ;;  %v2477_v15 = vrot.slane %v2466_v39, %v8412_v30  ;;  %v2481_v14 = vrot.slane %v2467_v6, %v8412_v30  ;;  %v2516_v25 = vld [vmem:[#allocation2 + $0x10] sm:$0xf0] }
 0x32e   : > { %v2485_v53 = vrot.slane %v2468_v22, %v8412_v30  ;;  %v2489_v16 = vrot.slane %v2469_v3, %v8412_v30  ;;  %vm2498_vm15 = vcmp.eq.s32.totalorder %v6523_v55, 13  ;;  %vm2499_vm11 = vcmp.eq.s32.totalorder %v6525_v52, 13 }
 0x32f   : > { %vm2500_vm2 = vcmp.eq.s32.totalorder %v6527_v9, 13  ;;  %vm2501_vm10 = vcmp.eq.s32.totalorder %v6529_v60, 13  ;;  %v2490_v2 = vmul.f32 %v2477_v15, %v2470_v1  ;;  %v2491_v38 = vmul.f32 %v2481_v14, %v2471_v31  ;;  %v2570_v14 = vld [vmem:[#allocation2 + $0xa0] sm:$0xf] }
 0x330   : > { %v2492_v7 = vmul.f32 %v2485_v53, %v2472_v42  ;;  %v2493_v49 = vmul.f32 %v2489_v16, %v2473_v36  ;;  %v2502_v33 = vsel %vm2498_vm15, %v6503_v56, 0.0  ;;  %v2503_v13 = vsel %vm2499_vm11, %v6509_v24, 0.0  ;;  %v2571_v53 = vld [vmem:[#allocation2 + $0xf8] sm:$0xf]  ;;  %v2572_v16 = vld [vmem:[#allocation2 + $0x20] sm:$0xf] }
 0x331   : > { %v2504_v43 = vsel %vm2500_vm2, %v6515_v11, 0.0  ;;  %v2505_v61 = vsel %vm2501_vm10, %v6521_v12, 0.0  ;;  %v2494_v37 = vadd.f32 %v2490_v2, %v2450_v26  ;;  %v2495_v20 = vadd.f32 %v2491_v38, %v2451_v0 }
 0x332   : > { %v2496_v23 = vadd.f32 %v2492_v7, %v2452_v45  ;;  %v2497_v40 = vadd.f32 %v2493_v49, %v2453_v32  ;;  %v2506_v8 = vsel %vm2454_vm7, %v6534_v10, 0.0  ;;  %v2507_v19 = vsel %vm2455_vm4, %v6539_v62, 0.0 }
 0x333   : > { %v2508_v59 = vsel %vm2456_vm6, %v6544_v35, 0.0  ;;  %v2509_v48 = vsel %vm2457_vm3, %v6549_v5, 0.0  ;;  %v2510_v28 = vadd.f32 %v2506_v8, %v2502_v33  ;;  %v2511_v54 = vadd.f32 %v2507_v19, %v2503_v13  ;;  %v2573_v33 = vld [vmem:[#allocation2 + $0x98] sm:$0xf] }
 0x334   : > { %v2512_v58 = vadd.f32 %v2508_v59, %v2504_v43  ;;  %v2513_v17 = vadd.f32 %v2509_v48, %v2505_v61  ;;  %vm2554_vm13 = vcmp.eq.s32.totalorder %v6523_v55, 14  ;;  %vm2555_vm8 = vcmp.eq.s32.totalorder %v6525_v52, 14 }
 0x335   : > { %vm2556_vm0 = vcmp.eq.s32.totalorder %v6527_v9, 14  ;;  %vm2557_vm9 = vcmp.eq.s32.totalorder %v6529_v60, 14  ;;  %v2521_v50 = vrot.slane %v2510_v28, %v8412_v30  ;;  %v2525_v29 = vrot.slane %v2511_v54, %v8412_v30 }
 0x336   : > { %v2529_v34 = vrot.slane %v2512_v58, %v8412_v30  ;;  %v2533_v44 = vrot.slane %v2513_v17, %v8412_v30  ;;  %v2558_v57 = vsel %vm2554_vm13, %v6503_v56, 0.0  ;;  %v2559_v41 = vsel %vm2555_vm8, %v6509_v24, 0.0 }
 0x337   : > { %v2560_v27 = vsel %vm2556_vm0, %v6515_v11, 0.0  ;;  %v2561_v18 = vsel %vm2557_vm9, %v6521_v12, 0.0  ;;  %v2534_v63 = vmul.f32 %v2521_v50, %v2514_v21  ;;  %v2535_v47 = vmul.f32 %v2525_v29, %v2515_v4 }
 0x338   : > { %v2536_v51 = vmul.f32 %v2529_v34, %v2516_v25  ;;  %v2537_v39 = vmul.f32 %v2533_v44, %v2517_v46  ;;  %v2562_v6 = vsel %vm2498_vm15, %v6534_v10, 0.0  ;;  %v2563_v22 = vsel %vm2499_vm11, %v6539_v62, 0.0  ;;  %v2615_v25 = vld [vmem:[#allocation2 + $0xf8] sm:$0xf0] }
 0x339   : > { %v2564_v3 = vsel %vm2500_vm2, %v6544_v35, 0.0  ;;  %v2565_v1 = vsel %vm2501_vm10, %v6549_v5, 0.0  ;;  %v2542_v26 = vrot.slane %v2534_v63, 4  ;;  %v2543_v0 = vrot.slane %v2535_v47, 4 }
 0x33a   : > { %v2544_v45 = vrot.slane %v2536_v51, 4  ;;  %v2545_v32 = vrot.slane %v2537_v39, 4  ;;  %v2566_v31 = vadd.f32 %v2562_v6, %v2558_v57  ;;  %v2567_v42 = vadd.f32 %v2563_v22, %v2559_v41 }
 0x33b   : > { %v2568_v36 = vadd.f32 %v2564_v3, %v2560_v27  ;;  %v2569_v15 = vadd.f32 %v2565_v1, %v2561_v18  ;;  %vm2598_vm14 = vcmp.eq.s32.totalorder %v6523_v55, 15  ;;  %vm2599_vm5 = vcmp.eq.s32.totalorder %v6525_v52, 15  ;;  %v2616_v55 = vld [vmem:[#allocation2 + $0x20] sm:$0xf0] }
 0x33c   : > { %v2577_v2 = vrot.slane %v2566_v31, %v8412_v30  ;;  %v2581_v38 = vrot.slane %v2567_v42, %v8412_v30  ;;  %vm2600_vm12 = vcmp.eq.s32.totalorder %v6527_v9, 15  ;;  %vm2601_vm1 = vcmp.eq.s32.totalorder %v6529_v60, 15 }
 0x33d   : > { %v2585_v7 = vrot.slane %v2568_v36, %v8412_v30  ;;  %v2589_v49 = vrot.slane %v2569_v15, %v8412_v30  ;;  %v2550_v13 = vadd.f32 %v2542_v26, %v2494_v37  ;;  %v2551_v43 = vadd.f32 %v2543_v0, %v2495_v20 }
 0x33e   : > { %v2552_v61 = vadd.f32 %v2544_v45, %v2496_v23  ;;  %v2553_v8 = vadd.f32 %v2545_v32, %v2497_v40  ;;  %v2602_v19 = vsel %vm2598_vm14, %v6503_v56, 0.0  ;;  %v2603_v59 = vsel %vm2599_vm5, %v6509_v24, 0.0  ;;  %v2614_v40 = vld [vmem:[#allocation2 + $0xa0] sm:$0xf0] }
 0x33f   : > { %v2604_v48 = vsel %vm2600_vm12, %v6515_v11, 0.0  ;;  %v2605_v28 = vsel %vm2601_vm1, %v6521_v12, 0.0  ;;  %v2590_v54 = vmul.f32 %v2577_v2, %v2570_v14  ;;  %v2591_v58 = vmul.f32 %v2581_v38, %v2571_v53 }
 0x340   : > { %v2592_v17 = vmul.f32 %v2585_v7, %v2572_v16  ;;  %v2593_v21 = vmul.f32 %v2589_v49, %v2573_v33  ;;  %v2606_v4 = vsel %vm2554_vm13, %v6534_v10, 0.0  ;;  %v2607_v37 = vsel %vm2555_vm8, %v6539_v62, 0.0  ;;  %v2617_v10 = vld [vmem:[#allocation2 + $0x98] sm:$0xf0] }
 0x341   : > { %v2608_v56 = vsel %vm2556_vm0, %v6544_v35, 0.0  ;;  %v2609_v24 = vsel %vm2557_vm9, %v6549_v5, 0.0  ;;  %v2610_v11 = vadd.f32 %v2606_v4, %v2602_v19  ;;  %v2611_v12 = vadd.f32 %v2607_v37, %v2603_v59 }
 0x342   : > { %v2612_v20 = vadd.f32 %v2608_v56, %v2604_v48  ;;  %v2613_v23 = vadd.f32 %v2609_v24, %v2605_v28  ;;  %v2594_v35 = vadd.f32 %v2590_v54, %v2550_v13  ;;  %v2595_v50 = vadd.f32 %v2591_v58, %v2551_v43 }
 0x343   : > { %v2621_v46 = vrot.slane %v2610_v11, %v8412_v30  ;;  %v2625_v52 = vrot.slane %v2611_v12, %v8412_v30  ;;  %v2596_v60 = vadd.f32 %v2592_v17, %v2552_v61  ;;  %v2597_v5 = vadd.f32 %v2593_v21, %v2553_v8 }
 0x344   : > { %v2629_v62 = vrot.slane %v2612_v20, %v8412_v30  ;;  %v2633_v9 = vrot.slane %v2613_v23, %v8412_v30 }
 0x345   : > { %v2634_v29 = vmul.f32 %v2621_v46, %v2614_v40  ;;  %v2635_v34 = vmul.f32 %v2625_v52, %v2615_v25 }
 0x346   : > { %v2636_v44 = vmul.f32 %v2629_v62, %v2616_v55  ;;  %v2637_v57 = vmul.f32 %v2633_v9, %v2617_v10 }
 0x347   : > { %v2642_v41 = vrot.slane %v2634_v29, 4  ;;  %v2643_v27 = vrot.slane %v2635_v34, 4 }
 0x348   : > { %v2644_v18 = vrot.slane %v2636_v44, 4  ;;  %v2645_v63 = vrot.slane %v2637_v57, 4 }
 0x349   : > { %v2650_v47 = vadd.f32 %v2642_v41, %v2594_v35  ;;  %v2651_v51 = vadd.f32 %v2643_v27, %v2595_v50 }
 0x34a   : > { %v2652_v39 = vadd.f32 %v2644_v18, %v2596_v60  ;;  %v2653_v6 = vadd.f32 %v2645_v63, %v2597_v5 }
 0x34b   : > { %v2658_v22 = vcombine.low %v2650_v47, %v2651_v51 }
 0x34c   : > { %v2659_v30 = vcombine.low %v2652_v39, %v2653_v6 }
 0x34d   : > { %2662 = vst [vmem:[%s6431_s4] sm:$0xff] %v2658_v22 }
 0x34e   : > { %2663 = vst [vmem:[%s6431_s4 + $0x8] sm:$0xff] %v2659_v30 }
 0x34f PF: > { %s2817_s14 = sshll.u32 %s3050_s16, 5  ;;  %s2681_s7 = sshll.u32 %s6431_s4, 4  ;;  %s2682_s7 = int_to_ptr.vmem [resolvable:$true] %s2681_s7 }
 0x350   : > { %s2677_s27 = sadd.s32 %s2817_s14, %s3212_s24  ;;  %s2665_s23 = scalar_lea.sflag [#allocation5], %s253_s25 }
 0x351   : > { %s2818_s6 = sshll.u32 %s2677_s27, 6  ;;  %s2942_s26 = scalar_lea.vmem %s2682_s7, 256 }
 0x352   : > { %s2679_s5 = scalar_lea.hbm %s7115_s2, %s2818_s6  ;;  %p2943_p8 = scmp.ne.s32.totalorder %s2682_s7, %s2942_s26 }
 0x353   : > { %s3070_s28 = smov [#allocation4]  }
 0x354   : > { %p2944_p10 = pnand %p2943_p8, %p3172_p9  ;;  %s2946_s12 = sshll.u32 %s3070_s28, 4  ;;  %s2947_s12 = int_to_ptr.vmem [resolvable:$false] %s2946_s12 }
 0x355   : > { %s2948_s0 = scalar_lea.vmem %s2947_s12, 512  ;;  %p2949_p13 = scmp.lt.s32.totalorder %s2682_s7, %s2947_s12 }
 0x356   : > { %p2945_p12 = pneg %p2944_p10  ;;  %p2950_p0 = scmp.lt.s32.totalorder %s2948_s0, %s2942_s26 }
 0x358   : > { %p2951_p1 = por %p2950_p0, %p2949_p13 }
 0x35a   : > { %p2952_p2 = pnand %p2951_p1, %p2945_p12 }
 0x35c   : > { %2955 = shalt.err (!%p2952_p2)
}
 0x35d   : > { %s2956_s16 = scalar_lea.hbm %s2679_s5, 256  ;;  %s2960_s4 = scalar_lea.hbm %s7115_s2, 4096 }
 0x35e   : > { %p2957_p3 = scmp.ne.s32.totalorder %s2679_s5, %s2956_s16  ;;  %p2961_p6 = scmp.lt.s32.totalorder %s2679_s5, %s7115_s2 }
 0x35f   : > { %p2962_p7 = scmp.lt.s32.totalorder %s2960_s4, %s2956_s16 }
 0x360   : > { %p2958_p4 = pnand %p2957_p3, %p3172_p9 }
 0x361   : > { %p2963_p8 = por %p2962_p7, %p2961_p6 }
 0x362   : > { %p2959_p5 = pneg %p2958_p4 }
 0x364   : > { %p2964_p10 = pnand %p2963_p8, %p2959_p5 }
 0x366   : > { %2967 = shalt.err (!%p2964_p10)
}
 0x367   : > { %2837 = dma.vmem_to_hbm [thread:$0]  (%p3172_p9), %s2682_s7, 256, %s2679_s5, %s2665_s23  }
 0x368 PF: > { %p2843_p12 = scmp.ge.s32.totalorder %s3066_s20, 2  ;;  %s2693_s0 = sand.u32 1, %s3022_s9  }
 0x369   : > { %s2694_s6 = scalar_lea.sflag [#allocation5], %s2693_s0 }
 0x36a   : > { %p2840_p13 = pnand %p2843_p12, %p3179_p11 }
 0x36c   : > { %p2841_p0 = pneg %p2840_p13 }
 0x36e   : > { %3017 = dma.done.wait (%p2841_p0), %s2694_s6, 256  }
 0x36f   : > { %3019 = vsyncadd (%p2841_p0), %s2694_s6, 4294967040  ;;  %s15_s20 = sadd.s32 1, %s3066_s20   ;;  %s8413_s29 = sld [smem:[#allocation7_spill]] }
 0x370   : > { %p12_p1 = scmp.ge.s32.totalorder %s15_s20, 34   ;;  %s8414_s7 = sld [smem:[#allocation8_spill]] }
 0x371   : > { %s8415_s9 = smov %s3026_s10  ;;  %s8416_s10 = smov %s3030_s11 }
 0x372   : > { %s8417_s11 = smov %s3190_s21  ;;  %s8418_s12 = smov %s3038_s13 }
 0x373   : > { %s8419_s13 = smov %s3187_s8  ;;  %s8420_s14 = smov %s3054_s17 }
 0x374   : > { %s8421_s15 = smov %s3058_s18  ;;  %s8422_s16 = smov %s3062_s19 }
 0x375   : > { %s8423_s17 = smov %s8427_s22  ;;  %s8424_s18 = smov %s8413_s29 }
 0x376   : > { %s8425_s19 = smov %s8414_s7  ;;  %14 = sbr.rel (!%p12_p1) target bundleno = 9 (0x9), region = 117 }
 0x37b   :  { %2699 = vsyncpa [#allocation5], 1 }
 0x37c   :  { %2701 = vsyncpa [#allocation5 + $0x1], 1 }

</bundles_post_ra>
